<compile_context>
chip_gen: v5e
topology: v5e:2x2
jax: 0.10.0
libtpu: 0.0.40
codegen_flags: <defaults>
</compile_context>

<pallas_src>
import functools

import jax
import jax.numpy as jnp
from jax.experimental import pallas as pl
from jax.experimental.pallas import tpu as pltpu


# ----------------------------- helpers --------------------------------------

def _round_up(x, m):
    return ((x + m - 1) // m) * m


def _pick_block(dim, max_block, align):
    """Block size for one GEMM dim: the full dim if it fits, else the largest
    `align`-multiple divisor of `dim` <= max_block (avoids padding), else the
    largest `align`-multiple <= max_block (caller zero-pads)."""
    if dim <= max_block:
        return dim
    b = (max_block // align) * align
    while b >= align:
        if dim % b == 0:
            return b
        b -= align
    return (max_block // align) * align


def _itemsize(x):
    return jnp.dtype(x.dtype).itemsize


# -------------------- tiled GEMM + bias + ReLU kernel ------------------------

def _gemm_bias_relu_kernel(x_ref, w_ref, b_ref, o_ref, acc_ref):
    # x: (tm, tk) bf16, w: (tk, tn) bf16, b: (1, tn) f32 -> o = relu(x@w + b)
    @pl.when(pl.program_id(2) == 0)
    def _init():
        acc_ref[...] = jnp.zeros_like(acc_ref)

    acc_ref[...] += jnp.dot(x_ref[...], w_ref[...],
                            preferred_element_type=jnp.float32)

    @pl.when(pl.program_id(2) == pl.num_programs(2) - 1)
    def _finalize():
        y = acc_ref[...] + b_ref[...]
        o_ref[...] = jnp.maximum(y, 0.0).astype(o_ref.dtype)


def gemm_bias_relu(x, w, b, *, out_dtype=jnp.bfloat16, tm=512, tn=512, tk=2048):
    """relu(x @ w + b) via a tiled, pipelined Pallas GEMM (f32 accumulation)."""
    M, K = x.shape
    K2, N = w.shape
    assert K == K2 and b.shape == (N,)

    M8 = _round_up(M, 8)                       # keep sublane dim 8-aligned
    bm = _pick_block(M8, tm, 8)
    bn = _pick_block(N, tn, 128)
    bk = _pick_block(K, tk, 128)
    Mp, Np, Kp = _round_up(M8, bm), _round_up(N, bn), _round_up(K, bk)

    if (Mp, Kp) != (M, K):
        x = jnp.pad(x, ((0, Mp - M), (0, Kp - K)))
    if (Kp, Np) != (K, N):
        w = jnp.pad(w, ((0, Kp - K), (0, Np - N)))
    if Np != N:
        b = jnp.pad(b, (0, Np - N))

    grid = (Mp // bm, Np // bn, Kp // bk)
    out = pl.pallas_call(
        _gemm_bias_relu_kernel,
        out_shape=jax.ShapeDtypeStruct((Mp, Np), out_dtype),
        grid_spec=pltpu.PrefetchScalarGridSpec(
            num_scalar_prefetch=0,
            grid=grid,
            in_specs=[
                pl.BlockSpec((bm, bk), lambda i, j, k: (i, k)),
                pl.BlockSpec((bk, bn), lambda i, j, k: (k, j)),
                pl.BlockSpec((1, bn), lambda i, j, k: (0, j)),
            ],
            out_specs=pl.BlockSpec((bm, bn), lambda i, j, k: (i, j)),
            scratch_shapes=[pltpu.VMEM((bm, bn), jnp.float32)],
        ),
        compiler_params=pltpu.CompilerParams(
            dimension_semantics=("parallel", "parallel", "arbitrary"),
            vmem_limit_bytes=32 * 1024 * 1024,
        ),
        cost_estimate=pl.CostEstimate(
            flops=2 * Mp * Np * Kp,
            transcendentals=0,
            bytes_accessed=(Mp * Kp * _itemsize(x) + Kp * Np * _itemsize(w)
                            + 4 * Np + Mp * Np * jnp.dtype(out_dtype).itemsize),
        ),
    )(x, w, b.reshape(1, Np).astype(jnp.float32))

    if (Mp, Np) != (M, N):
        out = out[:M, :N]
    return out


# ------------- fused tail: global average pool + Linear + ReLU ---------------

def _pool_fc_relu_kernel(x_ref, wf_ref, bf_ref, o_ref, acc_ref, *, inv_p):
    # x: (B, tP, C) bf16; accumulate the spatial sum in f32, then fuse the
    # 1/P scale, the Linear and the ReLU into the final grid step.
    @pl.when(pl.program_id(0) == 0)
    def _init():
        acc_ref[...] = jnp.zeros_like(acc_ref)

    acc_ref[...] += jnp.sum(x_ref[...].astype(jnp.float32), axis=1)

    @pl.when(pl.program_id(0) == pl.num_programs(0) - 1)
    def _finalize():
        pooled = (acc_ref[...] * inv_p).astype(jnp.bfloat16)
        y = jnp.dot(pooled, wf_ref[...], preferred_element_type=jnp.float32)
        o_ref[...] = jnp.maximum(y + bf_ref[...], 0.0).astype(o_ref.dtype)


def pool_fc_relu(x_bpc, fc_w, fc_b, *, tp_max=512):
    """relu(mean_P(x) @ fc_w + fc_b) where x is (B, P, C)."""
    B, P, C = x_bpc.shape
    C2, F = fc_w.shape
    assert C == C2 and fc_b.shape == (F,)

    P8 = _round_up(P, 8)
    tP = _pick_block(P8, tp_max, 8)
    Pp = _round_up(P8, tP)
    if Pp != P:
        # Zero rows are harmless: we divide by the true P below.
        x_bpc = jnp.pad(x_bpc, ((0, 0), (0, Pp - P), (0, 0)))

    kernel = functools.partial(_pool_fc_relu_kernel, inv_p=1.0 / P)
    return pl.pallas_call(
        kernel,
        out_shape=jax.ShapeDtypeStruct((B, F), jnp.float32),
        grid_spec=pltpu.PrefetchScalarGridSpec(
            num_scalar_prefetch=0,
            grid=(Pp // tP,),
            in_specs=[
                pl.BlockSpec((B, tP, C), lambda p: (0, p, 0)),
                pl.BlockSpec((C, F), lambda p: (0, 0)),
                pl.BlockSpec((1, F), lambda p: (0, 0)),
            ],
            out_specs=pl.BlockSpec((B, F), lambda p: (0, 0)),
            scratch_shapes=[pltpu.VMEM((B, C), jnp.float32)],
        ),
        compiler_params=pltpu.CompilerParams(
            dimension_semantics=("arbitrary",),
            vmem_limit_bytes=32 * 1024 * 1024,
        ),
        cost_estimate=pl.CostEstimate(
            flops=B * Pp * C + 2 * B * C * F,
            transcendentals=0,
            bytes_accessed=(B * Pp * C * _itemsize(x_bpc)
                            + C * F * _itemsize(fc_w) + 4 * F + 4 * B * F),
        ),
    )(x_bpc, fc_w, fc_b.reshape(1, F).astype(jnp.float32))


# ------------------------------ JAX glue ------------------------------------

def _im2col_s2k3p1(x_nhwc):
    """3x3 / stride-2 / pad-1 patch extraction (host-side glue: pad + slices).

    Last-dim ordering is (kh, kw, cin), matching the HWIO weight flatten.
    """
    N, H, W, C = x_nhwc.shape
    Ho = (H - 1) // 2 + 1
    Wo = (W - 1) // 2 + 1
    xp = jnp.pad(x_nhwc, ((0, 0), (1, 1), (1, 1), (0, 0)))
    cols = []
    for kh in range(3):
        for kw in range(3):
            cols.append(xp[:, kh:kh + 2 * Ho - 1:2, kw:kw + 2 * Wo - 1:2, :])
    patches = jnp.concatenate(cols, axis=-1)          # (N, Ho, Wo, 9*C)
    return patches.reshape(N * Ho * Wo, 9 * C), (N, Ho, Wo)


def conv3x3_s2_relu(x_nhwc, w_hwio, b):
    KH, KW, Cin, Cout = w_hwio.shape
    x_col, (N, Ho, Wo) = _im2col_s2k3p1(x_nhwc)
    w_flat = w_hwio.reshape(KH * KW * Cin, Cout)
    y = gemm_bias_relu(x_col, w_flat, b, out_dtype=jnp.bfloat16)
    return y.reshape(N, Ho, Wo, Cout)


def gaussian_feature_encoder(x_nchw, params):
    # NCHW -> NHWC; matmul operands run in bf16, accumulation/epilogue in f32.
    x = jnp.transpose(x_nchw, (0, 2, 3, 1)).astype(jnp.bfloat16)
    for w, b in params["convs"]:
        x = conv3x3_s2_relu(x, w.astype(jnp.bfloat16), b)
    # Global average pool + Linear + ReLU fused in one Pallas kernel.
    N, Ho, Wo, C = x.shape
    return pool_fc_relu(x.reshape(N, Ho * Wo, C),
                        params["fc_w"].astype(jnp.bfloat16), params["fc_b"])


# ------------------------- deterministic parameters -------------------------

def init_params(key, input_channels, feature_dim=256):
    chans = [input_channels, 64, 128, 256, 512]
    convs = []
    for cin, cout in zip(chans[:-1], chans[1:]):
        key, kw_, kb_ = jax.random.split(key, 3)
        fan_in = cin * 9
        bound = 1.0 / jnp.sqrt(fan_in)
        w = jax.random.uniform(kw_, (3, 3, cin, cout), jnp.float32, -bound, bound)
        b = jax.random.uniform(kb_, (cout,), jnp.float32, -bound, bound)
        convs.append((w, b))
    key, kw_, kb_ = jax.random.split(key, 3)
    bound = 1.0 / jnp.sqrt(512.0)
    fc_w = jax.random.uniform(kw_, (512, feature_dim), jnp.float32, -bound, bound)
    fc_b = jax.random.uniform(kb_, (feature_dim,), jnp.float32, -bound, bound)
    return {"convs": convs, "fc_w": fc_w, "fc_b": fc_b}


# ------------------------- pure-JAX reference check --------------------------

def reference_forward(x_nchw, params):
    x = x_nchw
    for w, b in params["convs"]:
        x = jax.lax.conv_general_dilated(
            x, w, window_strides=(2, 2), padding=((1, 1), (1, 1)),
            dimension_numbers=("NCHW", "HWIO", "NCHW"))
        x = jax.nn.relu(x + b[None, :, None, None])
    pooled = jnp.mean(x, axis=(2, 3))
    return jax.nn.relu(pooled @ params["fc_w"] + params["fc_b"])


if __name__ == "__main__":
    key = jax.random.PRNGKey(0)
    k_param, k_x = jax.random.split(key)

    input_channels, feature_dim = 4, 256
    params = init_params(k_param, input_channels, feature_dim)

    # small input consistent with the module: batch=2, channels=4, 16x16 image
    x = jax.random.normal(k_x, (2, input_channels, 16, 16), jnp.float32)

    encoder = jax.jit(gaussian_feature_encoder)
    out = jax.block_until_ready(encoder(x, params))
    assert out.shape == (2, feature_dim), out.shape

    ref = jax.block_until_ready(reference_forward(x, params))
    # bf16 MXU operands (f32 accumulation) -> loosened tolerance vs f32 ref.
    err = float(jnp.max(jnp.abs(out - ref)))
    assert jnp.allclose(out, ref, atol=2e-2, rtol=2e-2), err

    print("KERNEL_OK")
</pallas_src>

<mosaic_0001>
module attributes {stable_mosaic.version = 11 : i64} {
  func.func @_gemm_bias_relu_kernel(%arg0: i32, %arg1: i32, %arg2: i32, %arg3: memref<128x36xbf16, #tpu.memory_space<vmem>>, %arg4: memref<36x64xbf16, #tpu.memory_space<vmem>>, %arg5: memref<1x64xf32, #tpu.memory_space<vmem>>, %arg6: memref<128x64xbf16, #tpu.memory_space<vmem>>, %arg7: memref<128x64xf32, #tpu.memory_space<vmem>>) attributes {dimension_semantics = [#tpu.dimension_semantics<parallel>, #tpu.dimension_semantics<parallel>, #tpu.dimension_semantics<arbitrary>], iteration_bounds = array<i64: 1, 1, 1>, scalar_prefetch = 0 : i64, scratch_operands = 1 : i64, tpu.core_type = #tpu.core_type<tc>, window_params = [{transform_indices = @transform_0, window_bounds = array<i64: 128, 36>}, {transform_indices = @transform_1, window_bounds = array<i64: 36, 64>}, {transform_indices = @transform_2, window_bounds = array<i64: 1, 64>}, {transform_indices = @transform_3, window_bounds = array<i64: 128, 64>}]} {
    %c0_i32 = arith.constant 0 : i32
    %0 = arith.cmpi eq, %arg2, %c0_i32 : i32
    %1 = arith.extui %0 : i1 to i32
    %c0_i32_0 = arith.constant 0 : i32
    %2 = arith.cmpi ne, %1, %c0_i32_0 : i32
    scf.if %2 {
      %cst_10 = arith.constant 0.000000e+00 : f32
      %12 = vector.broadcast %cst_10 : f32 to vector<128x64xf32>
      %c0_11 = arith.constant 0 : index
      %c0_12 = arith.constant 0 : index
      %13 = vector.load %arg7[%c0_11, %c0_12] : memref<128x64xf32, #tpu.memory_space<vmem>>, vector<128x64xf32>
      tpu.vector_store %arg7[%c0_11, %c0_12], %12 {strides = array<i32>} : memref<128x64xf32, #tpu.memory_space<vmem>>, vector<128x64xf32>,
    } else {
    }
    %c0 = arith.constant 0 : index
    %c0_1 = arith.constant 0 : index
    %3 = vector.load %arg7[%c0, %c0_1] : memref<128x64xf32, #tpu.memory_space<vmem>>, vector<128x64xf32>
    %c0_2 = arith.constant 0 : index
    %c0_3 = arith.constant 0 : index
    %4 = vector.load %arg3[%c0_2, %c0_3] : memref<128x36xbf16, #tpu.memory_space<vmem>>, vector<128x36xbf16>
    %c0_4 = arith.constant 0 : index
    %c0_5 = arith.constant 0 : index
    %5 = vector.load %arg4[%c0_4, %c0_5] : memref<36x64xbf16, #tpu.memory_space<vmem>>, vector<36x64xbf16>
    %cst = arith.constant dense<0.000000e+00> : vector<128x64xf32>
    %6 = tpu.matmul %4, %5, %cst {dimension_numbers = #tpu.dot_dimension_numbers<[1], [0], [0], [1], [0, 0, 1, 1], [], []>} : vector<128x36xbf16>, vector<36x64xbf16>, vector<128x64xf32> -> vector<128x64xf32>
    %7 = arith.addf %3, %6 : vector<128x64xf32>
    %c0_6 = arith.constant 0 : index
    %c0_7 = arith.constant 0 : index
    %8 = vector.load %arg7[%c0_6, %c0_7] : memref<128x64xf32, #tpu.memory_space<vmem>>, vector<128x64xf32>
    tpu.vector_store %arg7[%c0_6, %c0_7], %7 {strides = array<i32>} : memref<128x64xf32, #tpu.memory_space<vmem>>, vector<128x64xf32>,
    %c0_i32_8 = arith.constant 0 : i32
    %9 = arith.cmpi eq, %arg2, %c0_i32_8 : i32
    %10 = arith.extui %9 : i1 to i32
    %c0_i32_9 = arith.constant 0 : i32
    %11 = arith.cmpi ne, %10, %c0_i32_9 : i32
    scf.if %11 {
      %c0_10 = arith.constant 0 : index
      %c0_11 = arith.constant 0 : index
      %12 = vector.load %arg7[%c0_10, %c0_11] : memref<128x64xf32, #tpu.memory_space<vmem>>, vector<128x64xf32>
      %c0_12 = arith.constant 0 : index
      %c0_13 = arith.constant 0 : index
      %13 = vector.load %arg5[%c0_12, %c0_13] : memref<1x64xf32, #tpu.memory_space<vmem>>, vector<1x64xf32>
      %14 = vector.broadcast %13 : vector<1x64xf32> to vector<128x64xf32>
      %15 = arith.addf %12, %14 : vector<128x64xf32>
      %cst_14 = arith.constant 0.000000e+00 : f32
      %16 = vector.broadcast %cst_14 : f32 to vector<128x64xf32>
      %17 = arith.maximumf %15, %16 : vector<128x64xf32>
      %18 = arith.truncf %17 : vector<128x64xf32> to vector<128x64xbf16>
      %c0_15 = arith.constant 0 : index
      %c0_16 = arith.constant 0 : index
      %19 = vector.load %arg6[%c0_15, %c0_16] : memref<128x64xbf16, #tpu.memory_space<vmem>>, vector<128x64xbf16>
      tpu.vector_store %arg6[%c0_15, %c0_16], %18 {strides = array<i32>} : memref<128x64xbf16, #tpu.memory_space<vmem>>, vector<128x64xbf16>,
    } else {
    }
    return
  }
  func.func @transform_0(%arg0: i32, %arg1: i32, %arg2: i32) -> (i32, i32) {
    %c0_i32 = arith.constant 0 : i32
    return %arg0, %arg2 : i32, i32
  }
  func.func @transform_1(%arg0: i32, %arg1: i32, %arg2: i32) -> (i32, i32) {
    %c0_i32 = arith.constant 0 : i32
    return %arg2, %arg1 : i32, i32
  }
  func.func @transform_2(%arg0: i32, %arg1: i32, %arg2: i32) -> (i32, i32) {
    %c0_i32 = arith.constant 0 : i32
    %c0_i32_0 = arith.constant 0 : i32
    return %c0_i32, %arg1 : i32, i32
  }
  func.func @transform_3(%arg0: i32, %arg1: i32, %arg2: i32) -> (i32, i32) {
    %c0_i32 = arith.constant 0 : i32
    return %arg0, %arg1 : i32, i32
  }
}

module attributes {stable_mosaic.version = 11 : i64} {
  func.func @_gemm_bias_relu_kernel(%arg0: i32, %arg1: i32, %arg2: i32, %arg3: memref<32x576xbf16, #tpu.memory_space<vmem>>, %arg4: memref<576x128xbf16, #tpu.memory_space<vmem>>, %arg5: memref<1x128xf32, #tpu.memory_space<vmem>>, %arg6: memref<32x128xbf16, #tpu.memory_space<vmem>>, %arg7: memref<32x128xf32, #tpu.memory_space<vmem>>) attributes {dimension_semantics = [#tpu.dimension_semantics<parallel>, #tpu.dimension_semantics<parallel>, #tpu.dimension_semantics<arbitrary>], iteration_bounds = array<i64: 1, 1, 1>, scalar_prefetch = 0 : i64, scratch_operands = 1 : i64, tpu.core_type = #tpu.core_type<tc>, window_params = [{transform_indices = @transform_0, window_bounds = array<i64: 32, 576>}, {transform_indices = @transform_1, window_bounds = array<i64: 576, 128>}, {transform_indices = @transform_2, window_bounds = array<i64: 1, 128>}, {transform_indices = @transform_3, window_bounds = array<i64: 32, 128>}]} {
    %c0_i32 = arith.constant 0 : i32
    %0 = arith.cmpi eq, %arg2, %c0_i32 : i32
    %1 = arith.extui %0 : i1 to i32
    %c0_i32_0 = arith.constant 0 : i32
    %2 = arith.cmpi ne, %1, %c0_i32_0 : i32
    scf.if %2 {
      %cst_10 = arith.constant 0.000000e+00 : f32
      %12 = vector.broadcast %cst_10 : f32 to vector<32x128xf32>
      %c0_11 = arith.constant 0 : index
      %c0_12 = arith.constant 0 : index
      %13 = vector.load %arg7[%c0_11, %c0_12] : memref<32x128xf32, #tpu.memory_space<vmem>>, vector<32x128xf32>
      tpu.vector_store %arg7[%c0_11, %c0_12], %12 {strides = array<i32>} : memref<32x128xf32, #tpu.memory_space<vmem>>, vector<32x128xf32>,
    } else {
    }
    %c0 = arith.constant 0 : index
    %c0_1 = arith.constant 0 : index
    %3 = vector.load %arg7[%c0, %c0_1] : memref<32x128xf32, #tpu.memory_space<vmem>>, vector<32x128xf32>
    %c0_2 = arith.constant 0 : index
    %c0_3 = arith.constant 0 : index
    %4 = vector.load %arg3[%c0_2, %c0_3] : memref<32x576xbf16, #tpu.memory_space<vmem>>, vector<32x576xbf16>
    %c0_4 = arith.constant 0 : index
    %c0_5 = arith.constant 0 : index
    %5 = vector.load %arg4[%c0_4, %c0_5] : memref<576x128xbf16, #tpu.memory_space<vmem>>, vector<576x128xbf16>
    %cst = arith.constant dense<0.000000e+00> : vector<32x128xf32>
    %6 = tpu.matmul %4, %5, %cst {dimension_numbers = #tpu.dot_dimension_numbers<[1], [0], [0], [1], [0, 0, 1, 1], [], []>} : vector<32x576xbf16>, vector<576x128xbf16>, vector<32x128xf32> -> vector<32x128xf32>
    %7 = arith.addf %3, %6 : vector<32x128xf32>
    %c0_6 = arith.constant 0 : index
    %c0_7 = arith.constant 0 : index
    %8 = vector.load %arg7[%c0_6, %c0_7] : memref<32x128xf32, #tpu.memory_space<vmem>>, vector<32x128xf32>
    tpu.vector_store %arg7[%c0_6, %c0_7], %7 {strides = array<i32>} : memref<32x128xf32, #tpu.memory_space<vmem>>, vector<32x128xf32>,
    %c0_i32_8 = arith.constant 0 : i32
    %9 = arith.cmpi eq, %arg2, %c0_i32_8 : i32
    %10 = arith.extui %9 : i1 to i32
    %c0_i32_9 = arith.constant 0 : i32
    %11 = arith.cmpi ne, %10, %c0_i32_9 : i32
    scf.if %11 {
      %c0_10 = arith.constant 0 : index
      %c0_11 = arith.constant 0 : index
      %12 = vector.load %arg7[%c0_10, %c0_11] : memref<32x128xf32, #tpu.memory_space<vmem>>, vector<32x128xf32>
      %c0_12 = arith.constant 0 : index
      %c0_13 = arith.constant 0 : index
      %13 = vector.load %arg5[%c0_12, %c0_13] : memref<1x128xf32, #tpu.memory_space<vmem>>, vector<1x128xf32>
      %14 = vector.broadcast %13 : vector<1x128xf32> to vector<32x128xf32>
      %15 = arith.addf %12, %14 : vector<32x128xf32>
      %cst_14 = arith.constant 0.000000e+00 : f32
      %16 = vector.broadcast %cst_14 : f32 to vector<32x128xf32>
      %17 = arith.maximumf %15, %16 : vector<32x128xf32>
      %18 = arith.truncf %17 : vector<32x128xf32> to vector<32x128xbf16>
      %c0_15 = arith.constant 0 : index
      %c0_16 = arith.constant 0 : index
      %19 = vector.load %arg6[%c0_15, %c0_16] : memref<32x128xbf16, #tpu.memory_space<vmem>>, vector<32x128xbf16>
      tpu.vector_store %arg6[%c0_15, %c0_16], %18 {strides = array<i32>} : memref<32x128xbf16, #tpu.memory_space<vmem>>, vector<32x128xbf16>,
    } else {
    }
    return
  }
  func.func @transform_0(%arg0: i32, %arg1: i32, %arg2: i32) -> (i32, i32) {
    %c0_i32 = arith.constant 0 : i32
    return %arg0, %arg2 : i32, i32
  }
  func.func @transform_1(%arg0: i32, %arg1: i32, %arg2: i32) -> (i32, i32) {
    %c0_i32 = arith.constant 0 : i32
    return %arg2, %arg1 : i32, i32
  }
  func.func @transform_2(%arg0: i32, %arg1: i32, %arg2: i32) -> (i32, i32) {
    %c0_i32 = arith.constant 0 : i32
    %c0_i32_0 = arith.constant 0 : i32
    return %c0_i32, %arg1 : i32, i32
  }
  func.func @transform_3(%arg0: i32, %arg1: i32, %arg2: i32) -> (i32, i32) {
    %c0_i32 = arith.constant 0 : i32
    return %arg0, %arg1 : i32, i32
  }
}

module attributes {stable_mosaic.version = 11 : i64} {
  func.func @_gemm_bias_relu_kernel(%arg0: i32, %arg1: i32, %arg2: i32, %arg3: memref<8x1152xbf16, #tpu.memory_space<vmem>>, %arg4: memref<1152x256xbf16, #tpu.memory_space<vmem>>, %arg5: memref<1x256xf32, #tpu.memory_space<vmem>>, %arg6: memref<8x256xbf16, #tpu.memory_space<vmem>>, %arg7: memref<8x256xf32, #tpu.memory_space<vmem>>) attributes {dimension_semantics = [#tpu.dimension_semantics<parallel>, #tpu.dimension_semantics<parallel>, #tpu.dimension_semantics<arbitrary>], iteration_bounds = array<i64: 1, 1, 1>, scalar_prefetch = 0 : i64, scratch_operands = 1 : i64, tpu.core_type = #tpu.core_type<tc>, window_params = [{transform_indices = @transform_0, window_bounds = array<i64: 8, 1152>}, {transform_indices = @transform_1, window_bounds = array<i64: 1152, 256>}, {transform_indices = @transform_2, window_bounds = array<i64: 1, 256>}, {transform_indices = @transform_3, window_bounds = array<i64: 8, 256>}]} {
    %c0_i32 = arith.constant 0 : i32
    %0 = arith.cmpi eq, %arg2, %c0_i32 : i32
    %1 = arith.extui %0 : i1 to i32
    %c0_i32_0 = arith.constant 0 : i32
    %2 = arith.cmpi ne, %1, %c0_i32_0 : i32
    scf.if %2 {
      %cst_10 = arith.constant 0.000000e+00 : f32
      %12 = vector.broadcast %cst_10 : f32 to vector<8x256xf32>
      %c0_11 = arith.constant 0 : index
      %c0_12 = arith.constant 0 : index
      %13 = vector.load %arg7[%c0_11, %c0_12] : memref<8x256xf32, #tpu.memory_space<vmem>>, vector<8x256xf32>
      tpu.vector_store %arg7[%c0_11, %c0_12], %12 {strides = array<i32>} : memref<8x256xf32, #tpu.memory_space<vmem>>, vector<8x256xf32>,
    } else {
    }
    %c0 = arith.constant 0 : index
    %c0_1 = arith.constant 0 : index
    %3 = vector.load %arg7[%c0, %c0_1] : memref<8x256xf32, #tpu.memory_space<vmem>>, vector<8x256xf32>
    %c0_2 = arith.constant 0 : index
    %c0_3 = arith.constant 0 : index
    %4 = vector.load %arg3[%c0_2, %c0_3] : memref<8x1152xbf16, #tpu.memory_space<vmem>>, vector<8x1152xbf16>
    %c0_4 = arith.constant 0 : index
    %c0_5 = arith.constant 0 : index
    %5 = vector.load %arg4[%c0_4, %c0_5] : memref<1152x256xbf16, #tpu.memory_space<vmem>>, vector<1152x256xbf16>
    %cst = arith.constant dense<0.000000e+00> : vector<8x256xf32>
    %6 = tpu.matmul %4, %5, %cst {dimension_numbers = #tpu.dot_dimension_numbers<[1], [0], [0], [1], [0, 0, 1, 1], [], []>} : vector<8x1152xbf16>, vector<1152x256xbf16>, vector<8x256xf32> -> vector<8x256xf32>
    %7 = arith.addf %3, %6 : vector<8x256xf32>
    %c0_6 = arith.constant 0 : index
    %c0_7 = arith.constant 0 : index
    %8 = vector.load %arg7[%c0_6, %c0_7] : memref<8x256xf32, #tpu.memory_space<vmem>>, vector<8x256xf32>
    tpu.vector_store %arg7[%c0_6, %c0_7], %7 {strides = array<i32>} : memref<8x256xf32, #tpu.memory_space<vmem>>, vector<8x256xf32>,
    %c0_i32_8 = arith.constant 0 : i32
    %9 = arith.cmpi eq, %arg2, %c0_i32_8 : i32
    %10 = arith.extui %9 : i1 to i32
    %c0_i32_9 = arith.constant 0 : i32
    %11 = arith.cmpi ne, %10, %c0_i32_9 : i32
    scf.if %11 {
      %c0_10 = arith.constant 0 : index
      %c0_11 = arith.constant 0 : index
      %12 = vector.load %arg7[%c0_10, %c0_11] : memref<8x256xf32, #tpu.memory_space<vmem>>, vector<8x256xf32>
      %c0_12 = arith.constant 0 : index
      %c0_13 = arith.constant 0 : index
      %13 = vector.load %arg5[%c0_12, %c0_13] : memref<1x256xf32, #tpu.memory_space<vmem>>, vector<1x256xf32>
      %14 = vector.broadcast %13 : vector<1x256xf32> to vector<8x256xf32>
      %15 = arith.addf %12, %14 : vector<8x256xf32>
      %cst_14 = arith.constant 0.000000e+00 : f32
      %16 = vector.broadcast %cst_14 : f32 to vector<8x256xf32>
      %17 = arith.maximumf %15, %16 : vector<8x256xf32>
      %18 = arith.truncf %17 : vector<8x256xf32> to vector<8x256xbf16>
      %c0_15 = arith.constant 0 : index
      %c0_16 = arith.constant 0 : index
      %19 = vector.load %arg6[%c0_15, %c0_16] : memref<8x256xbf16, #tpu.memory_space<vmem>>, vector<8x256xbf16>
      tpu.vector_store %arg6[%c0_15, %c0_16], %18 {strides = array<i32>} : memref<8x256xbf16, #tpu.memory_space<vmem>>, vector<8x256xbf16>,
    } else {
    }
    return
  }
  func.func @transform_0(%arg0: i32, %arg1: i32, %arg2: i32) -> (i32, i32) {
    %c0_i32 = arith.constant 0 : i32
    return %arg0, %arg2 : i32, i32
  }
  func.func @transform_1(%arg0: i32, %arg1: i32, %arg2: i32) -> (i32, i32) {
    %c0_i32 = arith.constant 0 : i32
    return %arg2, %arg1 : i32, i32
  }
  func.func @transform_2(%arg0: i32, %arg1: i32, %arg2: i32) -> (i32, i32) {
    %c0_i32 = arith.constant 0 : i32
    %c0_i32_0 = arith.constant 0 : i32
    return %c0_i32, %arg1 : i32, i32
  }
  func.func @transform_3(%arg0: i32, %arg1: i32, %arg2: i32) -> (i32, i32) {
    %c0_i32 = arith.constant 0 : i32
    return %arg0, %arg1 : i32, i32
  }
}

module attributes {stable_mosaic.version = 11 : i64} {
  func.func @_gemm_bias_relu_kernel(%arg0: i32, %arg1: i32, %arg2: i32, %arg3: memref<8x1152xbf16, #tpu.memory_space<vmem>>, %arg4: memref<1152x512xbf16, #tpu.memory_space<vmem>>, %arg5: memref<1x512xf32, #tpu.memory_space<vmem>>, %arg6: memref<8x512xbf16, #tpu.memory_space<vmem>>, %arg7: memref<8x512xf32, #tpu.memory_space<vmem>>) attributes {dimension_semantics = [#tpu.dimension_semantics<parallel>, #tpu.dimension_semantics<parallel>, #tpu.dimension_semantics<arbitrary>], iteration_bounds = array<i64: 1, 1, 2>, scalar_prefetch = 0 : i64, scratch_operands = 1 : i64, tpu.core_type = #tpu.core_type<tc>, window_params = [{transform_indices = @transform_0, window_bounds = array<i64: 8, 1152>}, {transform_indices = @transform_1, window_bounds = array<i64: 1152, 512>}, {transform_indices = @transform_2, window_bounds = array<i64: 1, 512>}, {transform_indices = @transform_3, window_bounds = array<i64: 8, 512>}]} {
    %c0_i32 = arith.constant 0 : i32
    %0 = arith.cmpi eq, %arg2, %c0_i32 : i32
    %1 = arith.extui %0 : i1 to i32
    %c0_i32_0 = arith.constant 0 : i32
    %2 = arith.cmpi ne, %1, %c0_i32_0 : i32
    scf.if %2 {
      %cst_9 = arith.constant 0.000000e+00 : f32
      %12 = vector.broadcast %cst_9 : f32 to vector<8x512xf32>
      %c0_10 = arith.constant 0 : index
      %c0_11 = arith.constant 0 : index
      %13 = vector.load %arg7[%c0_10, %c0_11] : memref<8x512xf32, #tpu.memory_space<vmem>>, vector<8x512xf32>
      tpu.vector_store %arg7[%c0_10, %c0_11], %12 {strides = array<i32>} : memref<8x512xf32, #tpu.memory_space<vmem>>, vector<8x512xf32>,
    } else {
    }
    %c0 = arith.constant 0 : index
    %c0_1 = arith.constant 0 : index
    %3 = vector.load %arg7[%c0, %c0_1] : memref<8x512xf32, #tpu.memory_space<vmem>>, vector<8x512xf32>
    %c0_2 = arith.constant 0 : index
    %c0_3 = arith.constant 0 : index
    %4 = vector.load %arg3[%c0_2, %c0_3] : memref<8x1152xbf16, #tpu.memory_space<vmem>>, vector<8x1152xbf16>
    %c0_4 = arith.constant 0 : index
    %c0_5 = arith.constant 0 : index
    %5 = vector.load %arg4[%c0_4, %c0_5] : memref<1152x512xbf16, #tpu.memory_space<vmem>>, vector<1152x512xbf16>
    %cst = arith.constant dense<0.000000e+00> : vector<8x512xf32>
    %6 = tpu.matmul %4, %5, %cst {dimension_numbers = #tpu.dot_dimension_numbers<[1], [0], [0], [1], [0, 0, 1, 1], [], []>} : vector<8x1152xbf16>, vector<1152x512xbf16>, vector<8x512xf32> -> vector<8x512xf32>
    %7 = arith.addf %3, %6 : vector<8x512xf32>
    %c0_6 = arith.constant 0 : index
    %c0_7 = arith.constant 0 : index
    %8 = vector.load %arg7[%c0_6, %c0_7] : memref<8x512xf32, #tpu.memory_space<vmem>>, vector<8x512xf32>
    tpu.vector_store %arg7[%c0_6, %c0_7], %7 {strides = array<i32>} : memref<8x512xf32, #tpu.memory_space<vmem>>, vector<8x512xf32>,
    %c1_i32 = arith.constant 1 : i32
    %9 = arith.cmpi eq, %arg2, %c1_i32 : i32
    %10 = arith.extui %9 : i1 to i32
    %c0_i32_8 = arith.constant 0 : i32
    %11 = arith.cmpi ne, %10, %c0_i32_8 : i32
    scf.if %11 {
      %c0_9 = arith.constant 0 : index
      %c0_10 = arith.constant 0 : index
      %12 = vector.load %arg7[%c0_9, %c0_10] : memref<8x512xf32, #tpu.memory_space<vmem>>, vector<8x512xf32>
      %c0_11 = arith.constant 0 : index
      %c0_12 = arith.constant 0 : index
      %13 = vector.load %arg5[%c0_11, %c0_12] : memref<1x512xf32, #tpu.memory_space<vmem>>, vector<1x512xf32>
      %14 = vector.broadcast %13 : vector<1x512xf32> to vector<8x512xf32>
      %15 = arith.addf %12, %14 : vector<8x512xf32>
      %cst_13 = arith.constant 0.000000e+00 : f32
      %16 = vector.broadcast %cst_13 : f32 to vector<8x512xf32>
      %17 = arith.maximumf %15, %16 : vector<8x512xf32>
      %18 = arith.truncf %17 : vector<8x512xf32> to vector<8x512xbf16>
      %c0_14 = arith.constant 0 : index
      %c0_15 = arith.constant 0 : index
      %19 = vector.load %arg6[%c0_14, %c0_15] : memref<8x512xbf16, #tpu.memory_space<vmem>>, vector<8x512xbf16>
      tpu.vector_store %arg6[%c0_14, %c0_15], %18 {strides = array<i32>} : memref<8x512xbf16, #tpu.memory_space<vmem>>, vector<8x512xbf16>,
    } else {
    }
    return
  }
  func.func @transform_0(%arg0: i32, %arg1: i32, %arg2: i32) -> (i32, i32) {
    %c0_i32 = arith.constant 0 : i32
    return %arg0, %arg2 : i32, i32
  }
  func.func @transform_1(%arg0: i32, %arg1: i32, %arg2: i32) -> (i32, i32) {
    %c0_i32 = arith.constant 0 : i32
    return %arg2, %arg1 : i32, i32
  }
  func.func @transform_2(%arg0: i32, %arg1: i32, %arg2: i32) -> (i32, i32) {
    %c0_i32 = arith.constant 0 : i32
    %c0_i32_0 = arith.constant 0 : i32
    return %c0_i32, %arg1 : i32, i32
  }
  func.func @transform_3(%arg0: i32, %arg1: i32, %arg2: i32) -> (i32, i32) {
    %c0_i32 = arith.constant 0 : i32
    return %arg0, %arg1 : i32, i32
  }
}

module attributes {stable_mosaic.version = 11 : i64} {
  func.func @_pool_fc_relu_kernel(%arg0: i32, %arg1: memref<2x8x512xbf16, #tpu.memory_space<vmem>>, %arg2: memref<512x256xbf16, #tpu.memory_space<vmem>>, %arg3: memref<1x256xf32, #tpu.memory_space<vmem>>, %arg4: memref<2x256xf32, #tpu.memory_space<vmem>>, %arg5: memref<2x512xf32, #tpu.memory_space<vmem>>) attributes {dimension_semantics = [#tpu.dimension_semantics<arbitrary>], iteration_bounds = array<i64: 1>, scalar_prefetch = 0 : i64, scratch_operands = 1 : i64, tpu.core_type = #tpu.core_type<tc>, window_params = [{transform_indices = @transform_0, window_bounds = array<i64: 2, 8, 512>}, {pipeline_mode = #tpu.pipeline_mode<synchronous>, transform_indices = @transform_1, window_bounds = array<i64: 512, 256>}, {pipeline_mode = #tpu.pipeline_mode<synchronous>, transform_indices = @transform_2, window_bounds = array<i64: 1, 256>}, {pipeline_mode = #tpu.pipeline_mode<synchronous>, transform_indices = @transform_3, window_bounds = array<i64: 2, 256>}]} {
    %c0_i32 = arith.constant 0 : i32
    %0 = arith.cmpi eq, %arg0, %c0_i32 : i32
    %1 = arith.extui %0 : i1 to i32
    %c0_i32_0 = arith.constant 0 : i32
    %2 = arith.cmpi ne, %1, %c0_i32_0 : i32
    scf.if %2 {
      %cst_9 = arith.constant 0.000000e+00 : f32
      %12 = vector.broadcast %cst_9 : f32 to vector<2x512xf32>
      %c0_10 = arith.constant 0 : index
      %c0_11 = arith.constant 0 : index
      %13 = vector.load %arg5[%c0_10, %c0_11] : memref<2x512xf32, #tpu.memory_space<vmem>>, vector<2x512xf32>
      tpu.vector_store %arg5[%c0_10, %c0_11], %12 {strides = array<i32>} : memref<2x512xf32, #tpu.memory_space<vmem>>, vector<2x512xf32>,
    } else {
    }
    %c0 = arith.constant 0 : index
    %c0_1 = arith.constant 0 : index
    %3 = vector.load %arg5[%c0, %c0_1] : memref<2x512xf32, #tpu.memory_space<vmem>>, vector<2x512xf32>
    %c0_2 = arith.constant 0 : index
    %c0_3 = arith.constant 0 : index
    %c0_4 = arith.constant 0 : index
    %4 = vector.load %arg1[%c0_2, %c0_3, %c0_4] : memref<2x8x512xbf16, #tpu.memory_space<vmem>>, vector<2x8x512xbf16>
    %5 = arith.extf %4 : vector<2x8x512xbf16> to vector<2x8x512xf32>
    %cst = arith.constant dense<0.000000e+00> : vector<2x512xf32>
    %6 = vector.multi_reduction <add>, %5, %cst [1] : vector<2x8x512xf32> to vector<2x512xf32>
    %7 = arith.addf %3, %6 : vector<2x512xf32>
    %c0_5 = arith.constant 0 : index
    %c0_6 = arith.constant 0 : index
    %8 = vector.load %arg5[%c0_5, %c0_6] : memref<2x512xf32, #tpu.memory_space<vmem>>, vector<2x512xf32>
    tpu.vector_store %arg5[%c0_5, %c0_6], %7 {strides = array<i32>} : memref<2x512xf32, #tpu.memory_space<vmem>>, vector<2x512xf32>,
    %c0_i32_7 = arith.constant 0 : i32
    %9 = arith.cmpi eq, %arg0, %c0_i32_7 : i32
    %10 = arith.extui %9 : i1 to i32
    %c0_i32_8 = arith.constant 0 : i32
    %11 = arith.cmpi ne, %10, %c0_i32_8 : i32
    scf.if %11 {
      %c0_9 = arith.constant 0 : index
      %c0_10 = arith.constant 0 : index
      %12 = vector.load %arg5[%c0_9, %c0_10] : memref<2x512xf32, #tpu.memory_space<vmem>>, vector<2x512xf32>
      %cst_11 = arith.constant 1.000000e+00 : f32
      %13 = vector.broadcast %cst_11 : f32 to vector<2x512xf32>
      %14 = arith.mulf %12, %13 : vector<2x512xf32>
      %15 = arith.truncf %14 : vector<2x512xf32> to vector<2x512xbf16>
      %c0_12 = arith.constant 0 : index
      %c0_13 = arith.constant 0 : index
      %16 = vector.load %arg2[%c0_12, %c0_13] : memref<512x256xbf16, #tpu.memory_space<vmem>>, vector<512x256xbf16>
      %cst_14 = arith.constant dense<0.000000e+00> : vector<2x256xf32>
      %17 = tpu.matmul %15, %16, %cst_14 {dimension_numbers = #tpu.dot_dimension_numbers<[1], [0], [0], [1], [0, 0, 1, 1], [], []>} : vector<2x512xbf16>, vector<512x256xbf16>, vector<2x256xf32> -> vector<2x256xf32>
      %c0_15 = arith.constant 0 : index
      %c0_16 = arith.constant 0 : index
      %18 = vector.load %arg3[%c0_15, %c0_16] : memref<1x256xf32, #tpu.memory_space<vmem>>, vector<1x256xf32>
      %19 = vector.broadcast %18 : vector<1x256xf32> to vector<2x256xf32>
      %20 = arith.addf %17, %19 : vector<2x256xf32>
      %cst_17 = arith.constant 0.000000e+00 : f32
      %21 = vector.broadcast %cst_17 : f32 to vector<2x256xf32>
      %22 = arith.maximumf %20, %21 : vector<2x256xf32>
      %c0_18 = arith.constant 0 : index
      %c0_19 = arith.constant 0 : index
      %23 = vector.load %arg4[%c0_18, %c0_19] : memref<2x256xf32, #tpu.memory_space<vmem>>, vector<2x256xf32>
      tpu.vector_store %arg4[%c0_18, %c0_19], %22 {strides = array<i32>} : memref<2x256xf32, #tpu.memory_space<vmem>>, vector<2x256xf32>,
    } else {
    }
    return
  }
  func.func @transform_0(%arg0: i32) -> (i32, i32, i32) {
    %c0_i32 = arith.constant 0 : i32
    %c0_i32_0 = arith.constant 0 : i32
    %c0_i32_1 = arith.constant 0 : i32
    return %c0_i32, %arg0, %c0_i32_0 : i32, i32, i32
  }
  func.func @transform_1(%arg0: i32) -> (i32, i32) {
    %c0_i32 = arith.constant 0 : i32
    %c0_i32_0 = arith.constant 0 : i32
    %c0_i32_1 = arith.constant 0 : i32
    return %c0_i32, %c0_i32_0 : i32, i32
  }
  func.func @transform_2(%arg0: i32) -> (i32, i32) {
    %c0_i32 = arith.constant 0 : i32
    %c0_i32_0 = arith.constant 0 : i32
    %c0_i32_1 = arith.constant 0 : i32
    return %c0_i32, %c0_i32_0 : i32, i32
  }
  func.func @transform_3(%arg0: i32) -> (i32, i32) {
    %c0_i32 = arith.constant 0 : i32
    %c0_i32_0 = arith.constant 0 : i32
    %c0_i32_1 = arith.constant 0 : i32
    return %c0_i32, %c0_i32_0 : i32, i32
  }
}

</mosaic_0001>

<bundles_post_ra>
// kernel: gaussian_feature_encoder.5
= control target key start
LH: loop header
LB: loop body
LE: loop exit
PB: predicated region body
PF: predicated region fallthrough
CT: control target
= control target key end

     0   :  { %8 = vsyncpa [#allocation4], 0  ;;  %s442_s15 = smov [#allocation3]   ;;  %s622_s0 = inlined_call_operand.vmem [shape: bf16[128,36], index: 0, kind: input, shape index: {}]   ;;  %s623_s1 = inlined_call_operand.vmem [shape: bf16[36,64], index: 1, kind: input, shape index: {}]   ;;  %s624_s2 = inlined_call_operand.hbm [shape: f32[1,64], index: 2, kind: input, shape index: {}]   ;;  %s625_s3 = inlined_call_operand.vmem [shape: bf16[128,64], index: 3, kind: output, shape index: {}]  }
   0x1   :  { %s18_s14 = sshll.u32 %s624_s2, 4  ;;  %s20_s16 = sshll.u32 %s442_s15, 4  ;;  %s19_s14 = int_to_ptr.hbm [resolvable:$true] %s18_s14  ;;  %s21_s16 = int_to_ptr.vmem [resolvable:$true] %s20_s16 }
   0x2   :  { %23 = dma.hbm_to_vmem [thread:$0]  %s19_s14, 16, %s21_s16, [#allocation4]  }
   0x3   :  { %440 = dma.done.wait [#allocation4], 16  }
   0x4   :  { %441 = vsyncadd [#allocation4], 4294967280  ;;  %v86_v0 = vld [vmem:[%s623_s1 + $0x10] sm:$0x3]  ;;  %vm167_vm0 = vcmask 1041408   ;;  %vm33_vm1 = vcmask 523264  }
   0x5   :  { %v136_v1 = vunpack.c.l.b16 %v86_v0  ;;  %v443_v3 = vmov 0.0   ;;  %v403_v5 = vld [vmem:[%s623_s1 + $0x8] sm:$0xff]  ;;  %v402_v6 = vld [vmem:[%s623_s1] sm:$0xff]  ;;  %v396_v8 = vld [vmem:[%s622_s0 + $0x10] sm:$0xff]  ;;  %vm142_vm2 = vcmask 293888   ;;  %vm324_vm3 = vcmask 519168  }
   0x6   :  { %34 = vst.msk [vmem:[#allocation2] sm:$0xff] %vm33_vm1, %v443_v3  ;;  %v394_v7 = vld [vmem:[%s622_s0] sm:$0xff]  ;;  %v400_v10 = vld [vmem:[%s622_s0 + $0x30] sm:$0xff]  ;;  %v395_v11 = vld [vmem:[%s622_s0 + $0x8] sm:$0xff] }
   0x7   :  { %v139_v2 = vpack.c.b16 %v136_v1, %v136_v1  ;;  %35 = vst.msk [vmem:[#allocation2 + $0x8] sm:$0xff] %vm33_vm1, %v443_v3  ;;  %v398_v9 = vld [vmem:[%s622_s0 + $0x20] sm:$0xff]  ;;  %v397_v12 = vld [vmem:[%s622_s0 + $0x18] sm:$0xff]  ;;  %v399_v13 = vld [vmem:[%s622_s0 + $0x28] sm:$0xff] }
   0x8   :  { %36 = vst.msk [vmem:[#allocation2 + $0x10] sm:$0xff] %vm33_vm1, %v443_v3  ;;  %v401_v14 = vld [vmem:[%s622_s0 + $0x38] sm:$0xff]  ;;  %v526_v25 = vld [vmem:[#allocation3] ss:$0 sm:$0xff] }
   0x9   :  { %v169_v4 = vsel %vm167_vm0, %v139_v2, 0  ;;  %37 = vst.msk [vmem:[#allocation2 + $0x18] sm:$0xff] %vm33_vm1, %v443_v3 }
   0xa   :  { %176 = vmatpush.bf16.msra.mxu0 %v169_v4  ;;  %404 = vmatpush.bf16.msra.mxu1 %v169_v4  ;;  %38 = vst.msk [vmem:[#allocation2 + $0x20] sm:$0xff] %vm33_vm1, %v443_v3 }
   0xb   :  { %405 = vmatpush.bf16.msra.mxu2 %v169_v4  ;;  %406 = vmatpush.bf16.msra.mxu3 %v169_v4  ;;  %39 = vst.msk [vmem:[#allocation2 + $0x28] sm:$0xff] %vm33_vm1, %v443_v3 }
   0xc   :  { %40 = vst.msk [vmem:[#allocation2 + $0x30] sm:$0xff] %vm33_vm1, %v443_v3 }
   0xd   :  { %41 = vst.msk [vmem:[#allocation2 + $0x38] sm:$0xff] %vm33_vm1, %v443_v3  ;;  %v50_v15 = vld [vmem:[#allocation2] sm:$0xff] }
   0xe   :  { %177 = vmatpush.bf16.msra.mxu0 %v403_v5  ;;  %407 = vmatpush.bf16.msra.mxu1 %v403_v5  ;;  %42 = vst.msk [vmem:[#allocation2 + $0x40] sm:$0xff] %vm33_vm1, %v443_v3  ;;  %v51_v23 = vld [vmem:[#allocation2 + $0x8] sm:$0xff] }
   0xf   :  { %408 = vmatpush.bf16.msra.mxu2 %v403_v5  ;;  %409 = vmatpush.bf16.msra.mxu3 %v403_v5  ;;  %43 = vst.msk [vmem:[#allocation2 + $0x48] sm:$0xff] %vm33_vm1, %v443_v3  ;;  %v52_v42 = vld [vmem:[#allocation2 + $0x10] sm:$0xff] }
  0x10   :  { %44 = vst.msk [vmem:[#allocation2 + $0x50] sm:$0xff] %vm33_vm1, %v443_v3 }
  0x11   :  { %45 = vst.msk [vmem:[#allocation2 + $0x58] sm:$0xff] %vm33_vm1, %v443_v3  ;;  %v54_v16 = vld [vmem:[#allocation2 + $0x20] sm:$0xff] }
  0x12   :  { %178 = vmatpush.bf16.msra.mxu0 %v402_v6  ;;  %410 = vmatpush.bf16.msra.mxu1 %v402_v6  ;;  %46 = vst.msk [vmem:[#allocation2 + $0x60] sm:$0xff] %vm33_vm1, %v443_v3  ;;  %v55_v24 = vld [vmem:[#allocation2 + $0x28] sm:$0xff] }
  0x13   :  { %411 = vmatpush.bf16.msra.mxu2 %v402_v6  ;;  %412 = vmatpush.bf16.msra.mxu3 %v402_v6  ;;  %47 = vst.msk [vmem:[#allocation2 + $0x68] sm:$0xff] %vm33_vm1, %v443_v3  ;;  %v56_v46 = vld [vmem:[#allocation2 + $0x30] sm:$0xff] }
  0x14   :  { %48 = vst.msk [vmem:[#allocation2 + $0x70] sm:$0xff] %vm33_vm1, %v443_v3 }
  0x15   :  { %386 = vmatmul.msk.bf16.vlgmr.msra.gmra.mxu0 %vm142_vm2, %v394_v7  ;;  %388 = vmatmul.msk.bf16.vlgmr.msra.gmra.mxu1 %vm142_vm2, %v396_v8  ;;  %49 = vst.msk [vmem:[#allocation2 + $0x78] sm:$0xff] %vm33_vm1, %v443_v3  ;;  %v58_v21 = vld [vmem:[#allocation2 + $0x40] sm:$0xff]  ;;  %v53_v8 = vld [vmem:[#allocation2 + $0x18] sm:$0xff] }
  0x16   :  { %390 = vmatmul.msk.bf16.vlgmr.msra.gmra.mxu2 %vm142_vm2, %v398_v9  ;;  %392 = vmatmul.msk.bf16.vlgmr.msra.gmra.mxu3 %vm142_vm2, %v400_v10  ;;  %v59_v39 = vld [vmem:[#allocation2 + $0x48] sm:$0xff] }
  0x17   :  { %v60_v0 = vld [vmem:[#allocation2 + $0x50] sm:$0xff] }
  0x19   :  { %v62_v22 = vld [vmem:[#allocation2 + $0x60] sm:$0xff] }
  0x1a   :  { %v63_v40 = vld [vmem:[#allocation2 + $0x68] sm:$0xff] }
  0x1b   :  { %v64_v3 = vld [vmem:[#allocation2 + $0x70] sm:$0xff] }
  0x25   :  { %387 = vmatmul.msk.bf16.gmra.mxu0 %vm142_vm2, %v395_v11  ;;  %389 = vmatmul.msk.bf16.gmra.mxu1 %vm142_vm2, %v397_v12  ;;  %v57_v12 = vld [vmem:[#allocation2 + $0x38] sm:$0xff] }
  0x26   :  { %391 = vmatmul.msk.bf16.gmra.mxu2 %vm142_vm2, %v399_v13  ;;  %393 = vmatmul.msk.bf16.gmra.mxu3 %vm142_vm2, %v401_v14 }
  0x92   :  { %v180_v17 = vpop.f32.mrf.mxu0  ;;  %v190_v18 = vpop.f32.mrf.mxu1 }
  0x93   :  { %v220_v19 = vadd.f32 %v180_v17, %v50_v15  ;;  %v224_v20 = vadd.f32 %v190_v18, %v54_v16 }
  0x95   :  { %237 = vst.msk [vmem:[#allocation2] sm:$0xff] %vm33_vm1, %v220_v19 }
  0x96   :  { %241 = vst.msk [vmem:[#allocation2 + $0x20] sm:$0xff] %vm33_vm1, %v224_v20 }
  0x99   :  { %v200_v26 = vpop.f32.mrf.mxu2  ;;  %v210_v27 = vpop.f32.mrf.mxu3 }
  0x9a   :  { %v228_v28 = vadd.f32 %v200_v26, %v58_v21  ;;  %v232_v29 = vadd.f32 %v210_v27, %v62_v22  ;;  %v182_v30 = vpop.f32.mrf.mxu0  ;;  %v192_v31 = vpop.f32.mrf.mxu1 }
  0x9b   :  { %v221_v32 = vadd.f32 %v182_v30, %v51_v23  ;;  %v225_v33 = vadd.f32 %v192_v31, %v55_v24 }
  0x9c   :  { %v256_v34 = vld [vmem:[#allocation2] sm:$0xff]  ;;  %245 = vst.msk [vmem:[#allocation2 + $0x40] sm:$0xff] %vm33_vm1, %v228_v28 }
  0x9d   :  { %v276_v35 = vadd.f32 %v526_v25, %v256_v34  ;;  %v260_v36 = vld [vmem:[#allocation2 + $0x20] sm:$0xff]  ;;  %249 = vst.msk [vmem:[#allocation2 + $0x60] sm:$0xff] %vm33_vm1, %v232_v29  ;;  %v61_v29 = vld [vmem:[#allocation2 + $0x58] sm:$0xff] }
  0x9e   :  { %v280_v37 = vadd.f32 %v526_v25, %v260_v36  ;;  %238 = vst.msk [vmem:[#allocation2 + $0x8] sm:$0xff] %vm33_vm1, %v221_v32 }
  0x9f   :  { %v292_v38 = vmax.f32 %v276_v35, 0.0  ;;  %242 = vst.msk [vmem:[#allocation2 + $0x28] sm:$0xff] %vm33_vm1, %v225_v33  ;;  %v65_v33 = vld [vmem:[#allocation2 + $0x78] sm:$0xff] }
  0xa0   :  { %v296_v41 = vmax.f32 %v280_v37, 0.0 }
  0xa1   :  { %v308_v43 = vpack.c.bf16 %v292_v38, %v292_v38  ;;  %v202_v44 = vpop.f32.mrf.mxu2  ;;  %v212_v45 = vpop.f32.mrf.mxu3 }
  0xa2   :  { %v312_v47 = vpack.c.bf16 %v296_v41, %v296_v41  ;;  %v229_v48 = vadd.f32 %v202_v44, %v59_v39  ;;  %v233_v49 = vadd.f32 %v212_v45, %v63_v40  ;;  %v185_v50 = vpop.f32.mrf.mxu0  ;;  %v195_v51 = vpop.f32.mrf.mxu1 }
  0xa3   :  { %325 = vst.msk [vmem:[%s625_s3] sm:$0xf] %vm324_vm3, %v308_v43  ;;  %v264_v52 = vld [vmem:[#allocation2 + $0x40] sm:$0xff]  ;;  %v222_v53 = vadd.f32 %v185_v50, %v52_v42  ;;  %v226_v56 = vadd.f32 %v195_v51, %v56_v46 }
  0xa4   :  { %329 = vst.msk [vmem:[%s625_s3 + $0x10] sm:$0xf] %vm324_vm3, %v312_v47  ;;  %v284_v54 = vadd.f32 %v526_v25, %v264_v52  ;;  %v268_v55 = vld [vmem:[#allocation2 + $0x60] sm:$0xff] }
  0xa5   :  { %v288_v57 = vadd.f32 %v526_v25, %v268_v55  ;;  %v257_v58 = vld [vmem:[#allocation2 + $0x8] sm:$0xff]  ;;  %246 = vst.msk [vmem:[#allocation2 + $0x48] sm:$0xff] %vm33_vm1, %v229_v48 }
  0xa6   :  { %v300_v59 = vmax.f32 %v284_v54, 0.0  ;;  %v277_v60 = vadd.f32 %v526_v25, %v257_v58  ;;  %v261_v61 = vld [vmem:[#allocation2 + $0x28] sm:$0xff]  ;;  %250 = vst.msk [vmem:[#allocation2 + $0x68] sm:$0xff] %vm33_vm1, %v233_v49 }
  0xa7   :  { %v304_v62 = vmax.f32 %v288_v57, 0.0  ;;  %v281_v63 = vadd.f32 %v526_v25, %v261_v61  ;;  %239 = vst.msk [vmem:[#allocation2 + $0x10] sm:$0xff] %vm33_vm1, %v222_v53 }
  0xa8   :  { %v316_v1 = vpack.c.bf16 %v300_v59, %v300_v59  ;;  %v293_v2 = vmax.f32 %v277_v60, 0.0  ;;  %243 = vst.msk [vmem:[#allocation2 + $0x30] sm:$0xff] %vm33_vm1, %v226_v56 }
  0xa9   :  { %v320_v4 = vpack.c.bf16 %v304_v62, %v304_v62  ;;  %v297_v5 = vmax.f32 %v281_v63, 0.0  ;;  %v205_v6 = vpop.f32.mrf.mxu2  ;;  %v215_v7 = vpop.f32.mrf.mxu3 }
  0xaa   :  { %333 = vst.msk [vmem:[%s625_s3 + $0x20] sm:$0xf] %vm324_vm3, %v316_v1  ;;  %v309_v9 = vpack.c.bf16 %v293_v2, %v293_v2  ;;  %v230_v10 = vadd.f32 %v205_v6, %v60_v0  ;;  %v187_v11 = vpop.f32.mrf.mxu0  ;;  %v197_v13 = vpop.f32.mrf.mxu1  ;;  %v234_v15 = vadd.f32 %v215_v7, %v64_v3 }
  0xab   :  { %337 = vst.msk [vmem:[%s625_s3 + $0x30] sm:$0xf] %vm324_vm3, %v320_v4  ;;  %v313_v14 = vpack.c.bf16 %v297_v5, %v297_v5  ;;  %v223_v17 = vadd.f32 %v187_v11, %v53_v8  ;;  %v227_v20 = vadd.f32 %v197_v13, %v57_v12 }
  0xac   :  { %326 = vst.msk [vmem:[%s625_s3 + $0x4] sm:$0xf] %vm324_vm3, %v309_v9  ;;  %v265_v16 = vld [vmem:[#allocation2 + $0x48] sm:$0xff] }
  0xad   :  { %330 = vst.msk [vmem:[%s625_s3 + $0x14] sm:$0xf] %vm324_vm3, %v313_v14  ;;  %v285_v18 = vadd.f32 %v526_v25, %v265_v16  ;;  %v269_v19 = vld [vmem:[#allocation2 + $0x68] sm:$0xff] }
  0xae   :  { %v289_v21 = vadd.f32 %v526_v25, %v269_v19  ;;  %v258_v22 = vld [vmem:[#allocation2 + $0x10] sm:$0xff]  ;;  %247 = vst.msk [vmem:[#allocation2 + $0x50] sm:$0xff] %vm33_vm1, %v230_v10 }
  0xaf   :  { %v301_v23 = vmax.f32 %v285_v18, 0.0  ;;  %v278_v24 = vadd.f32 %v526_v25, %v258_v22  ;;  %v262_v26 = vld [vmem:[#allocation2 + $0x30] sm:$0xff]  ;;  %251 = vst.msk [vmem:[#allocation2 + $0x70] sm:$0xff] %vm33_vm1, %v234_v15 }
  0xb0   :  { %v305_v27 = vmax.f32 %v289_v21, 0.0  ;;  %v282_v28 = vadd.f32 %v526_v25, %v262_v26  ;;  %240 = vst.msk [vmem:[#allocation2 + $0x18] sm:$0xff] %vm33_vm1, %v223_v17 }
  0xb1   :  { %v317_v30 = vpack.c.bf16 %v301_v23, %v301_v23  ;;  %v294_v31 = vmax.f32 %v278_v24, 0.0  ;;  %244 = vst.msk [vmem:[#allocation2 + $0x38] sm:$0xff] %vm33_vm1, %v227_v20  ;;  %v207_v32 = vpop.f32.mrf.mxu2  ;;  %v217_v34 = vpop.f32.mrf.mxu3 }
  0xb2   :  { %v321_v35 = vpack.c.bf16 %v305_v27, %v305_v27  ;;  %v298_v36 = vmax.f32 %v282_v28, 0.0  ;;  %v231_v38 = vadd.f32 %v207_v32, %v61_v29  ;;  %v235_v40 = vadd.f32 %v217_v34, %v65_v33 }
  0xb3   :  { %334 = vst.msk [vmem:[%s625_s3 + $0x24] sm:$0xf] %vm324_vm3, %v317_v30  ;;  %v310_v37 = vpack.c.bf16 %v294_v31, %v294_v31 }
  0xb4   :  { %338 = vst.msk [vmem:[%s625_s3 + $0x34] sm:$0xf] %vm324_vm3, %v321_v35  ;;  %v314_v39 = vpack.c.bf16 %v298_v36, %v298_v36 }
  0xb5   :  { %327 = vst.msk [vmem:[%s625_s3 + $0x8] sm:$0xf] %vm324_vm3, %v310_v37  ;;  %v266_v41 = vld [vmem:[#allocation2 + $0x50] sm:$0xff] }
  0xb6   :  { %331 = vst.msk [vmem:[%s625_s3 + $0x18] sm:$0xf] %vm324_vm3, %v314_v39  ;;  %v286_v42 = vadd.f32 %v526_v25, %v266_v41  ;;  %v270_v43 = vld [vmem:[#allocation2 + $0x70] sm:$0xff] }
  0xb7   :  { %v290_v44 = vadd.f32 %v526_v25, %v270_v43  ;;  %v259_v45 = vld [vmem:[#allocation2 + $0x18] sm:$0xff]  ;;  %248 = vst.msk [vmem:[#allocation2 + $0x58] sm:$0xff] %vm33_vm1, %v231_v38 }
  0xb8   :  { %v302_v46 = vmax.f32 %v286_v42, 0.0  ;;  %v279_v47 = vadd.f32 %v526_v25, %v259_v45  ;;  %v263_v48 = vld [vmem:[#allocation2 + $0x38] sm:$0xff]  ;;  %252 = vst.msk [vmem:[#allocation2 + $0x78] sm:$0xff] %vm33_vm1, %v235_v40 }
  0xb9   :  { %v306_v49 = vmax.f32 %v290_v44, 0.0  ;;  %v283_v50 = vadd.f32 %v526_v25, %v263_v48 }
  0xba   :  { %v318_v51 = vpack.c.bf16 %v302_v46, %v302_v46  ;;  %v295_v52 = vmax.f32 %v279_v47, 0.0 }
  0xbb   :  { %v322_v53 = vpack.c.bf16 %v306_v49, %v306_v49  ;;  %v299_v54 = vmax.f32 %v283_v50, 0.0 }
  0xbc   :  { %335 = vst.msk [vmem:[%s625_s3 + $0x28] sm:$0xf] %vm324_vm3, %v318_v51  ;;  %v311_v55 = vpack.c.bf16 %v295_v52, %v295_v52 }
  0xbd   :  { %339 = vst.msk [vmem:[%s625_s3 + $0x38] sm:$0xf] %vm324_vm3, %v322_v53  ;;  %v315_v56 = vpack.c.bf16 %v299_v54, %v299_v54 }
  0xbe   :  { %328 = vst.msk [vmem:[%s625_s3 + $0xc] sm:$0xf] %vm324_vm3, %v311_v55  ;;  %v267_v57 = vld [vmem:[#allocation2 + $0x58] sm:$0xff] }
  0xbf   :  { %332 = vst.msk [vmem:[%s625_s3 + $0x1c] sm:$0xf] %vm324_vm3, %v315_v56  ;;  %v287_v58 = vadd.f32 %v526_v25, %v267_v57  ;;  %v271_v59 = vld [vmem:[#allocation2 + $0x78] sm:$0xff] }
  0xc0   :  { %v291_v60 = vadd.f32 %v526_v25, %v271_v59 }
  0xc1   :  { %v303_v61 = vmax.f32 %v287_v58, 0.0 }
  0xc2   :  { %v307_v62 = vmax.f32 %v291_v60, 0.0 }
  0xc3   :  { %v319_v63 = vpack.c.bf16 %v303_v61, %v303_v61 }
  0xc4   :  { %v323_v0 = vpack.c.bf16 %v307_v62, %v307_v62 }
  0xc5   :  { %336 = vst.msk [vmem:[%s625_s3 + $0x2c] sm:$0xf] %vm324_vm3, %v319_v63 }
  0xc6   :  { %340 = vst.msk [vmem:[%s625_s3 + $0x3c] sm:$0xf] %vm324_vm3, %v323_v0 }
  0xc7   :  { %345 = vsyncpa [#allocation4], 1 }

// kernel: gaussian_feature_encoder.6
= control target key start
LH: loop header
LB: loop body
LE: loop exit
PB: predicated region body
PF: predicated region fallthrough
CT: control target
= control target key end

     0   :  { %8 = vsyncpa [#allocation4], 0  ;;  %s808_s15 = smov [#allocation3]   ;;  %s1006_s0 = inlined_call_operand.vmem [shape: bf16[32,576], index: 0, kind: input, shape index: {}]   ;;  %s1007_s1 = inlined_call_operand.vmem [shape: bf16[576,128], index: 1, kind: input, shape index: {}]   ;;  %s1008_s2 = inlined_call_operand.hbm [shape: f32[1,128], index: 2, kind: input, shape index: {}]   ;;  %s1009_s3 = inlined_call_operand.vmem [shape: bf16[32,128], index: 3, kind: output, shape index: {}]  }
   0x1   :  { %s18_s14 = sshll.u32 %s1008_s2, 4  ;;  %s20_s16 = sshll.u32 %s808_s15, 4  ;;  %s19_s14 = int_to_ptr.hbm [resolvable:$true] %s18_s14  ;;  %s21_s16 = int_to_ptr.vmem [resolvable:$true] %s20_s16 }
   0x2   :  { %23 = dma.hbm_to_vmem [thread:$0]  %s19_s14, 16, %s21_s16, [#allocation4]  }
   0x3   :  { %806 = dma.done.wait [#allocation4], 16  }
   0x4   :  { %807 = vsyncadd [#allocation4], 4294967280  ;;  %v736_v0 = vld [vmem:[%s1007_s1 + $0x38] sm:$0xff]  ;;  %v735_v4 = vld [vmem:[%s1007_s1 + $0x30] sm:$0xff]  ;;  %vm391_vm0 = vcmask 523264  }
   0x5   :  { %v744_v1 = vld [vmem:[%s1007_s1 + $0x78] sm:$0xff]  ;;  %398 = vmatpush.bf16.msra.mxu0 %v736_v0  ;;  %v743_v5 = vld [vmem:[%s1007_s1 + $0x70] sm:$0xff]  ;;  %v734_v8 = vld [vmem:[%s1007_s1 + $0x28] sm:$0xff] }
   0x6   :  { %v752_v2 = vld [vmem:[%s1007_s1 + $0xb8] sm:$0xff]  ;;  %417 = vmatpush.bf16.msra.mxu1 %v744_v1  ;;  %v751_v6 = vld [vmem:[%s1007_s1 + $0xb0] sm:$0xff]  ;;  %v742_v9 = vld [vmem:[%s1007_s1 + $0x68] sm:$0xff] }
   0x7   :  { %v760_v3 = vld [vmem:[%s1007_s1 + $0xf8] sm:$0xff]  ;;  %436 = vmatpush.bf16.msra.mxu2 %v752_v2  ;;  %v759_v7 = vld [vmem:[%s1007_s1 + $0xf0] sm:$0xff]  ;;  %v750_v10 = vld [vmem:[%s1007_s1 + $0xa8] sm:$0xff] }
   0x8   :  { %455 = vmatpush.bf16.msra.mxu3 %v760_v3  ;;  %v758_v11 = vld [vmem:[%s1007_s1 + $0xe8] sm:$0xff]  ;;  %v733_v12 = vld [vmem:[%s1007_s1 + $0x20] sm:$0xff]  ;;  %v732_v16 = vld [vmem:[%s1007_s1 + $0x18] sm:$0xff] }
   0x9   :  { %399 = vmatpush.bf16.msra.mxu0 %v735_v4  ;;  %v741_v13 = vld [vmem:[%s1007_s1 + $0x60] sm:$0xff]  ;;  %v740_v17 = vld [vmem:[%s1007_s1 + $0x58] sm:$0xff]  ;;  %v731_v20 = vld [vmem:[%s1007_s1 + $0x10] sm:$0xff] }
   0xa   :  { %418 = vmatpush.bf16.msra.mxu1 %v743_v5  ;;  %v749_v14 = vld [vmem:[%s1007_s1 + $0xa0] sm:$0xff]  ;;  %v748_v18 = vld [vmem:[%s1007_s1 + $0x98] sm:$0xff]  ;;  %v739_v21 = vld [vmem:[%s1007_s1 + $0x50] sm:$0xff] }
   0xb   :  { %437 = vmatpush.bf16.msra.mxu2 %v751_v6  ;;  %v757_v15 = vld [vmem:[%s1007_s1 + $0xe0] sm:$0xff]  ;;  %v756_v19 = vld [vmem:[%s1007_s1 + $0xd8] sm:$0xff]  ;;  %v747_v22 = vld [vmem:[%s1007_s1 + $0x90] sm:$0xff] }
   0xc   :  { %456 = vmatpush.bf16.msra.mxu3 %v759_v7  ;;  %v755_v23 = vld [vmem:[%s1007_s1 + $0xd0] sm:$0xff]  ;;  %v730_v24 = vld [vmem:[%s1007_s1 + $0x8] sm:$0xff]  ;;  %v729_v28 = vld [vmem:[%s1007_s1] sm:$0xff] }
   0xd   :  { %400 = vmatpush.bf16.msra.mxu0 %v734_v8  ;;  %v738_v25 = vld [vmem:[%s1007_s1 + $0x48] sm:$0xff]  ;;  %v737_v29 = vld [vmem:[%s1007_s1 + $0x40] sm:$0xff]  ;;  %v721_v33 = vld [vmem:[%s1006_s0 + $0x10] sm:$0xf0] }
   0xe   :  { %419 = vmatpush.bf16.msra.mxu1 %v742_v9  ;;  %v746_v26 = vld [vmem:[%s1007_s1 + $0x88] sm:$0xff]  ;;  %v745_v30 = vld [vmem:[%s1007_s1 + $0x80] sm:$0xff]  ;;  %v537_v35 = vld [vmem:[%s1006_s0 + $0x14] sm:$0xf0] }
   0xf   :  { %438 = vmatpush.bf16.msra.mxu2 %v750_v10  ;;  %v754_v27 = vld [vmem:[%s1007_s1 + $0xc8] sm:$0xff]  ;;  %v753_v31 = vld [vmem:[%s1007_s1 + $0xc0] sm:$0xff]  ;;  %v722_v37 = vld [vmem:[%s1006_s0 + $0x18] sm:$0xf0] }
  0x10   :  { %457 = vmatpush.bf16.msra.mxu3 %v758_v11  ;;  %v535_v32 = vld [vmem:[%s1006_s0] sm:$0xf]  ;;  %v719_v34 = vld [vmem:[%s1006_s0 + $0x4] sm:$0xf]  ;;  %v543_v36 = vld [vmem:[%s1006_s0 + $0x8] sm:$0xf] }
  0x11   :  { %401 = vmatpush.bf16.msra.mxu0 %v733_v12  ;;  %v720_v38 = vld [vmem:[%s1006_s0 + $0xc] sm:$0xf]  ;;  %v545_v39 = vld [vmem:[%s1006_s0 + $0x1c] sm:$0xf0]  ;;  %v764_v40 = vld [vmem:[%s1007_s1 + $0x118] sm:$0xff]  ;;  %v536_v41 = vor.u32 %v721_v33, %v535_v32  ;;  %v540_v42 = vor.u32 %v719_v34, %v537_v35  ;;  %v544_v43 = vor.u32 %v722_v37, %v543_v36 }
  0x12   :  { %420 = vmatpush.bf16.msra.mxu1 %v741_v13  ;;  %v548_v44 = vor.u32 %v720_v38, %v545_v39  ;;  %v763_v45 = vld [vmem:[%s1007_s1 + $0x110] sm:$0xff]  ;;  %v762_v46 = vld [vmem:[%s1007_s1 + $0x108] sm:$0xff]  ;;  %v761_v47 = vld [vmem:[%s1007_s1 + $0x100] sm:$0xff] }
  0x13   :  { %439 = vmatpush.bf16.msra.mxu2 %v749_v14  ;;  %v555_v48 = vld [vmem:[%s1006_s0 + $0x28] sm:$0xf]  ;;  %v726_v49 = vld [vmem:[%s1006_s0 + $0x38] sm:$0xf0]  ;;  %v724_v50 = vld [vmem:[%s1006_s0 + $0x2c] sm:$0xf] }
  0x14   :  { %458 = vmatpush.bf16.msra.mxu3 %v757_v15  ;;  %v557_v51 = vld [vmem:[%s1006_s0 + $0x3c] sm:$0xf0]  ;;  %v563_v52 = vld [vmem:[%s1006_s0 + $0x30] sm:$0xf]  ;;  %v727_v53 = vld [vmem:[%s1006_s0 + $0x40] sm:$0xf0]  ;;  %v556_v56 = vor.u32 %v726_v49, %v555_v48 }
  0x15   :  { %402 = vmatpush.bf16.msra.mxu0 %v732_v16  ;;  %v725_v54 = vld [vmem:[%s1006_s0 + $0x34] sm:$0xf]  ;;  %v565_v55 = vld [vmem:[%s1006_s0 + $0x44] sm:$0xf0]  ;;  %v560_v57 = vor.u32 %v724_v50, %v557_v51  ;;  %v564_v58 = vor.u32 %v727_v53, %v563_v52  ;;  %v551_v60 = vld [vmem:[%s1006_s0 + $0x10] sm:$0xf] }
  0x16   :  { %421 = vmatpush.bf16.msra.mxu1 %v740_v17  ;;  %v568_v59 = vor.u32 %v725_v54, %v565_v55  ;;  %v723_v61 = vld [vmem:[%s1006_s0 + $0x20] sm:$0xf0]  ;;  %v571_v62 = vld [vmem:[%s1006_s0 + $0x38] sm:$0xf]  ;;  %v728_v63 = vld [vmem:[%s1006_s0 + $0x48] sm:$0xf0] }
  0x17   :  { %440 = vmatpush.bf16.msra.mxu2 %v748_v18  ;;  %v552_v0 = vor.u32 %v723_v61, %v551_v60  ;;  %v572_v1 = vor.u32 %v728_v63, %v571_v62 }
  0x18   :  { %459 = vmatpush.bf16.msra.mxu3 %v756_v19 }
  0x19   :  { %403 = vmatpush.bf16.msra.mxu0 %v731_v20 }
  0x1a   :  { %422 = vmatpush.bf16.msra.mxu1 %v739_v21 }
  0x1b   :  { %441 = vmatpush.bf16.msra.mxu2 %v747_v22 }
  0x1c   :  { %460 = vmatpush.bf16.msra.mxu3 %v755_v23 }
  0x1d   :  { %404 = vmatpush.bf16.msra.mxu0 %v730_v24 }
  0x1e   :  { %423 = vmatpush.bf16.msra.mxu1 %v738_v25 }
  0x1f   :  { %442 = vmatpush.bf16.msra.mxu2 %v746_v26 }
  0x20   :  { %461 = vmatpush.bf16.msra.mxu3 %v754_v27 }
  0x21   :  { %405 = vmatpush.bf16.msra.mxu0 %v729_v28 }
  0x22   :  { %424 = vmatpush.bf16.msra.mxu1 %v737_v29 }
  0x23   :  { %443 = vmatpush.bf16.msra.mxu2 %v745_v30  ;;  %v781_v30 = vld [vmem:[#allocation3] ss:$0 sm:$0xff] }
  0x24   :  { %462 = vmatpush.bf16.msra.mxu3 %v753_v31  ;;  %406 = vmatmul.bf16.vlgmr.msra.gmra.mxu0 %v536_v41 }
  0x25   :  { %478 = vmatpush.bf16.msrb.mxu0 %v764_v40  ;;  %425 = vmatmul.bf16.vlgmr.msra.gmra.mxu1 %v540_v42 }
  0x26   :  { %776 = vmatpush.bf16.msrb.mxu1 %v764_v40  ;;  %444 = vmatmul.bf16.vlgmr.msra.gmra.mxu2 %v544_v43 }
  0x27   :  { %463 = vmatmul.bf16.vlgmr.msra.gmra.mxu3 %v548_v44 }
  0x29   :  { %479 = vmatpush.bf16.msrb.mxu0 %v763_v45 }
  0x2a   :  { %777 = vmatpush.bf16.msrb.mxu1 %v763_v45 }
  0x2d   :  { %480 = vmatpush.bf16.msrb.mxu0 %v762_v46 }
  0x2e   :  { %778 = vmatpush.bf16.msrb.mxu1 %v762_v46 }
  0x31   :  { %481 = vmatpush.bf16.msrb.mxu0 %v761_v47 }
  0x32   :  { %779 = vmatpush.bf16.msrb.mxu1 %v761_v47 }
  0x34   :  { %411 = vmatmul.bf16.gmra.mxu0 %v556_v56 }
  0x35   :  { %430 = vmatmul.bf16.gmra.mxu1 %v560_v57 }
  0x36   :  { %449 = vmatmul.bf16.gmra.mxu2 %v564_v58 }
  0x37   :  { %468 = vmatmul.bf16.gmra.mxu3 %v568_v59 }
  0x44   :  { %717 = vmatmul.msk.bf16.vlgmr.msrb.gmra.mxu0 %vm391_vm0, %v552_v0 }
  0x45   :  { %718 = vmatmul.msk.bf16.vlgmr.msrb.gmra.mxu1 %vm391_vm0, %v572_v1 }
  0xa1   :  { %v407_v2 = vpop.f32.mrf.mxu0 }
  0xa2   :  { %v426_v3 = vpop.f32.mrf.mxu1 }
  0xa3   :  { %v427_v16 = vadd.f32 %v426_v3, %v407_v2 }
  0xa9   :  { %v445_v4 = vpop.f32.mrf.mxu2  ;;  %v409_v6 = vpop.f32.mrf.mxu0 }
  0xaa   :  { %v464_v5 = vpop.f32.mrf.mxu3  ;;  %v428_v7 = vpop.f32.mrf.mxu1  ;;  %v446_v18 = vadd.f32 %v445_v4, %v427_v16 }
  0xab   :  { %v429_v23 = vadd.f32 %v428_v7, %v409_v6 }
  0xac   :  { %v465_v25 = vadd.f32 %v464_v5, %v446_v18 }
  0xb1   :  { %v447_v8 = vpop.f32.mrf.mxu2  ;;  %v412_v9 = vpop.f32.mrf.mxu0 }
  0xb2   :  { %v431_v10 = vpop.f32.mrf.mxu1  ;;  %v466_v11 = vpop.f32.mrf.mxu3  ;;  %v448_v26 = vadd.f32 %v447_v8, %v429_v23 }
  0xb3   :  { %v432_v17 = vadd.f32 %v431_v10, %v412_v9 }
  0xb4   :  { %v467_v33 = vadd.f32 %v466_v11, %v448_v26 }
  0xb9   :  { %v450_v12 = vpop.f32.mrf.mxu2  ;;  %v414_v13 = vpop.f32.mrf.mxu0 }
  0xba   :  { %v433_v14 = vpop.f32.mrf.mxu1  ;;  %v469_v15 = vpop.f32.mrf.mxu3  ;;  %v451_v19 = vadd.f32 %v450_v12, %v432_v17 }
  0xbb   :  { %v434_v24 = vadd.f32 %v433_v14, %v414_v13 }
  0xbc   :  { %v470_v27 = vadd.f32 %v469_v15, %v451_v19 }
  0xc1   :  { %v452_v20 = vpop.f32.mrf.mxu2  ;;  %v483_v21 = vpop.f32.mrf.mxu0 }
  0xc2   :  { %v488_v22 = vpop.f32.mrf.mxu1  ;;  %v453_v28 = vadd.f32 %v452_v20, %v434_v24  ;;  %v484_v29 = vadd.f32 %v483_v21, %v465_v25  ;;  %v471_v32 = vpop.f32.mrf.mxu3 }
  0xc3   :  { %v489_v31 = vadd.f32 %v488_v22, %v470_v27 }
  0xc4   :  { %v472_v34 = vadd.f32 %v471_v32, %v453_v28  ;;  %v512_v37 = vadd.f32 %v781_v30, %v484_v29 }
  0xc5   :  { %v514_v38 = vadd.f32 %v781_v30, %v489_v31 }
  0xc6   :  { %v516_v43 = vmax.f32 %v512_v37, 0.0 }
  0xc7   :  { %v518_v44 = vmax.f32 %v514_v38, 0.0 }
  0xc9   :  { %v485_v35 = vpop.f32.mrf.mxu0 }
  0xca   :  { %v490_v36 = vpop.f32.mrf.mxu1  ;;  %v486_v39 = vadd.f32 %v485_v35, %v467_v33 }
  0xcb   :  { %v491_v40 = vadd.f32 %v490_v36, %v472_v34 }
  0xcc   :  { %v513_v41 = vadd.f32 %v781_v30, %v486_v39 }
  0xcd   :  { %v515_v42 = vadd.f32 %v781_v30, %v491_v40 }
  0xce   :  { %v517_v45 = vmax.f32 %v513_v41, 0.0 }
  0xcf   :  { %v519_v46 = vmax.f32 %v515_v42, 0.0 }
  0xd0   :  { %v768_v47 = vpack.c.bf16 %v517_v45, %v516_v43 }
  0xd1   :  { %v773_v48 = vpack.c.bf16 %v519_v46, %v518_v44 }
  0xd2   :  { %769 = vst [vmem:[%s1009_s3] sm:$0xff] %v768_v47  }
  0xd3   :  { %775 = vst [vmem:[%s1009_s3 + $0x8] sm:$0xff] %v773_v48  }
  0xd4   :  { %532 = vsyncpa [#allocation4], 1 }

// kernel: gaussian_feature_encoder.7
= control target key start
LH: loop header
LB: loop body
LE: loop exit
PB: predicated region body
PF: predicated region fallthrough
CT: control target
= control target key end

     0   :  { %s2843_s1 = inlined_call_operand.vmem [shape: bf16[1152,256], index: 1, kind: input, shape index: {}]   ;;  %s2844_s0 = inlined_call_operand.vmem [shape: bf16[8,1152], index: 0, kind: input, shape index: {}]   ;;  %s2845_s2 = inlined_call_operand.vmem [shape: f32[1,256], index: 2, kind: input, shape index: {}]   ;;  %s2846_s3 = inlined_call_operand.vmem [shape: bf16[8,256], index: 3, kind: output, shape index: {}]  }
   0x1   :  { %v1240_v0 = vld [vmem:[%s2843_s1 + $0x70] sm:$0xf]  ;;  %v1773_v1 = vld [vmem:[%s2843_s1 + $0x74] sm:$0xf0]  ;;  %v1232_v11 = vld [vmem:[%s2843_s1 + $0x60] sm:$0xf] }
   0x2   :  { %v1304_v2 = vld [vmem:[%s2843_s1 + $0xf0] sm:$0xf]  ;;  %v1241_v3 = vor.u32 %v1773_v1, %v1240_v0  ;;  %v1789_v4 = vld [vmem:[%s2843_s1 + $0xf4] sm:$0xf0]  ;;  %v1771_v13 = vld [vmem:[%s2843_s1 + $0x64] sm:$0xf0] }
   0x3   :  { %v1368_v5 = vld [vmem:[%s2843_s1 + $0x170] sm:$0xf]  ;;  %v1805_v6 = vld [vmem:[%s2843_s1 + $0x174] sm:$0xf0]  ;;  %v1305_v7 = vor.u32 %v1789_v4, %v1304_v2  ;;  %v1296_v14 = vld [vmem:[%s2843_s1 + $0xe0] sm:$0xf]  ;;  %v1233_v16 = vor.u32 %v1771_v13, %v1232_v11 }
   0x4   :  { %v1369_v8 = vor.u32 %v1805_v6, %v1368_v5  ;;  %v1432_v9 = vld [vmem:[%s2843_s1 + $0x1f0] sm:$0xf]  ;;  %v1821_v10 = vld [vmem:[%s2843_s1 + $0x1f4] sm:$0xf0]  ;;  %923 = vmatpush.bf16.msra.mxu0 %v1241_v3  ;;  %v1787_v15 = vld [vmem:[%s2843_s1 + $0xe4] sm:$0xf0] }
   0x5   :  { %v1433_v12 = vor.u32 %v1821_v10, %v1432_v9  ;;  %936 = vmatpush.bf16.msra.mxu1 %v1305_v7  ;;  %v1297_v17 = vor.u32 %v1787_v15, %v1296_v14  ;;  %v1360_v18 = vld [vmem:[%s2843_s1 + $0x160] sm:$0xf]  ;;  %v1803_v19 = vld [vmem:[%s2843_s1 + $0x164] sm:$0xf0]  ;;  %v1224_v23 = vld [vmem:[%s2843_s1 + $0x50] sm:$0xf] }
   0x6   :  { %949 = vmatpush.bf16.msra.mxu2 %v1369_v8  ;;  %v1424_v20 = vld [vmem:[%s2843_s1 + $0x1e0] sm:$0xf]  ;;  %v1361_v21 = vor.u32 %v1803_v19, %v1360_v18  ;;  %v1819_v22 = vld [vmem:[%s2843_s1 + $0x1e4] sm:$0xf0]  ;;  %v1769_v24 = vld [vmem:[%s2843_s1 + $0x54] sm:$0xf0] }
   0x7   :  { %962 = vmatpush.bf16.msra.mxu3 %v1433_v12  ;;  %v1425_v25 = vor.u32 %v1819_v22, %v1424_v20  ;;  %v1288_v26 = vld [vmem:[%s2843_s1 + $0xd0] sm:$0xf]  ;;  %v1785_v27 = vld [vmem:[%s2843_s1 + $0xd4] sm:$0xf0]  ;;  %v1225_v29 = vor.u32 %v1769_v24, %v1224_v23  ;;  %v1216_v35 = vld [vmem:[%s2843_s1 + $0x40] sm:$0xf] }
   0x8   :  { %v1352_v28 = vld [vmem:[%s2843_s1 + $0x150] sm:$0xf]  ;;  %924 = vmatpush.bf16.msra.mxu0 %v1233_v16  ;;  %v1801_v30 = vld [vmem:[%s2843_s1 + $0x154] sm:$0xf0]  ;;  %v1289_v33 = vor.u32 %v1785_v27, %v1288_v26  ;;  %v1767_v36 = vld [vmem:[%s2843_s1 + $0x44] sm:$0xf0] }
   0x9   :  { %v1416_v31 = vld [vmem:[%s2843_s1 + $0x1d0] sm:$0xf]  ;;  %v1817_v32 = vld [vmem:[%s2843_s1 + $0x1d4] sm:$0xf0]  ;;  %937 = vmatpush.bf16.msra.mxu1 %v1297_v17  ;;  %v1353_v34 = vor.u32 %v1801_v30, %v1352_v28  ;;  %v1280_v37 = vld [vmem:[%s2843_s1 + $0xc0] sm:$0xf]  ;;  %v1217_v44 = vor.u32 %v1767_v36, %v1216_v35 }
   0xa   :  { %950 = vmatpush.bf16.msra.mxu2 %v1361_v21  ;;  %v1417_v38 = vor.u32 %v1817_v32, %v1416_v31  ;;  %v1783_v39 = vld [vmem:[%s2843_s1 + $0xc4] sm:$0xf0]  ;;  %v1344_v40 = vld [vmem:[%s2843_s1 + $0x140] sm:$0xf]  ;;  %v1208_v47 = vld [vmem:[%s2843_s1 + $0x30] sm:$0xf] }
   0xb   :  { %963 = vmatpush.bf16.msra.mxu3 %v1425_v25  ;;  %v1799_v41 = vld [vmem:[%s2843_s1 + $0x144] sm:$0xf0]  ;;  %v1408_v42 = vld [vmem:[%s2843_s1 + $0x1c0] sm:$0xf]  ;;  %v1281_v45 = vor.u32 %v1783_v39, %v1280_v37  ;;  %v1765_v48 = vld [vmem:[%s2843_s1 + $0x34] sm:$0xf0] }
   0xc   :  { %v1815_v43 = vld [vmem:[%s2843_s1 + $0x1c4] sm:$0xf0]  ;;  %925 = vmatpush.bf16.msra.mxu0 %v1225_v29  ;;  %v1345_v46 = vor.u32 %v1799_v41, %v1344_v40  ;;  %v1272_v49 = vld [vmem:[%s2843_s1 + $0xb0] sm:$0xf]  ;;  %v1781_v51 = vld [vmem:[%s2843_s1 + $0xb4] sm:$0xf0]  ;;  %v1209_v56 = vor.u32 %v1765_v48, %v1208_v47 }
   0xd   :  { %938 = vmatpush.bf16.msra.mxu1 %v1289_v33  ;;  %v1409_v50 = vor.u32 %v1815_v43, %v1408_v42  ;;  %v1336_v52 = vld [vmem:[%s2843_s1 + $0x130] sm:$0xf]  ;;  %v1797_v53 = vld [vmem:[%s2843_s1 + $0x134] sm:$0xf0]  ;;  %v1273_v57 = vor.u32 %v1781_v51, %v1272_v49  ;;  %v1200_v59 = vld [vmem:[%s2843_s1 + $0x20] sm:$0xf] }
   0xe   :  { %951 = vmatpush.bf16.msra.mxu2 %v1353_v34  ;;  %v1400_v54 = vld [vmem:[%s2843_s1 + $0x1b0] sm:$0xf]  ;;  %v1813_v55 = vld [vmem:[%s2843_s1 + $0x1b4] sm:$0xf0]  ;;  %v1337_v58 = vor.u32 %v1797_v53, %v1336_v52  ;;  %v1763_v60 = vld [vmem:[%s2843_s1 + $0x24] sm:$0xf0] }
   0xf   :  { %964 = vmatpush.bf16.msra.mxu3 %v1417_v38  ;;  %v1264_v61 = vld [vmem:[%s2843_s1 + $0xa0] sm:$0xf]  ;;  %v1401_v62 = vor.u32 %v1813_v55, %v1400_v54  ;;  %v1779_v63 = vld [vmem:[%s2843_s1 + $0xa4] sm:$0xf0]  ;;  %v1201_v4 = vor.u32 %v1763_v60, %v1200_v59  ;;  %v1192_v7 = vld [vmem:[%s2843_s1 + $0x10] sm:$0xf] }
  0x10   :  { %926 = vmatpush.bf16.msra.mxu0 %v1217_v44  ;;  %v1328_v0 = vld [vmem:[%s2843_s1 + $0x120] sm:$0xf]  ;;  %v1795_v1 = vld [vmem:[%s2843_s1 + $0x124] sm:$0xf0]  ;;  %v1265_v5 = vor.u32 %v1779_v63, %v1264_v61  ;;  %v1761_v8 = vld [vmem:[%s2843_s1 + $0x14] sm:$0xf0] }
  0x11   :  { %939 = vmatpush.bf16.msra.mxu1 %v1281_v45  ;;  %v1392_v2 = vld [vmem:[%s2843_s1 + $0x1a0] sm:$0xf]  ;;  %v1811_v3 = vld [vmem:[%s2843_s1 + $0x1a4] sm:$0xf0]  ;;  %v1329_v6 = vor.u32 %v1795_v1, %v1328_v0  ;;  %v1256_v9 = vld [vmem:[%s2843_s1 + $0x90] sm:$0xf]  ;;  %v1193_v16 = vor.u32 %v1761_v8, %v1192_v7 }
  0x12   :  { %952 = vmatpush.bf16.msra.mxu2 %v1345_v46  ;;  %v1393_v10 = vor.u32 %v1811_v3, %v1392_v2  ;;  %v1777_v11 = vld [vmem:[%s2843_s1 + $0x94] sm:$0xf0]  ;;  %v1320_v12 = vld [vmem:[%s2843_s1 + $0x110] sm:$0xf]  ;;  %v1184_v17 = vld [vmem:[%s2843_s1] sm:$0xf] }
  0x13   :  { %965 = vmatpush.bf16.msra.mxu3 %v1409_v50  ;;  %v1793_v13 = vld [vmem:[%s2843_s1 + $0x114] sm:$0xf0]  ;;  %v1384_v14 = vld [vmem:[%s2843_s1 + $0x190] sm:$0xf]  ;;  %v1759_v18 = vld [vmem:[%s2843_s1 + $0x4] sm:$0xf0]  ;;  %v1257_v19 = vor.u32 %v1777_v11, %v1256_v9 }
  0x14   :  { %927 = vmatpush.bf16.msra.mxu0 %v1209_v56  ;;  %v1809_v15 = vld [vmem:[%s2843_s1 + $0x194] sm:$0xf0]  ;;  %v1321_v20 = vor.u32 %v1793_v13, %v1320_v12  ;;  %v1248_v21 = vld [vmem:[%s2843_s1 + $0x80] sm:$0xf]  ;;  %v1775_v22 = vld [vmem:[%s2843_s1 + $0x84] sm:$0xf0]  ;;  %v1185_v31 = vor.u32 %v1759_v18, %v1184_v17 }
  0x15   :  { %940 = vmatpush.bf16.msra.mxu1 %v1273_v57  ;;  %v1312_v23 = vld [vmem:[%s2843_s1 + $0x100] sm:$0xf]  ;;  %v1385_v24 = vor.u32 %v1809_v15, %v1384_v14  ;;  %v1791_v25 = vld [vmem:[%s2843_s1 + $0x104] sm:$0xf0]  ;;  %v1496_v26 = vld [vmem:[%s2843_s1 + $0x270] sm:$0xf]  ;;  %v1249_v35 = vor.u32 %v1775_v22, %v1248_v21 }
  0x16   :  { %953 = vmatpush.bf16.msra.mxu2 %v1337_v58  ;;  %v1837_v27 = vld [vmem:[%s2843_s1 + $0x274] sm:$0xf0]  ;;  %v1560_v28 = vld [vmem:[%s2843_s1 + $0x2f0] sm:$0xf]  ;;  %v1376_v33 = vld [vmem:[%s2843_s1 + $0x180] sm:$0xf]  ;;  %v1313_v36 = vor.u32 %v1791_v25, %v1312_v23 }
  0x17   :  { %966 = vmatpush.bf16.msra.mxu3 %v1401_v62  ;;  %v1853_v29 = vld [vmem:[%s2843_s1 + $0x2f4] sm:$0xf0]  ;;  %v1624_v30 = vld [vmem:[%s2843_s1 + $0x370] sm:$0xf]  ;;  %v1807_v34 = vld [vmem:[%s2843_s1 + $0x184] sm:$0xf0]  ;;  %v1497_v39 = vor.u32 %v1837_v27, %v1496_v26 }
  0x18   :  { %928 = vmatpush.bf16.msra.mxu0 %v1201_v4  ;;  %v1869_v32 = vld [vmem:[%s2843_s1 + $0x374] sm:$0xf0]  ;;  %v1688_v37 = vld [vmem:[%s2843_s1 + $0x3f0] sm:$0xf]  ;;  %v1561_v40 = vor.u32 %v1853_v29, %v1560_v28  ;;  %v1488_v41 = vld [vmem:[%s2843_s1 + $0x260] sm:$0xf]  ;;  %v1377_v43 = vor.u32 %v1807_v34, %v1376_v33 }
  0x19   :  { %941 = vmatpush.bf16.msra.mxu1 %v1265_v5  ;;  %v1885_v38 = vld [vmem:[%s2843_s1 + $0x3f4] sm:$0xf0]  ;;  %v1625_v42 = vor.u32 %v1869_v32, %v1624_v30  ;;  %v1835_v44 = vld [vmem:[%s2843_s1 + $0x264] sm:$0xf0]  ;;  %v1552_v45 = vld [vmem:[%s2843_s1 + $0x2e0] sm:$0xf] }
  0x1a   :  { %954 = vmatpush.bf16.msra.mxu2 %v1329_v6  ;;  %v1851_v46 = vld [vmem:[%s2843_s1 + $0x2e4] sm:$0xf0]  ;;  %v1689_v47 = vor.u32 %v1885_v38, %v1688_v37  ;;  %v1616_v48 = vld [vmem:[%s2843_s1 + $0x360] sm:$0xf]  ;;  %v1489_v52 = vor.u32 %v1835_v44, %v1488_v41  ;;  %v1480_v54 = vld [vmem:[%s2843_s1 + $0x250] sm:$0xf] }
  0x1b   :  { %967 = vmatpush.bf16.msra.mxu3 %v1393_v10  ;;  %v1867_v49 = vld [vmem:[%s2843_s1 + $0x364] sm:$0xf0]  ;;  %v1680_v50 = vld [vmem:[%s2843_s1 + $0x3e0] sm:$0xf]  ;;  %v1553_v53 = vor.u32 %v1851_v46, %v1552_v45  ;;  %v1833_v55 = vld [vmem:[%s2843_s1 + $0x254] sm:$0xf0] }
  0x1c   :  { %929 = vmatpush.bf16.msra.mxu0 %v1193_v16  ;;  %v1883_v51 = vld [vmem:[%s2843_s1 + $0x3e4] sm:$0xf0]  ;;  %v1617_v57 = vor.u32 %v1867_v49, %v1616_v48  ;;  %v1544_v58 = vld [vmem:[%s2843_s1 + $0x2d0] sm:$0xf]  ;;  %v1849_v59 = vld [vmem:[%s2843_s1 + $0x2d4] sm:$0xf0]  ;;  %v1481_v4 = vor.u32 %v1833_v55, %v1480_v54 }
  0x1d   :  { %942 = vmatpush.bf16.msra.mxu1 %v1257_v19  ;;  %v23_v56 = vld [vmem:[%s2844_s0 + $0x8] sm:$0xff]  ;;  %v22_v61 = vld [vmem:[%s2844_s0] sm:$0xff]  ;;  %v1681_v63 = vor.u32 %v1883_v51, %v1680_v50  ;;  %v1608_v0 = vld [vmem:[%s2843_s1 + $0x350] sm:$0xf]  ;;  %v1545_v9 = vor.u32 %v1849_v59, %v1544_v58 }
  0x1e   :  { %955 = vmatpush.bf16.msra.mxu2 %v1321_v20  ;;  %v178_v60 = vunpack.c.l.b16 %v23_v56  ;;  %v179_v62 = vunpack.c.h.b16 %v23_v56  ;;  %v1865_v1 = vld [vmem:[%s2843_s1 + $0x354] sm:$0xf0]  ;;  %v176_v2 = vunpack.c.l.b16 %v22_v61  ;;  %v177_v3 = vunpack.c.h.b16 %v22_v61  ;;  %v1672_v5 = vld [vmem:[%s2843_s1 + $0x3d0] sm:$0xf]  ;;  %v1472_v10 = vld [vmem:[%s2843_s1 + $0x240] sm:$0xf] }
  0x1f   :  { %968 = vmatpush.bf16.msra.mxu3 %v1385_v24  ;;  %v1881_v6 = vld [vmem:[%s2843_s1 + $0x3d4] sm:$0xf0]  ;;  %v1609_v13 = vor.u32 %v1865_v1, %v1608_v0  ;;  %v1831_v14 = vld [vmem:[%s2843_s1 + $0x244] sm:$0xf0]  ;;  %v1536_v15 = vld [vmem:[%s2843_s1 + $0x2c0] sm:$0xf] }
  0x20   :  { %930 = vmatpush.bf16.msra.mxu0 %v1185_v31  ;;  %v2192_v7 = vpack.c.b16 %v178_v60, %v178_v60  ;;  %v2194_v8 = vpack.c.b16 %v179_v62, %v179_v62  ;;  %v2199_v11 = vpack.c.b16 %v176_v2, %v176_v2  ;;  %v2201_v12 = vpack.c.b16 %v177_v3, %v177_v3  ;;  %v1847_v16 = vld [vmem:[%s2843_s1 + $0x2c4] sm:$0xf0]  ;;  %v1600_v18 = vld [vmem:[%s2843_s1 + $0x340] sm:$0xf]  ;;  %v1464_v24 = vld [vmem:[%s2843_s1 + $0x230] sm:$0xf] }
  0x21   :  { %943 = vmatpush.bf16.msra.mxu1 %v1249_v35  ;;  %v1673_v17 = vor.u32 %v1881_v6, %v1672_v5  ;;  %v1863_v19 = vld [vmem:[%s2843_s1 + $0x344] sm:$0xf0]  ;;  %v1664_v20 = vld [vmem:[%s2843_s1 + $0x3c0] sm:$0xf]  ;;  %v1473_v22 = vor.u32 %v1831_v14, %v1472_v10  ;;  %v1537_v23 = vor.u32 %v1847_v16, %v1536_v15  ;;  %v1829_v26 = vld [vmem:[%s2843_s1 + $0x234] sm:$0xf0] }
  0x22   :  { %956 = vmatpush.bf16.msra.mxu2 %v1313_v36  ;;  %v1879_v21 = vld [vmem:[%s2843_s1 + $0x3c4] sm:$0xf0]  ;;  %v1601_v25 = vor.u32 %v1863_v19, %v1600_v18  ;;  %v1528_v27 = vld [vmem:[%s2843_s1 + $0x2b0] sm:$0xf]  ;;  %v1845_v28 = vld [vmem:[%s2843_s1 + $0x2b4] sm:$0xf0]  ;;  %v1465_v34 = vor.u32 %v1829_v26, %v1464_v24 }
  0x23   :  { %969 = vmatpush.bf16.msra.mxu3 %v1377_v43  ;;  %931 = vmatmul.bf16.vlgmr.msra.gmra.mxu0 %v2199_v11  ;;  %v1665_v29 = vor.u32 %v1879_v21, %v1664_v20  ;;  %v1592_v30 = vld [vmem:[%s2843_s1 + $0x330] sm:$0xf]  ;;  %v1861_v31 = vld [vmem:[%s2843_s1 + $0x334] sm:$0xf0]  ;;  %v1529_v35 = vor.u32 %v1845_v28, %v1528_v27  ;;  %v1456_v36 = vld [vmem:[%s2843_s1 + $0x220] sm:$0xf] }
  0x24   :  { %975 = vmatpush.bf16.msrb.mxu0 %v1497_v39  ;;  %944 = vmatmul.bf16.vlgmr.msra.gmra.mxu1 %v2201_v12  ;;  %v1656_v32 = vld [vmem:[%s2843_s1 + $0x3b0] sm:$0xf]  ;;  %v1877_v33 = vld [vmem:[%s2843_s1 + $0x3b4] sm:$0xf0]  ;;  %v1593_v37 = vor.u32 %v1861_v31, %v1592_v30  ;;  %v1827_v38 = vld [vmem:[%s2843_s1 + $0x224] sm:$0xf0] }
  0x25   :  { %988 = vmatpush.bf16.msrb.mxu1 %v1561_v40  ;;  %957 = vmatmul.bf16.vlgmr.msra.gmra.mxu2 %v2192_v7  ;;  %v1520_v39 = vld [vmem:[%s2843_s1 + $0x2a0] sm:$0xf]  ;;  %v1843_v40 = vld [vmem:[%s2843_s1 + $0x2a4] sm:$0xf0]  ;;  %v1657_v41 = vor.u32 %v1877_v33, %v1656_v32  ;;  %v1457_v46 = vor.u32 %v1827_v38, %v1456_v36  ;;  %v1448_v48 = vld [vmem:[%s2843_s1 + $0x210] sm:$0xf] }
  0x26   :  { %1001 = vmatpush.bf16.msrb.mxu2 %v1625_v42  ;;  %970 = vmatmul.bf16.vlgmr.msra.gmra.mxu3 %v2194_v8  ;;  %v1584_v42 = vld [vmem:[%s2843_s1 + $0x320] sm:$0xf]  ;;  %v1859_v43 = vld [vmem:[%s2843_s1 + $0x324] sm:$0xf0]  ;;  %v1825_v50 = vld [vmem:[%s2843_s1 + $0x214] sm:$0xf0] }
  0x27   :  { %1014 = vmatpush.bf16.msrb.mxu3 %v1689_v47  ;;  %v1648_v44 = vld [vmem:[%s2843_s1 + $0x3a0] sm:$0xf]  ;;  %v1875_v45 = vld [vmem:[%s2843_s1 + $0x3a4] sm:$0xf0]  ;;  %v1521_v47 = vor.u32 %v1843_v40, %v1520_v39  ;;  %v1585_v49 = vor.u32 %v1859_v43, %v1584_v42  ;;  %v1512_v51 = vld [vmem:[%s2843_s1 + $0x290] sm:$0xf]  ;;  %v1449_v60 = vor.u32 %v1825_v50, %v1448_v48 }
  0x28   :  { %976 = vmatpush.bf16.msrb.mxu0 %v1489_v52  ;;  %v1841_v52 = vld [vmem:[%s2843_s1 + $0x294] sm:$0xf0]  ;;  %v1576_v54 = vld [vmem:[%s2843_s1 + $0x310] sm:$0xf]  ;;  %v1440_v58 = vld [vmem:[%s2843_s1 + $0x200] sm:$0xf] }
  0x29   :  { %989 = vmatpush.bf16.msrb.mxu1 %v1553_v53  ;;  %v1649_v53 = vor.u32 %v1875_v45, %v1648_v44  ;;  %v1857_v55 = vld [vmem:[%s2843_s1 + $0x314] sm:$0xf0]  ;;  %v1640_v56 = vld [vmem:[%s2843_s1 + $0x390] sm:$0xf]  ;;  %v1823_v59 = vld [vmem:[%s2843_s1 + $0x204] sm:$0xf0]  ;;  %v1513_v61 = vor.u32 %v1841_v52, %v1512_v51 }
  0x2a   :  { %1002 = vmatpush.bf16.msrb.mxu2 %v1617_v57  ;;  %v1873_v57 = vld [vmem:[%s2843_s1 + $0x394] sm:$0xf0]  ;;  %v1504_v62 = vld [vmem:[%s2843_s1 + $0x280] sm:$0xf]  ;;  %v24_v0 = vld [vmem:[%s2844_s0 + $0x10] sm:$0xff]  ;;  %v1577_v1 = vor.u32 %v1857_v55, %v1576_v54 }
  0x2b   :  { %1015 = vmatpush.bf16.msrb.mxu3 %v1681_v63  ;;  %v1839_v63 = vld [vmem:[%s2843_s1 + $0x284] sm:$0xf0]  ;;  %v1568_v2 = vld [vmem:[%s2843_s1 + $0x300] sm:$0xf]  ;;  %v1641_v5 = vor.u32 %v1873_v57, %v1640_v56  ;;  %v1752_v6 = vld [vmem:[%s2843_s1 + $0x470] sm:$0xf]  ;;  %v180_v16 = vunpack.c.l.b16 %v24_v0  ;;  %v181_v26 = vunpack.c.h.b16 %v24_v0 }
  0x2c   :  { %977 = vmatpush.bf16.msrb.mxu0 %v1481_v4  ;;  %v1855_v3 = vld [vmem:[%s2843_s1 + $0x304] sm:$0xf0]  ;;  %v25_v4 = vld [vmem:[%s2844_s0 + $0x18] sm:$0xff]  ;;  %v1772_v10 = vld [vmem:[%s2843_s1 + $0x74] sm:$0xf]  ;;  %v1505_v18 = vor.u32 %v1839_v63, %v1504_v62 }
  0x2d   :  { %990 = vmatpush.bf16.msrb.mxu1 %v1545_v9  ;;  %v1901_v9 = vld [vmem:[%s2843_s1 + $0x474] sm:$0xf0]  ;;  %v1788_v14 = vld [vmem:[%s2843_s1 + $0xf4] sm:$0xf]  ;;  %v1306_v15 = vld [vmem:[%s2843_s1 + $0xf8] sm:$0xf0]  ;;  %v182_v21 = vunpack.c.l.b16 %v25_v4  ;;  %v2372_v36 = vpack.c.b16 %v180_v16, %v180_v16  ;;  %v2382_v43 = vpack.c.b16 %v181_v26, %v181_v26 }
  0x2e   :  { %1003 = vmatpush.bf16.msrb.mxu2 %v1609_v13  ;;  %v1242_v13 = vld [vmem:[%s2843_s1 + $0x78] sm:$0xf0]  ;;  %v1632_v19 = vld [vmem:[%s2843_s1 + $0x380] sm:$0xf]  ;;  %v1871_v20 = vld [vmem:[%s2843_s1 + $0x384] sm:$0xf0]  ;;  %v1309_v28 = vor.u32 %v1788_v14, %v1306_v15 }
  0x2f   :  { %1016 = vmatpush.bf16.msrb.mxu3 %v1673_v17  ;;  %v1441_v17 = vor.u32 %v1823_v59, %v1440_v58  ;;  %v1804_v24 = vld [vmem:[%s2843_s1 + $0x174] sm:$0xf]  ;;  %v1245_v27 = vor.u32 %v1772_v10, %v1242_v13  ;;  %v1899_v30 = vld [vmem:[%s2843_s1 + $0x464] sm:$0xf0]  ;;  %v1770_v31 = vld [vmem:[%s2843_s1 + $0x64] sm:$0xf]  ;;  %v1633_v32 = vor.u32 %v1871_v20, %v1632_v19  ;;  %v2374_v39 = vpack.c.b16 %v182_v21, %v182_v21 }
  0x30   :  { %978 = vmatpush.bf16.msrb.mxu0 %v1473_v22  ;;  %v1569_v22 = vor.u32 %v1855_v3, %v1568_v2  ;;  %v1234_v33 = vld [vmem:[%s2843_s1 + $0x68] sm:$0xf0]  ;;  %v1768_v48 = vld [vmem:[%s2843_s1 + $0x54] sm:$0xf]  ;;  %v1226_v50 = vld [vmem:[%s2843_s1 + $0x58] sm:$0xf0] }
  0x31   :  { %991 = vmatpush.bf16.msrb.mxu1 %v1537_v23  ;;  %v1753_v23 = vor.u32 %v1901_v9, %v1752_v6  ;;  %v1362_v42 = vld [vmem:[%s2843_s1 + $0x168] sm:$0xf0]  ;;  %v1237_v44 = vor.u32 %v1770_v31, %v1234_v33  ;;  %v1784_v51 = vld [vmem:[%s2843_s1 + $0xd4] sm:$0xf]  ;;  %v1290_v52 = vld [vmem:[%s2843_s1 + $0xd8] sm:$0xf0]  ;;  %v1229_v57 = vor.u32 %v1768_v48, %v1226_v50 }
  0x32   :  { %1004 = vmatpush.bf16.msrb.mxu2 %v1601_v25  ;;  %v1370_v25 = vld [vmem:[%s2843_s1 + $0x178] sm:$0xf0]  ;;  %v1800_v55 = vld [vmem:[%s2843_s1 + $0x154] sm:$0xf]  ;;  %v1293_v58 = vor.u32 %v1784_v51, %v1290_v52  ;;  %v1728_v59 = vld [vmem:[%s2843_s1 + $0x440] sm:$0xf] }
  0x33   :  { %1017 = vmatpush.bf16.msrb.mxu3 %v1665_v29  ;;  %v1744_v29 = vld [vmem:[%s2843_s1 + $0x460] sm:$0xf]  ;;  %v1373_v38 = vor.u32 %v1804_v24, %v1370_v25  ;;  %v1354_v56 = vld [vmem:[%s2843_s1 + $0x158] sm:$0xf0]  ;;  %v1218_v62 = vld [vmem:[%s2843_s1 + $0x48] sm:$0xf0] }
  0x34   :  { %979 = vmatpush.bf16.msrb.mxu0 %v1465_v34  ;;  %v1786_v34 = vld [vmem:[%s2843_s1 + $0xe4] sm:$0xf]  ;;  %v1745_v40 = vor.u32 %v1899_v30, %v1744_v29  ;;  %v1282_v0 = vld [vmem:[%s2843_s1 + $0xc8] sm:$0xf0]  ;;  %v1720_v9 = vld [vmem:[%s2843_s1 + $0x430] sm:$0xf] }
  0x35   :  { %992 = vmatpush.bf16.msrb.mxu1 %v1529_v35  ;;  %v1298_v35 = vld [vmem:[%s2843_s1 + $0xe8] sm:$0xf0]  ;;  %v1782_v63 = vld [vmem:[%s2843_s1 + $0xc4] sm:$0xf]  ;;  %v1893_v10 = vld [vmem:[%s2843_s1 + $0x434] sm:$0xf0] }
  0x36   :  { %1005 = vmatpush.bf16.msrb.mxu2 %v1593_v37  ;;  %v183_v37 = vunpack.c.h.b16 %v25_v4  ;;  %v1301_v45 = vor.u32 %v1786_v34, %v1298_v35  ;;  %v1798_v3 = vld [vmem:[%s2843_s1 + $0x144] sm:$0xf]  ;;  %v1346_v4 = vld [vmem:[%s2843_s1 + $0x148] sm:$0xf0]  ;;  %v1285_v6 = vor.u32 %v1782_v63, %v1282_v0  ;;  %v1764_v13 = vld [vmem:[%s2843_s1 + $0x34] sm:$0xf] }
  0x37   :  { %1018 = vmatpush.bf16.msrb.mxu3 %v1657_v41  ;;  %v1802_v41 = vld [vmem:[%s2843_s1 + $0x164] sm:$0xf]  ;;  %v1210_v14 = vld [vmem:[%s2843_s1 + $0x38] sm:$0xf0]  ;;  %v1780_v15 = vld [vmem:[%s2843_s1 + $0xb4] sm:$0xf] }
  0x38   :  { %980 = vmatpush.bf16.msrb.mxu0 %v1457_v46  ;;  %v1736_v46 = vld [vmem:[%s2843_s1 + $0x450] sm:$0xf]  ;;  %v1274_v16 = vld [vmem:[%s2843_s1 + $0xb8] sm:$0xf0]  ;;  %v1796_v19 = vld [vmem:[%s2843_s1 + $0x134] sm:$0xf]  ;;  %v1213_v21 = vor.u32 %v1764_v13, %v1210_v14 }
  0x39   :  { %993 = vmatpush.bf16.msrb.mxu1 %v1521_v47  ;;  %v1897_v47 = vld [vmem:[%s2843_s1 + $0x454] sm:$0xf0]  ;;  %v1338_v20 = vld [vmem:[%s2843_s1 + $0x138] sm:$0xf0]  ;;  %v1891_v24 = vld [vmem:[%s2843_s1 + $0x424] sm:$0xf0] }
  0x3a   :  { %1006 = vmatpush.bf16.msrb.mxu2 %v1585_v49  ;;  %v2394_v49 = vpack.c.b16 %v183_v37, %v183_v37  ;;  %v1737_v54 = vor.u32 %v1897_v47, %v1736_v46  ;;  %v1762_v25 = vld [vmem:[%s2843_s1 + $0x24] sm:$0xf]  ;;  %v1202_v26 = vld [vmem:[%s2843_s1 + $0x28] sm:$0xf0]  ;;  %v1341_v29 = vor.u32 %v1796_v19, %v1338_v20  ;;  %v1704_v35 = vld [vmem:[%s2843_s1 + $0x410] sm:$0xf] }
  0x3b   :  { %1019 = vmatpush.bf16.msrb.mxu3 %v1649_v53  ;;  %v1365_v53 = vor.u32 %v1802_v41, %v1362_v42  ;;  %v1794_v31 = vld [vmem:[%s2843_s1 + $0x124] sm:$0xf]  ;;  %v1205_v33 = vor.u32 %v1762_v25, %v1202_v26  ;;  %v1889_v37 = vld [vmem:[%s2843_s1 + $0x414] sm:$0xf0]  ;;  %v1776_v41 = vld [vmem:[%s2843_s1 + $0x94] sm:$0xf] }
  0x3c   :  { %981 = vmatpush.bf16.msrb.mxu0 %v1449_v60  ;;  %v1895_v60 = vld [vmem:[%s2843_s1 + $0x444] sm:$0xf0]  ;;  %v1258_v42 = vld [vmem:[%s2843_s1 + $0x98] sm:$0xf0]  ;;  %v1705_v46 = vor.u32 %v1889_v37, %v1704_v35  ;;  %v1696_v48 = vld [vmem:[%s2843_s1 + $0x400] sm:$0xf] }
  0x3d   :  { %994 = vmatpush.bf16.msrb.mxu1 %v1513_v61  ;;  %v1766_v61 = vld [vmem:[%s2843_s1 + $0x44] sm:$0xf]  ;;  %v1729_v2 = vor.u32 %v1895_v60, %v1728_v59  ;;  %v1322_v47 = vld [vmem:[%s2843_s1 + $0x118] sm:$0xf0]  ;;  %v26_v50 = vld [vmem:[%s2844_s0 + $0x20] sm:$0xf]  ;;  %v1261_v52 = vor.u32 %v1776_v41, %v1258_v42 }
  0x3e   :  { %1007 = vmatpush.bf16.msrb.mxu2 %v1577_v1  ;;  %v1357_v1 = vor.u32 %v1800_v55, %v1354_v56  ;;  %v1186_v55 = vld [vmem:[%s2843_s1 + $0x8] sm:$0xf0]  ;;  %v1774_v56 = vld [vmem:[%s2843_s1 + $0x84] sm:$0xf]  ;;  %v1434_v60 = vld [vmem:[%s2843_s1 + $0x1f8] sm:$0xf0]  ;;  %v184_v63 = vunpack.c.l.b16 %v26_v50 }
  0x3f   :  { %1020 = vmatpush.bf16.msrb.mxu3 %v1641_v5  ;;  %v1221_v5 = vor.u32 %v1766_v61, %v1218_v62  ;;  %v1836_v61 = vld [vmem:[%s2843_s1 + $0x274] sm:$0xf]  ;;  %v1498_v62 = vld [vmem:[%s2843_s1 + $0x278] sm:$0xf0]  ;;  %v1834_v19 = vld [vmem:[%s2843_s1 + $0x264] sm:$0xf] }
  0x40   :  { %982 = vmatpush.bf16.msrb.mxu0 %v1441_v17  ;;  %v1349_v17 = vor.u32 %v1798_v3, %v1346_v4  ;;  %v1868_v13 = vld [vmem:[%s2843_s1 + $0x374] sm:$0xf]  ;;  %v1626_v14 = vld [vmem:[%s2843_s1 + $0x378] sm:$0xf0]  ;;  %v1490_v20 = vld [vmem:[%s2843_s1 + $0x268] sm:$0xf0] }
  0x41   :  { %995 = vmatpush.bf16.msrb.mxu1 %v1505_v18  ;;  %v1721_v18 = vor.u32 %v1893_v10, %v1720_v9  ;;  %v1501_v10 = vor.u32 %v1836_v61, %v1498_v62  ;;  %v1493_v26 = vor.u32 %v1834_v19, %v1490_v20  ;;  %v1546_v35 = vld [vmem:[%s2843_s1 + $0x2d8] sm:$0xf0]  ;;  %v1864_v41 = vld [vmem:[%s2843_s1 + $0x354] sm:$0xf] }
  0x42   :  { %1008 = vmatpush.bf16.msrb.mxu2 %v1569_v22  ;;  %v1277_v22 = vor.u32 %v1780_v15, %v1274_v16  ;;  %v1818_v15 = vld [vmem:[%s2843_s1 + $0x1e4] sm:$0xf]  ;;  %v1610_v42 = vld [vmem:[%s2843_s1 + $0x358] sm:$0xf0]  ;;  %v1808_v19 = vld [vmem:[%s2843_s1 + $0x194] sm:$0xf] }
  0x43   :  { %1021 = vmatpush.bf16.msrb.mxu3 %v1633_v32  ;;  %983 = vmatmul.bf16.vlgmr.msrb.gmra.mxu0 %v2372_v36  ;;  %v1330_v32 = vld [vmem:[%s2843_s1 + $0x128] sm:$0xf0]  ;;  %v1613_v50 = vor.u32 %v1864_v41, %v1610_v42  ;;  %v1690_v41 = vld [vmem:[%s2843_s1 + $0x3f8] sm:$0xf0] }
  0x44   :  { %1027 = vmatpush.bf16.msra.mxu0 %v1753_v23  ;;  %996 = vmatmul.bf16.vlgmr.msrb.gmra.mxu1 %v2382_v43  ;;  %v1712_v23 = vld [vmem:[%s2843_s1 + $0x420] sm:$0xf] }
  0x45   :  { %1040 = vmatpush.bf16.msra.mxu1 %v1245_v27  ;;  %1009 = vmatmul.bf16.vlgmr.msrb.gmra.mxu2 %v2374_v39  ;;  %v1778_v27 = vld [vmem:[%s2843_s1 + $0xa4] sm:$0xf]  ;;  %v1713_v30 = vor.u32 %v1891_v24, %v1712_v23  ;;  %v1554_v23 = vld [vmem:[%s2843_s1 + $0x2e8] sm:$0xf0]  ;;  %v1629_v24 = vor.u32 %v1868_v13, %v1626_v14 }
  0x46   :  { %1053 = vmatpush.bf16.msra.mxu2 %v1309_v28  ;;  %1022 = vmatmul.bf16.vlgmr.msrb.gmra.mxu3 %v2394_v49  ;;  %v1266_v28 = vld [vmem:[%s2843_s1 + $0xa8] sm:$0xf0] }
  0x47   :  { %1066 = vmatpush.bf16.msra.mxu3 %v1373_v38  ;;  %v1269_v34 = vor.u32 %v1778_v27, %v1266_v28  ;;  %v1760_v38 = vld [vmem:[%s2843_s1 + $0x14] sm:$0xf]  ;;  %v1866_v27 = vld [vmem:[%s2843_s1 + $0x364] sm:$0xf]  ;;  %v1618_v28 = vld [vmem:[%s2843_s1 + $0x368] sm:$0xf0] }
  0x48   :  { %1028 = vmatpush.bf16.msra.mxu0 %v1745_v40  ;;  %v1194_v40 = vld [vmem:[%s2843_s1 + $0x18] sm:$0xf0]  ;;  %v1621_v37 = vor.u32 %v1866_v27, %v1618_v28  ;;  %v1856_v27 = vld [vmem:[%s2843_s1 + $0x314] sm:$0xf] }
  0x49   :  { %1041 = vmatpush.bf16.msra.mxu1 %v1237_v44  ;;  %v1333_v44 = vor.u32 %v1794_v31, %v1330_v32  ;;  %v1197_v51 = vor.u32 %v1760_v38, %v1194_v40  ;;  %v1418_v31 = vld [vmem:[%s2843_s1 + $0x1d8] sm:$0xf0]  ;;  %v1832_v32 = vld [vmem:[%s2843_s1 + $0x254] sm:$0xf] }
  0x4a   :  { %1054 = vmatpush.bf16.msra.mxu2 %v1301_v45  ;;  %v1792_v45 = vld [vmem:[%s2843_s1 + $0x114] sm:$0xf] }
  0x4b   :  { %1067 = vmatpush.bf16.msra.mxu3 %v1365_v53  ;;  %v1887_v53 = vld [vmem:[%s2843_s1 + $0x404] sm:$0xf0]  ;;  %v1325_v59 = vor.u32 %v1792_v45, %v1322_v47  ;;  %v1830_v45 = vld [vmem:[%s2843_s1 + $0x244] sm:$0xf] }
  0x4c   :  { %1029 = vmatpush.bf16.msra.mxu0 %v1737_v54  ;;  %v1758_v54 = vld [vmem:[%s2843_s1 + $0x4] sm:$0xf]  ;;  %v1697_v0 = vor.u32 %v1887_v53, %v1696_v48  ;;  %v1538_v48 = vld [vmem:[%s2843_s1 + $0x2c8] sm:$0xf0] }
  0x4d   :  { %1042 = vmatpush.bf16.msra.mxu1 %v1229_v57  ;;  %v1250_v57 = vld [vmem:[%s2843_s1 + $0x88] sm:$0xf0]  ;;  %v1189_v3 = vor.u32 %v1758_v54, %v1186_v55  ;;  %v1846_v47 = vld [vmem:[%s2843_s1 + $0x2c4] sm:$0xf]  ;;  %v1812_v54 = vld [vmem:[%s2843_s1 + $0x1b4] sm:$0xf] }
  0x4e   :  { %1055 = vmatpush.bf16.msra.mxu2 %v1293_v58  ;;  %v1820_v58 = vld [vmem:[%s2843_s1 + $0x1f4] sm:$0xf]  ;;  %v1253_v4 = vor.u32 %v1774_v56, %v1250_v57  ;;  %v1862_v53 = vld [vmem:[%s2843_s1 + $0x344] sm:$0xf]  ;;  %v1541_v55 = vor.u32 %v1846_v47, %v1538_v48  ;;  %v1402_v56 = vld [vmem:[%s2843_s1 + $0x1b8] sm:$0xf0] }
  0x4f   :  { %1068 = vmatpush.bf16.msra.mxu3 %v1357_v1  ;;  %v1852_v1 = vld [vmem:[%s2843_s1 + $0x2f4] sm:$0xf]  ;;  %v1437_v9 = vor.u32 %v1820_v58, %v1434_v60  ;;  %v1466_v58 = vld [vmem:[%s2843_s1 + $0x238] sm:$0xf0]  ;;  %v1405_v62 = vor.u32 %v1812_v54, %v1402_v56  ;;  %v1570_v47 = vld [vmem:[%s2843_s1 + $0x308] sm:$0xf0] }
  0x50   :  { %1030 = vmatpush.bf16.msra.mxu0 %v1729_v2  ;;  %v1562_v2 = vld [vmem:[%s2843_s1 + $0x2f8] sm:$0xf0]  ;;  %v1828_v57 = vld [vmem:[%s2843_s1 + $0x234] sm:$0xf]  ;;  %v1898_v54 = vld [vmem:[%s2843_s1 + $0x464] sm:$0xf] }
  0x51   :  { %1043 = vmatpush.bf16.msra.mxu1 %v1221_v5  ;;  %v1790_v5 = vld [vmem:[%s2843_s1 + $0x104] sm:$0xf]  ;;  %v1565_v16 = vor.u32 %v1852_v1, %v1562_v2  ;;  %v1530_v60 = vld [vmem:[%s2843_s1 + $0x2b8] sm:$0xf0] }
  0x52   :  { %1056 = vmatpush.bf16.msra.mxu2 %v1285_v6  ;;  %v1314_v6 = vld [vmem:[%s2843_s1 + $0x108] sm:$0xf0]  ;;  %v1594_v1 = vld [vmem:[%s2843_s1 + $0x338] sm:$0xf0]  ;;  %v1810_v2 = vld [vmem:[%s2843_s1 + $0x1a4] sm:$0xf] }
  0x53   :  { %1069 = vmatpush.bf16.msra.mxu3 %v1349_v17  ;;  %v2564_v17 = vpack.c.b16 %v184_v63, %v184_v63  ;;  %v1469_v63 = vor.u32 %v1828_v57, %v1466_v58  ;;  %v1880_v58 = vld [vmem:[%s2843_s1 + $0x3d4] sm:$0xf] }
  0x54   :  { %1031 = vmatpush.bf16.msra.mxu0 %v1721_v18  ;;  %v1426_v18 = vld [vmem:[%s2843_s1 + $0x1e8] sm:$0xf0] }
  0x55   :  { %1044 = vmatpush.bf16.msra.mxu1 %v1213_v21  ;;  %v1317_v21 = vor.u32 %v1790_v5, %v1314_v6  ;;  %v1429_v25 = vor.u32 %v1818_v15, %v1426_v18  ;;  %v1826_v5 = vld [vmem:[%s2843_s1 + $0x224] sm:$0xf]  ;;  %v1458_v6 = vld [vmem:[%s2843_s1 + $0x228] sm:$0xf0] }
  0x56   :  { %1057 = vmatpush.bf16.msra.mxu2 %v1277_v22  ;;  %v1850_v22 = vld [vmem:[%s2843_s1 + $0x2e4] sm:$0xf]  ;;  %v1461_v15 = vor.u32 %v1826_v5, %v1458_v6  ;;  %v1586_v18 = vld [vmem:[%s2843_s1 + $0x328] sm:$0xf0]  ;;  %v1722_v5 = vld [vmem:[%s2843_s1 + $0x438] sm:$0xf0] }
  0x57   :  { %1070 = vmatpush.bf16.msra.mxu3 %v1341_v29  ;;  %v1816_v29 = vld [vmem:[%s2843_s1 + $0x1d4] sm:$0xf] }
  0x58   :  { %1032 = vmatpush.bf16.msra.mxu0 %v1713_v30  ;;  %v1557_v30 = vor.u32 %v1850_v22, %v1554_v23  ;;  %v1421_v38 = vor.u32 %v1816_v29, %v1418_v31  ;;  %v1824_v22 = vld [vmem:[%s2843_s1 + $0x214] sm:$0xf]  ;;  %v1450_v23 = vld [vmem:[%s2843_s1 + $0x218] sm:$0xf0]  ;;  %v1806_v31 = vld [vmem:[%s2843_s1 + $0x184] sm:$0xf] }
  0x59   :  { %1045 = vmatpush.bf16.msra.mxu1 %v1205_v33  ;;  %v1482_v33 = vld [vmem:[%s2843_s1 + $0x258] sm:$0xf0]  ;;  %v1453_v29 = vor.u32 %v1824_v22, %v1450_v23 }
  0x5a   :  { %1058 = vmatpush.bf16.msra.mxu2 %v1269_v34  ;;  %v1848_v34 = vld [vmem:[%s2843_s1 + $0x2d4] sm:$0xf]  ;;  %v1485_v40 = vor.u32 %v1832_v32, %v1482_v33  ;;  %v1378_v32 = vld [vmem:[%s2843_s1 + $0x188] sm:$0xf0]  ;;  %v1706_v22 = vld [vmem:[%s2843_s1 + $0x418] sm:$0xf0] }
  0x5b   :  { %1071 = vmatpush.bf16.msra.mxu3 %v1333_v44  ;;  %v1549_v44 = vor.u32 %v1848_v34, %v1546_v35  ;;  %v1822_v34 = vld [vmem:[%s2843_s1 + $0x204] sm:$0xf]  ;;  %v1442_v35 = vld [vmem:[%s2843_s1 + $0x208] sm:$0xf0] }
  0x5c   :  { %1033 = vmatpush.bf16.msra.mxu0 %v1705_v46  ;;  %v1474_v46 = vld [vmem:[%s2843_s1 + $0x248] sm:$0xf0] }
  0x5d   :  { %1046 = vmatpush.bf16.msra.mxu1 %v1197_v51 }
  0x5e   :  { %1059 = vmatpush.bf16.msra.mxu2 %v1261_v52  ;;  %v1477_v52 = vor.u32 %v1830_v45, %v1474_v46  ;;  %v1445_v45 = vor.u32 %v1822_v34, %v1442_v35  ;;  %v1854_v46 = vld [vmem:[%s2843_s1 + $0x304] sm:$0xf] }
  0x5f   :  { %1072 = vmatpush.bf16.msra.mxu3 %v1325_v59  ;;  %v1844_v59 = vld [vmem:[%s2843_s1 + $0x2b4] sm:$0xf] }
  0x60   :  { %1034 = vmatpush.bf16.msra.mxu0 %v1697_v0  ;;  %v1860_v0 = vld [vmem:[%s2843_s1 + $0x334] sm:$0xf] }
  0x61   :  { %1047 = vmatpush.bf16.msra.mxu1 %v1189_v3  ;;  %v1533_v3 = vor.u32 %v1844_v59, %v1530_v60  ;;  %v1597_v13 = vor.u32 %v1860_v0, %v1594_v1  ;;  %v1674_v59 = vld [vmem:[%s2843_s1 + $0x3d8] sm:$0xf0]  ;;  %v1896_v60 = vld [vmem:[%s2843_s1 + $0x454] sm:$0xf]  ;;  %v1666_v0 = vld [vmem:[%s2843_s1 + $0x3c8] sm:$0xf0] }
  0x62   :  { %1060 = vmatpush.bf16.msra.mxu2 %v1253_v4  ;;  %v1394_v4 = vld [vmem:[%s2843_s1 + $0x1a8] sm:$0xf0] }
  0x63   :  { %1035 = vmatmul.bf16.vlgmr.msra.gmra.mxu0 %v2564_v17  ;;  %1073 = vmatpush.bf16.msra.mxu3 %v1317_v21  ;;  %v1397_v14 = vor.u32 %v1810_v2, %v1394_v4  ;;  %v1386_v21 = vld [vmem:[%s2843_s1 + $0x198] sm:$0xf0]  ;;  %v1876_v2 = vld [vmem:[%s2843_s1 + $0x3b4] sm:$0xf] }
  0x64   :  { %1079 = vmatpush.bf16.msrb.mxu0 %v1437_v9  ;;  %1048 = vmatmul.bf16.vlgmr.msra.gmra.mxu1 %v2199_v11  ;;  %v1410_v11 = vld [vmem:[%s2843_s1 + $0x1c8] sm:$0xf0]  ;;  %v1842_v9 = vld [vmem:[%s2843_s1 + $0x2a4] sm:$0xf]  ;;  %v1389_v28 = vor.u32 %v1808_v19, %v1386_v21  ;;  %v1892_v4 = vld [vmem:[%s2843_s1 + $0x434] sm:$0xf] }
  0x65   :  { %1092 = vmatpush.bf16.msrb.mxu1 %v1501_v10  ;;  %1061 = vmatmul.bf16.vlgmr.msra.gmra.mxu2 %v2201_v12  ;;  %v1814_v12 = vld [vmem:[%s2843_s1 + $0x1c4] sm:$0xf]  ;;  %v1522_v10 = vld [vmem:[%s2843_s1 + $0x2a8] sm:$0xf0]  ;;  %v1872_v19 = vld [vmem:[%s2843_s1 + $0x394] sm:$0xf] }
  0x66   :  { %1105 = vmatpush.bf16.msrb.mxu2 %v1565_v16  ;;  %1074 = vmatmul.bf16.vlgmr.msra.gmra.mxu3 %v2192_v7  ;;  %v1413_v51 = vor.u32 %v1814_v12, %v1410_v11  ;;  %v1602_v7 = vld [vmem:[%s2843_s1 + $0x348] sm:$0xf0]  ;;  %v1858_v16 = vld [vmem:[%s2843_s1 + $0x324] sm:$0xf]  ;;  %v1525_v20 = vor.u32 %v1842_v9, %v1522_v10  ;;  %v1900_v12 = vld [vmem:[%s2843_s1 + $0x474] sm:$0xf]  ;;  %v1381_v11 = vor.u32 %v1806_v31, %v1378_v32 }
  0x67   :  { %1118 = vmatpush.bf16.msrb.mxu3 %v1629_v24  ;;  %v1605_v61 = vor.u32 %v1862_v53, %v1602_v7  ;;  %v1840_v24 = vld [vmem:[%s2843_s1 + $0x294] sm:$0xf]  ;;  %v1682_v53 = vld [vmem:[%s2843_s1 + $0x3e8] sm:$0xf0]  ;;  %v1573_v7 = vor.u32 %v1854_v46, %v1570_v47  ;;  %v1725_v9 = vor.u32 %v1892_v4, %v1722_v5  ;;  %v1874_v10 = vld [vmem:[%s2843_s1 + $0x3a4] sm:$0xf] }
  0x68   :  { %1080 = vmatpush.bf16.msrb.mxu0 %v1429_v25  ;;  %v1514_v25 = vld [vmem:[%s2843_s1 + $0x298] sm:$0xf0]  ;;  %v1888_v21 = vld [vmem:[%s2843_s1 + $0x414] sm:$0xf] }
  0x69   :  { %1093 = vmatpush.bf16.msrb.mxu1 %v1493_v26  ;;  %v1589_v26 = vor.u32 %v1858_v16, %v1586_v18  ;;  %v1517_v33 = vor.u32 %v1840_v24, %v1514_v25  ;;  %v1709_v24 = vor.u32 %v1888_v21, %v1706_v22  ;;  %v1870_v25 = vld [vmem:[%s2843_s1 + $0x384] sm:$0xf] }
  0x6a   :  { %1106 = vmatpush.bf16.msrb.mxu2 %v1557_v30  ;;  %v1578_v30 = vld [vmem:[%s2843_s1 + $0x318] sm:$0xf0] }
  0x6b   :  { %1119 = vmatpush.bf16.msrb.mxu3 %v1621_v37  ;;  %v1838_v37 = vld [vmem:[%s2843_s1 + $0x284] sm:$0xf]  ;;  %v1581_v42 = vor.u32 %v1856_v27, %v1578_v30 }
  0x6c   :  { %1081 = vmatpush.bf16.msrb.mxu0 %v1421_v38  ;;  %v1506_v38 = vld [vmem:[%s2843_s1 + $0x288] sm:$0xf0]  ;;  %v1886_v27 = vld [vmem:[%s2843_s1 + $0x404] sm:$0xf] }
  0x6d   :  { %1094 = vmatpush.bf16.msrb.mxu1 %v1485_v40  ;;  %v1884_v40 = vld [vmem:[%s2843_s1 + $0x3f4] sm:$0xf]  ;;  %v1509_v48 = vor.u32 %v1838_v37, %v1506_v38 }
  0x6e   :  { %1107 = vmatpush.bf16.msrb.mxu2 %v1549_v44  ;;  %v1754_v44 = vld [vmem:[%s2843_s1 + $0x478] sm:$0xf0] }
  0x6f   :  { %1120 = vmatpush.bf16.msrb.mxu3 %v1613_v50  ;;  %v1693_v50 = vor.u32 %v1884_v40, %v1690_v41 }
  0x70   :  { %1082 = vmatpush.bf16.msrb.mxu0 %v1413_v51  ;;  %v1757_v51 = vor.u32 %v1900_v12, %v1754_v44 }
  0x71   :  { %1095 = vmatpush.bf16.msrb.mxu1 %v1477_v52  ;;  %v1882_v52 = vld [vmem:[%s2843_s1 + $0x3e4] sm:$0xf] }
  0x72   :  { %1108 = vmatpush.bf16.msrb.mxu2 %v1541_v55  ;;  %v1746_v55 = vld [vmem:[%s2843_s1 + $0x468] sm:$0xf0]  ;;  %v1685_v56 = vor.u32 %v1882_v52, %v1682_v53 }
  0x73   :  { %1121 = vmatpush.bf16.msrb.mxu3 %v1605_v61  ;;  %v1749_v57 = vor.u32 %v1898_v54, %v1746_v55  ;;  %v1738_v61 = vld [vmem:[%s2843_s1 + $0x458] sm:$0xf0] }
  0x74   :  { %1083 = vmatpush.bf16.msrb.mxu0 %v1405_v62  ;;  %v1677_v62 = vor.u32 %v1880_v58, %v1674_v59 }
  0x75   :  { %1096 = vmatpush.bf16.msrb.mxu1 %v1469_v63  ;;  %v1741_v63 = vor.u32 %v1896_v60, %v1738_v61 }
  0x76   :  { %1109 = vmatpush.bf16.msrb.mxu2 %v1533_v3  ;;  %v1658_v3 = vld [vmem:[%s2843_s1 + $0x3b8] sm:$0xf0] }
  0x77   :  { %1122 = vmatpush.bf16.msrb.mxu3 %v1597_v13  ;;  %v1661_v6 = vor.u32 %v1876_v2, %v1658_v3  ;;  %v1650_v13 = vld [vmem:[%s2843_s1 + $0x3a8] sm:$0xf0] }
  0x78   :  { %1084 = vmatpush.bf16.msrb.mxu0 %v1397_v14  ;;  %v1890_v14 = vld [vmem:[%s2843_s1 + $0x424] sm:$0xf]  ;;  %v1653_v16 = vor.u32 %v1874_v10, %v1650_v13 }
  0x79   :  { %1097 = vmatpush.bf16.msrb.mxu1 %v1461_v15  ;;  %v1714_v15 = vld [vmem:[%s2843_s1 + $0x428] sm:$0xf0] }
  0x7a   :  { %1110 = vmatpush.bf16.msrb.mxu2 %v1525_v20  ;;  %v1717_v18 = vor.u32 %v1890_v14, %v1714_v15  ;;  %v1642_v20 = vld [vmem:[%s2843_s1 + $0x398] sm:$0xf0] }
  0x7b   :  { %1123 = vmatpush.bf16.msrb.mxu3 %v1589_v26  ;;  %v1645_v23 = vor.u32 %v1872_v19, %v1642_v20  ;;  %v1634_v26 = vld [vmem:[%s2843_s1 + $0x388] sm:$0xf0] }
  0x7c   :  { %1085 = vmatpush.bf16.msrb.mxu0 %v1389_v28  ;;  %v1698_v28 = vld [vmem:[%s2843_s1 + $0x408] sm:$0xf0] }
  0x7d   :  { %1098 = vmatpush.bf16.msrb.mxu1 %v1453_v29  ;;  %v1637_v29 = vor.u32 %v1870_v25, %v1634_v26  ;;  %v1701_v30 = vor.u32 %v1886_v27, %v1698_v28 }
  0x7e   :  { %1111 = vmatpush.bf16.msrb.mxu2 %v1517_v33 }
  0x7f   :  { %1124 = vmatpush.bf16.msrb.mxu3 %v1581_v42 }
  0x80   :  { %1086 = vmatpush.bf16.msrb.mxu0 %v1381_v11 }
  0x81   :  { %1099 = vmatpush.bf16.msrb.mxu1 %v1445_v45 }
  0x82   :  { %1112 = vmatpush.bf16.msrb.mxu2 %v1509_v48 }
  0x83   :  { %1125 = vmatpush.bf16.msrb.mxu3 %v1573_v7  ;;  %1087 = vmatmul.bf16.vlgmr.msrb.gmra.mxu0 %v2194_v8  ;;  %v1878_v8 = vld [vmem:[%s2843_s1 + $0x3c4] sm:$0xf] }
  0x84   :  { %1131 = vmatpush.bf16.msra.mxu0 %v1693_v50  ;;  %1100 = vmatmul.bf16.vlgmr.msrb.gmra.mxu1 %v2372_v36  ;;  %v1730_v36 = vld [vmem:[%s2843_s1 + $0x448] sm:$0xf0]  ;;  %v1669_v1 = vor.u32 %v1878_v8, %v1666_v0 }
  0x85   :  { %1144 = vmatpush.bf16.msra.mxu1 %v1757_v51  ;;  %1113 = vmatmul.bf16.vlgmr.msrb.gmra.mxu2 %v2382_v43  ;;  %v1894_v43 = vld [vmem:[%s2843_s1 + $0x444] sm:$0xf] }
  0x86   :  { %1126 = vmatmul.bf16.vlgmr.msrb.gmra.mxu3 %v2374_v39  ;;  %v1733_v39 = vor.u32 %v1894_v43, %v1730_v36 }
  0x88   :  { %1132 = vmatpush.bf16.msra.mxu0 %v1685_v56 }
  0x89   :  { %1145 = vmatpush.bf16.msra.mxu1 %v1749_v57 }
  0x8c   :  { %1133 = vmatpush.bf16.msra.mxu0 %v1677_v62 }
  0x8d   :  { %1146 = vmatpush.bf16.msra.mxu1 %v1741_v63 }
  0x90   :  { %1134 = vmatpush.bf16.msra.mxu0 %v1669_v1 }
  0x91   :  { %1147 = vmatpush.bf16.msra.mxu1 %v1733_v39 }
  0x94   :  { %1135 = vmatpush.bf16.msra.mxu0 %v1661_v6  ;;  %v1166_v6 = vld [vmem:[%s2845_s2] sm:$0x3] }
  0x95   :  { %1148 = vmatpush.bf16.msra.mxu1 %v1725_v9  ;;  %v1168_v10 = vperm.slane %v1166_v6, 0 }
  0x98   :  { %1136 = vmatpush.bf16.msra.mxu0 %v1653_v16 }
  0x99   :  { %1149 = vmatpush.bf16.msra.mxu1 %v1717_v18  ;;  %v1169_v18 = vperm.slane %v1166_v6, 1 }
  0x9c   :  { %1137 = vmatpush.bf16.msra.mxu0 %v1645_v23 }
  0x9d   :  { %1150 = vmatpush.bf16.msra.mxu1 %v1709_v24 }
  0xa0   :  { %1138 = vmatpush.bf16.msra.mxu0 %v1637_v29  ;;  %v932_v31 = vpop.f32.mrf.mxu0 }
  0xa1   :  { %1151 = vmatpush.bf16.msra.mxu1 %v1701_v30  ;;  %v945_v32 = vpop.f32.mrf.mxu1 }
  0xa2   :  { %v946_v33 = vadd.f32 %v945_v32, %v932_v31 }
  0xa3   :  { %1139 = vmatmul.bf16.vlgmr.msra.gmra.mxu0 %v2394_v49 }
  0xa4   :  { %1152 = vmatmul.bf16.vlgmr.msra.gmra.mxu1 %v2564_v17 }
  0xa8   :  { %v958_v35 = vpop.f32.mrf.mxu2  ;;  %v934_v40 = vpop.f32.mrf.mxu0 }
  0xa9   :  { %v971_v34 = vpop.f32.mrf.mxu3  ;;  %v959_v37 = vadd.f32 %v958_v35, %v946_v33  ;;  %v947_v41 = vpop.f32.mrf.mxu1 }
  0xab   :  { %v972_v38 = vadd.f32 %v971_v34, %v959_v37 }
  0xb0   :  { %v960_v12 = vpop.f32.mrf.mxu2 }
  0xb1   :  { %v973_v42 = vpop.f32.mrf.mxu3 }
  0xc0   :  { %v984_v44 = vpop.f32.mrf.mxu0 }
  0xc1   :  { %v985_v11 = vadd.f32 %v984_v44, %v972_v38  ;;  %v997_v45 = vpop.f32.mrf.mxu1 }
  0xc3   :  { %v998_v46 = vadd.f32 %v997_v45, %v985_v11 }
  0xc8   :  { %v1010_v47 = vpop.f32.mrf.mxu2  ;;  %v986_v49 = vpop.f32.mrf.mxu0 }
  0xc9   :  { %v1011_v48 = vadd.f32 %v1010_v47, %v998_v46  ;;  %v1023_v50 = vpop.f32.mrf.mxu3  ;;  %v999_v17 = vpop.f32.mrf.mxu1 }
  0xcb   :  { %v1024_v51 = vadd.f32 %v1023_v50, %v1011_v48 }
  0xd0   :  { %v1012_v52 = vpop.f32.mrf.mxu2 }
  0xd1   :  { %v1025_v53 = vpop.f32.mrf.mxu3 }
  0xe0   :  { %v1036_v7 = vpop.f32.mrf.mxu0 }
  0xe1   :  { %v1049_v54 = vpop.f32.mrf.mxu1  ;;  %v1037_v9 = vadd.f32 %v1036_v7, %v1024_v51 }
  0xe3   :  { %v1172_v19 = vadd.f32 %v1168_v10, %v1037_v9 }
  0xe5   :  { %v1174_v22 = vmax.f32 %v1172_v19, 0.0 }
  0xe8   :  { %v1062_v55 = vpop.f32.mrf.mxu2  ;;  %v1038_v56 = vpop.f32.mrf.mxu0 }
  0xe9   :  { %v1075_v57 = vpop.f32.mrf.mxu3  ;;  %v1051_v58 = vpop.f32.mrf.mxu1  ;;  %v1063_v8 = vadd.f32 %v1062_v55, %v1049_v54 }
  0xeb   :  { %v1076_v1 = vadd.f32 %v1075_v57, %v1063_v8 }
  0xf0   :  { %v1064_v59 = vpop.f32.mrf.mxu2 }
  0xf1   :  { %v1077_v60 = vpop.f32.mrf.mxu3 }
 0x100   :  { %v1088_v61 = vpop.f32.mrf.mxu0 }
 0x101   :  { %v1101_v62 = vpop.f32.mrf.mxu1  ;;  %v1089_v2 = vadd.f32 %v1088_v61, %v1076_v1 }
 0x103   :  { %v1102_v4 = vadd.f32 %v1101_v62, %v1089_v2 }
 0x108   :  { %v1114_v63 = vpop.f32.mrf.mxu2  ;;  %v1090_v0 = vpop.f32.mrf.mxu0 }
 0x109   :  { %v1127_v43 = vpop.f32.mrf.mxu3  ;;  %v1103_v36 = vpop.f32.mrf.mxu1  ;;  %v1115_v5 = vadd.f32 %v1114_v63, %v1102_v4 }
 0x10b   :  { %v1128_v13 = vadd.f32 %v1127_v43, %v1115_v5 }
 0x110   :  { %v1116_v39 = vpop.f32.mrf.mxu2 }
 0x111   :  { %v1129_v3 = vpop.f32.mrf.mxu3 }
 0x120   :  { %v1140_v14 = vpop.f32.mrf.mxu0 }
 0x121   :  { %v1141_v15 = vadd.f32 %v1140_v14, %v1128_v13  ;;  %v1153_v16 = vpop.f32.mrf.mxu1 }
 0x123   :  { %v1154_v20 = vadd.f32 %v1153_v16, %v1141_v15 }
 0x125   :  { %v1173_v21 = vadd.f32 %v1169_v18, %v1154_v20 }
 0x127   :  { %v1175_v23 = vmax.f32 %v1173_v21, 0.0 }
 0x128   :  { %v1142_v24 = vpop.f32.mrf.mxu0 }
 0x129   :  { %v1176_v25 = vpack.c.bf16 %v1175_v23, %v1174_v22  ;;  %v1155_v26 = vpop.f32.mrf.mxu1 }
 0x12b   :  { %1177 = vst [vmem:[%s2846_s3] sm:$0xff] %v1176_v25 }

// kernel: gaussian_feature_encoder.9
= control target key start
LH: loop header
LB: loop body
LE: loop exit
PB: predicated region body
PF: predicated region fallthrough
CT: control target
= control target key end

     0   :  { %s1531_s0 = inlined_call_operand.vmem [shape: bf16[2,8,512], index: 0, kind: input, shape index: {}]   ;;  %s1532_s1 = inlined_call_operand.vmem [shape: bf16[512,256], index: 1, kind: input, shape index: {}]   ;;  %s1533_s2 = inlined_call_operand.vmem [shape: f32[1,256], index: 2, kind: input, shape index: {}]   ;;  %s1534_s3 = inlined_call_operand.hbm [shape: f32[2,256], index: 3, kind: output, shape index: {}]  }
   0x1   :  { %v714_v0 = vld [vmem:[%s1532_s1 + $0x70] sm:$0xf]  ;;  %v927_v1 = vld [vmem:[%s1532_s1 + $0x74] sm:$0xf0]  ;;  %v706_v11 = vld [vmem:[%s1532_s1 + $0x60] sm:$0xf] }
   0x2   :  { %v778_v2 = vld [vmem:[%s1532_s1 + $0xf0] sm:$0xf]  ;;  %v715_v3 = vor.u32 %v927_v1, %v714_v0  ;;  %v943_v4 = vld [vmem:[%s1532_s1 + $0xf4] sm:$0xf0]  ;;  %v925_v13 = vld [vmem:[%s1532_s1 + $0x64] sm:$0xf0] }
   0x3   :  { %v842_v5 = vld [vmem:[%s1532_s1 + $0x170] sm:$0xf]  ;;  %v959_v6 = vld [vmem:[%s1532_s1 + $0x174] sm:$0xf0]  ;;  %v779_v7 = vor.u32 %v943_v4, %v778_v2  ;;  %v770_v14 = vld [vmem:[%s1532_s1 + $0xe0] sm:$0xf]  ;;  %v707_v16 = vor.u32 %v925_v13, %v706_v11 }
   0x4   :  { %v843_v8 = vor.u32 %v959_v6, %v842_v5  ;;  %v906_v9 = vld [vmem:[%s1532_s1 + $0x1f0] sm:$0xf]  ;;  %v975_v10 = vld [vmem:[%s1532_s1 + $0x1f4] sm:$0xf0]  ;;  %528 = vmatpush.bf16.msra.mxu0 %v715_v3  ;;  %v941_v15 = vld [vmem:[%s1532_s1 + $0xe4] sm:$0xf0] }
   0x5   :  { %v907_v12 = vor.u32 %v975_v10, %v906_v9  ;;  %541 = vmatpush.bf16.msra.mxu1 %v779_v7  ;;  %v771_v17 = vor.u32 %v941_v15, %v770_v14  ;;  %v834_v18 = vld [vmem:[%s1532_s1 + $0x160] sm:$0xf]  ;;  %v957_v19 = vld [vmem:[%s1532_s1 + $0x164] sm:$0xf0]  ;;  %v698_v23 = vld [vmem:[%s1532_s1 + $0x50] sm:$0xf] }
   0x6   :  { %554 = vmatpush.bf16.msra.mxu2 %v843_v8  ;;  %v898_v20 = vld [vmem:[%s1532_s1 + $0x1e0] sm:$0xf]  ;;  %v835_v21 = vor.u32 %v957_v19, %v834_v18  ;;  %v973_v22 = vld [vmem:[%s1532_s1 + $0x1e4] sm:$0xf0]  ;;  %v923_v24 = vld [vmem:[%s1532_s1 + $0x54] sm:$0xf0] }
   0x7   :  { %567 = vmatpush.bf16.msra.mxu3 %v907_v12  ;;  %v899_v25 = vor.u32 %v973_v22, %v898_v20  ;;  %v762_v26 = vld [vmem:[%s1532_s1 + $0xd0] sm:$0xf]  ;;  %v939_v27 = vld [vmem:[%s1532_s1 + $0xd4] sm:$0xf0]  ;;  %v699_v29 = vor.u32 %v923_v24, %v698_v23  ;;  %v690_v35 = vld [vmem:[%s1532_s1 + $0x40] sm:$0xf] }
   0x8   :  { %v826_v28 = vld [vmem:[%s1532_s1 + $0x150] sm:$0xf]  ;;  %529 = vmatpush.bf16.msra.mxu0 %v707_v16  ;;  %v955_v30 = vld [vmem:[%s1532_s1 + $0x154] sm:$0xf0]  ;;  %v763_v33 = vor.u32 %v939_v27, %v762_v26  ;;  %v921_v36 = vld [vmem:[%s1532_s1 + $0x44] sm:$0xf0] }
   0x9   :  { %v890_v31 = vld [vmem:[%s1532_s1 + $0x1d0] sm:$0xf]  ;;  %v971_v32 = vld [vmem:[%s1532_s1 + $0x1d4] sm:$0xf0]  ;;  %542 = vmatpush.bf16.msra.mxu1 %v771_v17  ;;  %v827_v34 = vor.u32 %v955_v30, %v826_v28  ;;  %v754_v37 = vld [vmem:[%s1532_s1 + $0xc0] sm:$0xf]  ;;  %v691_v44 = vor.u32 %v921_v36, %v690_v35 }
   0xa   :  { %555 = vmatpush.bf16.msra.mxu2 %v835_v21  ;;  %v891_v38 = vor.u32 %v971_v32, %v890_v31  ;;  %v937_v39 = vld [vmem:[%s1532_s1 + $0xc4] sm:$0xf0]  ;;  %v818_v40 = vld [vmem:[%s1532_s1 + $0x140] sm:$0xf]  ;;  %v682_v47 = vld [vmem:[%s1532_s1 + $0x30] sm:$0xf] }
   0xb   :  { %568 = vmatpush.bf16.msra.mxu3 %v899_v25  ;;  %v953_v41 = vld [vmem:[%s1532_s1 + $0x144] sm:$0xf0]  ;;  %v882_v42 = vld [vmem:[%s1532_s1 + $0x1c0] sm:$0xf]  ;;  %v755_v45 = vor.u32 %v937_v39, %v754_v37  ;;  %v919_v48 = vld [vmem:[%s1532_s1 + $0x34] sm:$0xf0] }
   0xc   :  { %v969_v43 = vld [vmem:[%s1532_s1 + $0x1c4] sm:$0xf0]  ;;  %530 = vmatpush.bf16.msra.mxu0 %v699_v29  ;;  %v819_v46 = vor.u32 %v953_v41, %v818_v40  ;;  %v746_v49 = vld [vmem:[%s1532_s1 + $0xb0] sm:$0xf]  ;;  %v935_v51 = vld [vmem:[%s1532_s1 + $0xb4] sm:$0xf0]  ;;  %v683_v56 = vor.u32 %v919_v48, %v682_v47 }
   0xd   :  { %543 = vmatpush.bf16.msra.mxu1 %v763_v33  ;;  %v883_v50 = vor.u32 %v969_v43, %v882_v42  ;;  %v810_v52 = vld [vmem:[%s1532_s1 + $0x130] sm:$0xf]  ;;  %v951_v53 = vld [vmem:[%s1532_s1 + $0x134] sm:$0xf0]  ;;  %v674_v57 = vld [vmem:[%s1532_s1 + $0x20] sm:$0xf]  ;;  %v747_v59 = vor.u32 %v935_v51, %v746_v49 }
   0xe   :  { %556 = vmatpush.bf16.msra.mxu2 %v827_v34  ;;  %v874_v54 = vld [vmem:[%s1532_s1 + $0x1b0] sm:$0xf]  ;;  %v967_v55 = vld [vmem:[%s1532_s1 + $0x1b4] sm:$0xf0]  ;;  %v917_v58 = vld [vmem:[%s1532_s1 + $0x24] sm:$0xf0]  ;;  %v811_v60 = vor.u32 %v951_v53, %v810_v52 }
   0xf   :  { %569 = vmatpush.bf16.msra.mxu3 %v891_v38  ;;  %v738_v61 = vld [vmem:[%s1532_s1 + $0xa0] sm:$0xf]  ;;  %v933_v62 = vld [vmem:[%s1532_s1 + $0xa4] sm:$0xf0]  ;;  %v875_v0 = vor.u32 %v967_v55, %v874_v54  ;;  %v666_v4 = vld [vmem:[%s1532_s1 + $0x10] sm:$0xf]  ;;  %v675_v10 = vor.u32 %v917_v58, %v674_v57 }
  0x10   :  { %531 = vmatpush.bf16.msra.mxu0 %v691_v44  ;;  %v802_v63 = vld [vmem:[%s1532_s1 + $0x120] sm:$0xf]  ;;  %v949_v1 = vld [vmem:[%s1532_s1 + $0x124] sm:$0xf0]  ;;  %v915_v5 = vld [vmem:[%s1532_s1 + $0x14] sm:$0xf0]  ;;  %v739_v17 = vor.u32 %v933_v62, %v738_v61 }
  0x11   :  { %544 = vmatpush.bf16.msra.mxu1 %v755_v45  ;;  %v866_v2 = vld [vmem:[%s1532_s1 + $0x1a0] sm:$0xf]  ;;  %v965_v3 = vld [vmem:[%s1532_s1 + $0x1a4] sm:$0xf0]  ;;  %v1177_v6 = vld [vmem:[%s1532_s1 + $0x90] sm:$0xf]  ;;  %v803_v18 = vor.u32 %v949_v1, %v802_v63  ;;  %v667_v29 = vor.u32 %v915_v5, %v666_v4 }
  0x12   :  { %557 = vmatpush.bf16.msra.mxu2 %v819_v46  ;;  %v1182_v7 = vld [vmem:[%s1532_s1 + $0x94] sm:$0xf0]  ;;  %v1187_v8 = vld [vmem:[%s1532_s1 + $0x110] sm:$0xf]  ;;  %v1207_v13 = vld [vmem:[%s1532_s1] sm:$0xf]  ;;  %v867_v22 = vor.u32 %v965_v3, %v866_v2 }
  0x13   :  { %570 = vmatpush.bf16.msra.mxu3 %v883_v50  ;;  %v1192_v9 = vld [vmem:[%s1532_s1 + $0x114] sm:$0xf0]  ;;  %v1197_v11 = vld [vmem:[%s1532_s1 + $0x190] sm:$0xf]  ;;  %v1212_v14 = vld [vmem:[%s1532_s1 + $0x4] sm:$0xf0]  ;;  %v731_v30 = vor.u32 %v1182_v7, %v1177_v6 }
  0x14   :  { %532 = vmatpush.bf16.msra.mxu0 %v683_v56  ;;  %v1202_v12 = vld [vmem:[%s1532_s1 + $0x194] sm:$0xf0]  ;;  %v1217_v15 = vld [vmem:[%s1532_s1 + $0x80] sm:$0xf]  ;;  %v1222_v16 = vld [vmem:[%s1532_s1 + $0x84] sm:$0xf0]  ;;  %v795_v31 = vor.u32 %v1192_v9, %v1187_v8  ;;  %v659_v36 = vor.u32 %v1212_v14, %v1207_v13 }
  0x15   :  { %545 = vmatpush.bf16.msra.mxu1 %v747_v59  ;;  %v1227_v19 = vld [vmem:[%s1532_s1 + $0x100] sm:$0xf]  ;;  %v1232_v20 = vld [vmem:[%s1532_s1 + $0x104] sm:$0xf0]  ;;  %v1247_v24 = vld [vmem:[%s1532_s1 + $0x74] sm:$0xf]  ;;  %v859_v35 = vor.u32 %v1202_v12, %v1197_v11  ;;  %v723_v37 = vor.u32 %v1222_v16, %v1217_v15 }
  0x16   :  { %558 = vmatpush.bf16.msra.mxu2 %v811_v60  ;;  %v1237_v21 = vld [vmem:[%s1532_s1 + $0x180] sm:$0xf]  ;;  %v1242_v23 = vld [vmem:[%s1532_s1 + $0x184] sm:$0xf0]  ;;  %v1252_v25 = vld [vmem:[%s1532_s1 + $0x78] sm:$0xf0]  ;;  %v787_v41 = vor.u32 %v1232_v20, %v1227_v19 }
  0x17   :  { %571 = vmatpush.bf16.msra.mxu3 %v875_v0  ;;  %v1257_v26 = vld [vmem:[%s1532_s1 + $0xf4] sm:$0xf]  ;;  %v1262_v27 = vld [vmem:[%s1532_s1 + $0xf8] sm:$0xf0]  ;;  %v1297_v38 = vld [vmem:[%s1532_s1 + $0x64] sm:$0xf]  ;;  %v851_v42 = vor.u32 %v1242_v23, %v1237_v21  ;;  %v719_v43 = vor.u32 %v1247_v24, %v1252_v25 }
  0x18   :  { %v1267_v28 = vld [vmem:[%s1532_s1 + $0x174] sm:$0xf]  ;;  %533 = vmatpush.bf16.msra.mxu0 %v675_v10  ;;  %v1276_v32 = vld [vmem:[%s1532_s1 + $0x178] sm:$0xf0]  ;;  %v1302_v39 = vld [vmem:[%s1532_s1 + $0x68] sm:$0xf0]  ;;  %v783_v44 = vor.u32 %v1257_v26, %v1262_v27 }
  0x19   :  { %v1281_v33 = vld [vmem:[%s1532_s1 + $0x1f4] sm:$0xf]  ;;  %v1286_v34 = vld [vmem:[%s1532_s1 + $0x1f8] sm:$0xf0]  ;;  %546 = vmatpush.bf16.msra.mxu1 %v739_v17  ;;  %v1307_v40 = vld [vmem:[%s1532_s1 + $0xe4] sm:$0xf]  ;;  %v847_v48 = vor.u32 %v1267_v28, %v1276_v32  ;;  %v711_v50 = vor.u32 %v1297_v38, %v1302_v39 }
  0x1a   :  { %559 = vmatpush.bf16.msra.mxu2 %v803_v18  ;;  %v1320_v45 = vld [vmem:[%s1532_s1 + $0xe8] sm:$0xf0]  ;;  %v1325_v46 = vld [vmem:[%s1532_s1 + $0x164] sm:$0xf]  ;;  %v911_v49 = vor.u32 %v1281_v33, %v1286_v34  ;;  %v23_v58 = vld [vmem:[%s1531_s0 + $0x10] sm:$0xff] }
  0x1b   :  { %572 = vmatpush.bf16.msra.mxu3 %v867_v22  ;;  %v1330_v47 = vld [vmem:[%s1532_s1 + $0x168] sm:$0xf0]  ;;  %v775_v51 = vor.u32 %v1307_v40, %v1320_v45  ;;  %v1343_v52 = vld [vmem:[%s1532_s1 + $0x1e4] sm:$0xf]  ;;  %v24_v59 = vld [vmem:[%s1531_s0 + $0x18] sm:$0xff]  ;;  %v29_v0 = vunpack.c.l.bf16 %v23_v58  ;;  %v30_v1 = vunpack.c.h.bf16 %v23_v58 }
  0x1c   :  { %v1348_v53 = vld [vmem:[%s1532_s1 + $0x1e8] sm:$0xf0]  ;;  %v21_v54 = vld [vmem:[%s1531_s0] sm:$0xff]  ;;  %534 = vmatpush.bf16.msra.mxu0 %v667_v29  ;;  %v839_v55 = vor.u32 %v1325_v46, %v1330_v47 }
  0x1d   :  { %v903_v56 = vor.u32 %v1343_v52, %v1348_v53  ;;  %v22_v57 = vld [vmem:[%s1531_s0 + $0x8] sm:$0xff]  ;;  %v25_v60 = vunpack.c.l.bf16 %v21_v54  ;;  %v26_v61 = vunpack.c.h.bf16 %v21_v54  ;;  %547 = vmatpush.bf16.msra.mxu1 %v731_v30 }
  0x1e   :  { %560 = vmatpush.bf16.msra.mxu2 %v795_v31  ;;  %v27_v62 = vunpack.c.l.bf16 %v22_v57  ;;  %v28_v63 = vunpack.c.h.bf16 %v22_v57 }
  0x1f   :  { %8 = vsyncpa [#allocation4], 0  ;;  %573 = vmatpush.bf16.msra.mxu3 %v859_v35  ;;  %v31_v2 = vunpack.c.l.bf16 %v24_v59  ;;  %v32_v3 = vunpack.c.h.bf16 %v24_v59  ;;  %v33_v4 = vrot.slane %v25_v60, 4  ;;  %v39_v5 = vrot.slane %v26_v61, 4  ;;  %v922_v47 = vld [vmem:[%s1532_s1 + $0x54] sm:$0xf] }
  0x20   :  { %v45_v6 = vrot.slane %v27_v62, 4  ;;  %v51_v7 = vrot.slane %v28_v63, 4  ;;  %v57_v8 = vrot.slane %v29_v0, 4  ;;  %v63_v9 = vrot.slane %v30_v1, 4  ;;  %535 = vmatpush.bf16.msra.mxu0 %v659_v36  ;;  %v700_v40 = vld [vmem:[%s1532_s1 + $0x58] sm:$0xf0] }
  0x21   :  { %v34_v10 = vadd.f32 %v33_v4, %v25_v60  ;;  %v40_v11 = vadd.f32 %v39_v5, %v26_v61  ;;  %v69_v12 = vrot.slane %v31_v2, 4  ;;  %v75_v13 = vrot.slane %v32_v3, 4  ;;  %548 = vmatpush.bf16.msra.mxu1 %v723_v37  ;;  %v954_v52 = vld [vmem:[%s1532_s1 + $0x154] sm:$0xf]  ;;  %v828_v53 = vld [vmem:[%s1532_s1 + $0x158] sm:$0xf0] }
  0x22   :  { %561 = vmatpush.bf16.msra.mxu2 %v787_v41  ;;  %v46_v14 = vadd.f32 %v45_v6, %v27_v62  ;;  %v52_v15 = vadd.f32 %v51_v7, %v28_v63  ;;  %v58_v16 = vadd.f32 %v57_v8, %v29_v0  ;;  %v64_v19 = vadd.f32 %v63_v9, %v30_v1  ;;  %v970_v58 = vld [vmem:[%s1532_s1 + $0x1d4] sm:$0xf]  ;;  %v892_v59 = vld [vmem:[%s1532_s1 + $0x1d8] sm:$0xf0]  ;;  %v920_v63 = vld [vmem:[%s1532_s1 + $0x44] sm:$0xf] }
  0x23   :  { %574 = vmatpush.bf16.msra.mxu3 %v851_v42  ;;  %v35_v17 = vrot.slane %v34_v10, 2  ;;  %v41_v18 = vrot.slane %v40_v11, 2  ;;  %v70_v20 = vadd.f32 %v69_v12, %v31_v2  ;;  %v76_v24 = vadd.f32 %v75_v13, %v32_v3  ;;  %v692_v0 = vld [vmem:[%s1532_s1 + $0x48] sm:$0xf0]  ;;  %v936_v4 = vld [vmem:[%s1532_s1 + $0xc4] sm:$0xf] }
  0x24   :  { %580 = vmatpush.bf16.msrb.mxu0 %v719_v43  ;;  %v47_v21 = vrot.slane %v46_v14, 2  ;;  %v53_v22 = vrot.slane %v52_v15, 2  ;;  %v59_v23 = vrot.slane %v58_v16, 2  ;;  %vm95_vm0 = vcmask 1041408   ;;  %v756_v5 = vld [vmem:[%s1532_s1 + $0xc8] sm:$0xf0] }
  0x25   :  { %593 = vmatpush.bf16.msrb.mxu1 %v783_v44  ;;  %v36_v25 = vadd.f32 %v35_v17, %v34_v10  ;;  %v42_v26 = vadd.f32 %v41_v18, %v40_v11  ;;  %v65_v27 = vrot.slane %v64_v19, 2  ;;  %v71_v28 = vrot.slane %v70_v20, 2  ;;  %v952_v9 = vld [vmem:[%s1532_s1 + $0x144] sm:$0xf]  ;;  %v820_v10 = vld [vmem:[%s1532_s1 + $0x148] sm:$0xf0] }
  0x26   :  { %606 = vmatpush.bf16.msrb.mxu2 %v847_v48  ;;  %v48_v29 = vadd.f32 %v47_v21, %v46_v14  ;;  %v54_v30 = vadd.f32 %v53_v22, %v52_v15  ;;  %v60_v31 = vadd.f32 %v59_v23, %v58_v16  ;;  %v77_v32 = vrot.slane %v76_v24, 2  ;;  %v968_v14 = vld [vmem:[%s1532_s1 + $0x1c4] sm:$0xf]  ;;  %v884_v15 = vld [vmem:[%s1532_s1 + $0x1c8] sm:$0xf0]  ;;  %s647_s6 = sshll.u32 %s1534_s3, 4  ;;  %s648_s6 = int_to_ptr.hbm [resolvable:$true] %s647_s6 }
  0x27   :  { %619 = vmatpush.bf16.msrb.mxu3 %v911_v49  ;;  %v37_v33 = vrot.slane %v36_v25, 1  ;;  %v43_v34 = vrot.slane %v42_v26, 1  ;;  %v66_v35 = vadd.f32 %v65_v27, %v64_v19  ;;  %v72_v36 = vadd.f32 %v71_v28, %v70_v20  ;;  %v918_v20 = vld [vmem:[%s1532_s1 + $0x34] sm:$0xf]  ;;  %v684_v21 = vld [vmem:[%s1532_s1 + $0x38] sm:$0xf0] }
  0x28   :  { %581 = vmatpush.bf16.msrb.mxu0 %v711_v50  ;;  %v49_v37 = vrot.slane %v48_v29, 1  ;;  %v55_v38 = vrot.slane %v54_v30, 1  ;;  %v61_v39 = vrot.slane %v60_v31, 1  ;;  %v78_v41 = vadd.f32 %v77_v32, %v76_v24  ;;  %v938_v50 = vld [vmem:[%s1532_s1 + $0xd4] sm:$0xf] }
  0x29   :  { %594 = vmatpush.bf16.msrb.mxu1 %v775_v51  ;;  %v38_v42 = vadd.f32 %v37_v33, %v36_v25  ;;  %v44_v43 = vadd.f32 %v43_v34, %v42_v26  ;;  %v67_v44 = vrot.slane %v66_v35, 1  ;;  %v73_v46 = vrot.slane %v72_v36, 1  ;;  %v764_v51 = vld [vmem:[%s1532_s1 + $0xd8] sm:$0xf0]  ;;  %v934_v25 = vld [vmem:[%s1532_s1 + $0xb4] sm:$0xf] }
  0x2a   :  { %607 = vmatpush.bf16.msrb.mxu2 %v839_v55  ;;  %v50_v45 = vadd.f32 %v49_v37, %v48_v29  ;;  %v56_v48 = vadd.f32 %v55_v38, %v54_v30  ;;  %v79_v49 = vrot.slane %v78_v41, 1  ;;  %vm97_vm1 = vcmask 1045508   ;;  %v748_v26 = vld [vmem:[%s1532_s1 + $0xb8] sm:$0xf0]  ;;  %v950_v29 = vld [vmem:[%s1532_s1 + $0x134] sm:$0xf] }
  0x2b   :  { %620 = vmatpush.bf16.msrb.mxu3 %v903_v56  ;;  %v62_v54 = vadd.f32 %v61_v39, %v60_v31  ;;  %v68_v55 = vadd.f32 %v67_v44, %v66_v35  ;;  %v74_v56 = vadd.f32 %v73_v46, %v72_v36  ;;  %v89_v57 = vrot.slane %v44_v43, 6  ;;  %v812_v30 = vld [vmem:[%s1532_s1 + $0x138] sm:$0xf0]  ;;  %v966_v31 = vld [vmem:[%s1532_s1 + $0x1b4] sm:$0xf] }
  0x2c   :  { %v80_v60 = vadd.f32 %v79_v49, %v78_v41  ;;  %v90_v61 = vrot.slane %v50_v45, 4  ;;  %v91_v62 = vrot.slane %v56_v48, 2  ;;  %vm99_vm2 = vcmask 1043456   ;;  %v876_v32 = vld [vmem:[%s1532_s1 + $0x1b8] sm:$0xf0] }
  0x2d   :  { %v92_v1 = vrot.slane %v68_v55, 6  ;;  %v93_v2 = vrot.slane %v74_v56, 4  ;;  %v96_v3 = vsel %vm95_vm0, %v38_v42, %v89_v57  ;;  %v703_v8 = vor.u32 %v922_v47, %v700_v40  ;;  %v916_v38 = vld [vmem:[%s1532_s1 + $0x24] sm:$0xf]  ;;  %v676_v39 = vld [vmem:[%s1532_s1 + $0x28] sm:$0xf0] }
  0x2e   :  { %v94_v6 = vrot.slane %v80_v60, 2  ;;  %v98_v7 = vsel %vm97_vm1, %v90_v61, %v91_v62  ;;  %v767_v12 = vor.u32 %v938_v50, %v764_v51  ;;  %v831_v13 = vor.u32 %v954_v52, %v828_v53  ;;  %v932_v41 = vld [vmem:[%s1532_s1 + $0xa4] sm:$0xf]  ;;  %v740_v44 = vld [vmem:[%s1532_s1 + $0xa8] sm:$0xf0] }
  0x2f   :  { %v101_v11 = vsel %vm95_vm0, %v62_v54, %v92_v1  ;;  %v100_v16 = vsel %vm99_vm2, %v96_v3, %v98_v7  ;;  %582 = vmatpush.bf16.msrb.mxu0 %v703_v8  ;;  %v895_v18 = vor.u32 %v970_v58, %v892_v59  ;;  %v695_v19 = vor.u32 %v920_v63, %v692_v0  ;;  %v948_v46 = vld [vmem:[%s1532_s1 + $0x124] sm:$0xf]  ;;  %v804_v47 = vld [vmem:[%s1532_s1 + $0x128] sm:$0xf0]  ;;  %v914_v52 = vld [vmem:[%s1532_s1 + $0x14] sm:$0xf] }
  0x30   :  { %v102_v17 = vsel %vm97_vm1, %v93_v2, %v94_v6  ;;  %vm109_vm3 = vcmask 1041409   ;;  %595 = vmatpush.bf16.msrb.mxu1 %v767_v12  ;;  %608 = vmatpush.bf16.msrb.mxu2 %v831_v13  ;;  %v759_v23 = vor.u32 %v936_v4, %v756_v5  ;;  %v823_v24 = vor.u32 %v952_v9, %v820_v10  ;;  %v964_v45 = vld [vmem:[%s1532_s1 + $0x1a4] sm:$0xf]  ;;  %v868_v48 = vld [vmem:[%s1532_s1 + $0x1a8] sm:$0xf0] }
  0x31   :  { %v103_v22 = vsel %vm99_vm2, %v101_v11, %v102_v17  ;;  %vm111_vm4 = vcmask 1043459   ;;  %621 = vmatpush.bf16.msrb.mxu3 %v895_v18  ;;  %v887_v28 = vor.u32 %v968_v14, %v884_v15  ;;  %vm113_vm5 = vcmask 1045509   ;;  %v668_v53 = vld [vmem:[%s1532_s1 + $0x18] sm:$0xf0]  ;;  %v930_v54 = vld [vmem:[%s1532_s1 + $0x94] sm:$0xf] }
  0x32   :  { %v108_v27 = vrot.slane %v103_v22, 7  ;;  %vm115_vm6 = vcmask 1047559   ;;  %v687_v34 = vor.u32 %v918_v20, %v684_v21  ;;  %v751_v36 = vor.u32 %v934_v25, %v748_v26  ;;  %v732_v56 = vld [vmem:[%s1532_s1 + $0x98] sm:$0xf0]  ;;  %v946_v57 = vld [vmem:[%s1532_s1 + $0x114] sm:$0xf] }
  0x33   :  { %583 = vmatpush.bf16.msrb.mxu0 %v695_v19  ;;  %v815_v37 = vor.u32 %v950_v29, %v812_v30  ;;  %v879_v43 = vor.u32 %v966_v31, %v876_v32  ;;  %v679_v49 = vor.u32 %v916_v38, %v676_v39  ;;  %v743_v50 = vor.u32 %v932_v41, %v740_v44  ;;  %v796_v58 = vld [vmem:[%s1532_s1 + $0x118] sm:$0xf0]  ;;  %v962_v60 = vld [vmem:[%s1532_s1 + $0x194] sm:$0xf]  ;;  %v912_v62 = vld [vmem:[%s1532_s1 + $0x4] sm:$0xf] }
  0x34   :  { %v110_v33 = vsel %vm109_vm3, %v108_v27, %v100_v16  ;;  %596 = vmatpush.bf16.msrb.mxu1 %v759_v23  ;;  %609 = vmatpush.bf16.msrb.mxu2 %v823_v24  ;;  %v807_v51 = vor.u32 %v948_v46, %v804_v47  ;;  %v871_v55 = vor.u32 %v964_v45, %v868_v48  ;;  %v860_v61 = vld [vmem:[%s1532_s1 + $0x198] sm:$0xf0]  ;;  %v660_v1 = vld [vmem:[%s1532_s1 + $0x8] sm:$0xf0]  ;;  %v928_v2 = vld [vmem:[%s1532_s1 + $0x84] sm:$0xf] }
  0x35   :  { %v112_v35 = vsel %vm111_vm4, %v108_v27, %v110_v33  ;;  %622 = vmatpush.bf16.msrb.mxu3 %v887_v28  ;;  %v671_v59 = vor.u32 %v914_v52, %v668_v53  ;;  %v735_v63 = vor.u32 %v930_v54, %v732_v56  ;;  %v799_v0 = vor.u32 %v946_v57, %v796_v58  ;;  %v724_v3 = vld [vmem:[%s1532_s1 + $0x88] sm:$0xf0]  ;;  %v944_v4 = vld [vmem:[%s1532_s1 + $0x104] sm:$0xf]  ;;  %v202_v23 = vld [vmem:[%s1533_s2] sm:$0x3] }
  0x36   :  { %v114_v42 = vsel %vm113_vm5, %v108_v27, %v112_v35  ;;  %v788_v5 = vld [vmem:[%s1532_s1 + $0x108] sm:$0xf0]  ;;  %v863_v8 = vor.u32 %v962_v60, %v860_v61  ;;  %v663_v13 = vor.u32 %v912_v62, %v660_v1  ;;  %v727_v14 = vor.u32 %v928_v2, %v724_v3  ;;  %v960_v18 = vld [vmem:[%s1532_s1 + $0x184] sm:$0xf] }
  0x37   :  { %v116_v40 = vsel %vm115_vm6, %v108_v27, %v114_v42  ;;  %584 = vmatpush.bf16.msrb.mxu0 %v687_v34  ;;  %v791_v17 = vor.u32 %v944_v4, %v788_v5  ;;  %v852_v19 = vld [vmem:[%s1532_s1 + $0x188] sm:$0xf0]  ;;  %v204_v27 = vperm.slane %v202_v23, 0  ;;  %v205_v30 = vperm.slane %v202_v23, 1  ;;  %s1003_s1 = smov [#allocation3]  }
  0x38   :  { %125 = vst [vmem:[#allocation1] ss:$4 sm:$0xff] %v116_v40  ;;  %597 = vmatpush.bf16.msrb.mxu1 %v751_v36  ;;  %610 = vmatpush.bf16.msrb.mxu2 %v815_v37  ;;  %v855_v20 = vor.u32 %v960_v18, %v852_v19  ;;  %s645_s2 = sshll.u32 %s1003_s1, 4  ;;  %s646_s2 = int_to_ptr.vmem [resolvable:$true] %s645_s2 }
  0x39   :  { %623 = vmatpush.bf16.msrb.mxu3 %v879_v43 }
  0x3b   :  { %585 = vmatpush.bf16.msrb.mxu0 %v679_v49 }
  0x3c   :  { %598 = vmatpush.bf16.msrb.mxu1 %v743_v50  ;;  %611 = vmatpush.bf16.msrb.mxu2 %v807_v51 }
  0x3d   :  { %624 = vmatpush.bf16.msrb.mxu3 %v871_v55 }
  0x3f   :  { %v128_v6 = vld.sshfl [vmem:[#allocation1 + $0x10] sm:$0xff pattern:$0x73625140]  ;;  %v126_v7 = vld.sshfl [vmem:[#allocation1] sm:$0xff pattern:$0x73625140]  ;;  %586 = vmatpush.bf16.msrb.mxu0 %v671_v59 }
  0x40   :  { %v136_v9 = vpack.c.bf16 %v128_v6, %v128_v6  ;;  %v134_v10 = vpack.c.bf16 %v126_v7, %v126_v7  ;;  %v129_v11 = vld.sshfl [vmem:[#allocation1 + $0x18] sm:$0xff pattern:$0x73625140]  ;;  %v127_v12 = vld.sshfl [vmem:[#allocation1 + $0x8] sm:$0xff pattern:$0x73625140]  ;;  %599 = vmatpush.bf16.msrb.mxu1 %v735_v63  ;;  %612 = vmatpush.bf16.msrb.mxu2 %v799_v0 }
  0x41   :  { %v137_v15 = vpack.c.bf16 %v129_v11, %v129_v11  ;;  %v135_v16 = vpack.c.bf16 %v127_v12, %v127_v12  ;;  %625 = vmatpush.bf16.msrb.mxu3 %v863_v8 }
  0x42   :  { %562 = vmatmul.bf16.vlgmr.msra.gmra.mxu2 %v136_v9  ;;  %536 = vmatmul.bf16.vlgmr.msra.gmra.mxu0 %v134_v10 }
  0x43   :  { %575 = vmatmul.bf16.vlgmr.msra.gmra.mxu3 %v137_v15  ;;  %549 = vmatmul.bf16.vlgmr.msra.gmra.mxu1 %v135_v16 }
  0x44   :  { %587 = vmatpush.bf16.msrb.mxu0 %v663_v13  ;;  %600 = vmatpush.bf16.msrb.mxu1 %v727_v14 }
  0x45   :  { %613 = vmatpush.bf16.msrb.mxu2 %v791_v17  ;;  %626 = vmatpush.bf16.msrb.mxu3 %v855_v20 }
  0x52   :  { %588 = vmatmul.bf16.vlgmr.msrb.gmra.mxu0 %v134_v10  ;;  %614 = vmatmul.bf16.vlgmr.msrb.gmra.mxu2 %v136_v9 }
  0x53   :  { %601 = vmatmul.bf16.vlgmr.msrb.gmra.mxu1 %v135_v16  ;;  %627 = vmatmul.bf16.vlgmr.msrb.gmra.mxu3 %v137_v15 }
  0xbf   :  { %v537_v21 = vpop.f32.mrf.mxu0 }
  0xc0   :  { %v550_v22 = vpop.f32.mrf.mxu1  ;;  %v538_v29 = vadd.f32 %v537_v21, %v204_v27 }
  0xc2   :  { %v551_v34 = vadd.f32 %v550_v22, %v538_v29 }
  0xc5   :  { %v563_v24 = vpop.f32.mrf.mxu2 }
  0xc6   :  { %v576_v25 = vpop.f32.mrf.mxu3  ;;  %v564_v38 = vadd.f32 %v563_v24, %v551_v34 }
  0xc7   :  { %v539_v26 = vpop.f32.mrf.mxu0 }
  0xc8   :  { %v552_v28 = vpop.f32.mrf.mxu1  ;;  %v577_v44 = vadd.f32 %v576_v25, %v564_v38 }
  0xca   :  { %v632_v45 = vmax.f32 %v577_v44, 0.0 }
  0xcd   :  { %v565_v31 = vpop.f32.mrf.mxu2 }
  0xce   :  { %v578_v32 = vpop.f32.mrf.mxu3 }
  0xcf   :  { %v589_v33 = vpop.f32.mrf.mxu0 }
  0xd0   :  { %v590_v35 = vadd.f32 %v589_v33, %v205_v30  ;;  %v602_v36 = vpop.f32.mrf.mxu1 }
  0xd2   :  { %v603_v37 = vadd.f32 %v602_v36, %v590_v35 }
  0xd5   :  { %v615_v39 = vpop.f32.mrf.mxu2 }
  0xd6   :  { %v616_v41 = vadd.f32 %v615_v39, %v603_v37  ;;  %v628_v42 = vpop.f32.mrf.mxu3 }
  0xd7   :  { %v591_v43 = vpop.f32.mrf.mxu0 }
  0xd8   :  { %v629_v46 = vadd.f32 %v628_v42, %v616_v41  ;;  %v604_v47 = vpop.f32.mrf.mxu1 }
  0xda   :  { %v633_v40 = vmax.f32 %v629_v46, 0.0 }
  0xdc   :  { %v636_v48 = vrot.slane %v633_v40, 6 }
  0xdd   :  { %v617_v49 = vpop.f32.mrf.mxu2 }
  0xde   :  { %v630_v50 = vpop.f32.mrf.mxu3  ;;  %v637_v51 = vsel %vm95_vm0, %v632_v45, %v636_v48 }
  0xdf   :  { %639 = vst [vmem:[#allocation3] sm:$0xf] %v637_v51 }
  0xe0   :  { %650 = dma.vmem_to_hbm [thread:$0]  %s646_s2, 64, %s648_s6, [#allocation4]  }
  0xe1   :  { %1001 = dma.done.wait [#allocation4], 64  }
  0xe2   :  { %1002 = vsyncadd [#allocation4], 4294967232 }
  0xe3   :  { %655 = vsyncpa [#allocation4], 1 }

// kernel: gaussian_feature_encoder.8
= control target key start
LH: loop header
LB: loop body
LE: loop exit
PB: predicated region body
PF: predicated region fallthrough
CT: control target
= control target key end

     0   :  { %s4202_s12 = smov 0   ;;  %s4204_s13 = smov 0   ;;  %s4928_s0 = inlined_call_operand.vmem [shape: bf16[8,2304], index: 0, kind: input, shape index: {}]   ;;  %s4929_s1 = inlined_call_operand.vmem [shape: bf16[2304,512], index: 1, kind: input, shape index: {}]   ;;  %s4930_s2 = inlined_call_operand.vmem [shape: f32[1,512], index: 2, kind: input, shape index: {}]   ;;  %s4931_s3 = inlined_call_operand.vmem [shape: bf16[8,512], index: 3, kind: output, shape index: {}]  }
   0x1   :  { %s4206_s14 = smov 0  }
   0x2 LB: > { %s25_s15 = sadd.s32 1, %s4175_s13  ;;  %p2681_p0 = scmp.ge.s32.totalorder %s4179_s14, 1  ;;  %s4179_s14 = sphi %s4206_s14, %s13_s14   ;;  %s4175_s13 = sphi %s4204_s13, %s4933_s13   ;;  %s4171_s12 = sphi %s4202_s12, %s4932_s12  }
   0x3   : > { %p26_p1 = scmp.ge.s32.totalorder %s25_s15, 2  ;;  %p194_p2 = scmp.lt.s32.totalorder %s4179_s14, 3 }
   0x5   : > { %s4935_s15 = smov (%p26_p1, %s25_s15), 0  ;;  %p195_p3 = pnand %p2681_p0, %p194_p2 }
   0x6   : > { %s240_s16 = smul.u32 (!%p195_p3), 9, %s4171_s12  ;;  %p2685_p6 = scmp.ne.s32.totalorder (!%p195_p3), %s4171_s12, 0 }
   0x7   : > { %198 = sbr.rel (%p195_p3) target bundleno = 471 (0x1d7), region = 32 }
   0x8   : > { %s250_s17 = smul.u32 (!%p195_p3), 144, %s4171_s12  ;;  %p243_p4 = scmp.lt.s32.totalorder (!%p195_p3), %s240_s16, 17 }
   0xa   : > { %p252_p5 = scmp.lt.s32.totalorder (!%p195_p3), %s250_s17, 287 }
   0xc   : > { %s4937_s16 = smov (!%p243_p4, %s240_s16), 17  ;;  %s4939_s17 = smov (!%p252_p5, %s250_s17), 287 }
   0xd   : > { %s2682_s18 = sshll.u32 %s4937_s16, 2  ;;  %s3843_s22 = sshll.u32 %s4939_s17, 4 }
   0xe   : > { %s4227_s21 = scalar_lea.vmem %s4928_s0, %s2682_s18  ;;  %s4232_s25 = scalar_lea.vmem %s4929_s1, %s3843_s22 }
   0xf   : > { %280 = sbr.rel (%p2685_p6) target bundleno = 25 (0x19), region = 36 }
  0x14   : > { %v4181_v0 = vmov 0.0  }
  0x15   : > { %281 = vst [vmem:[#allocation2 + $0x10] sm:$0xff] %v4181_v0 }
  0x16   : > { %282 = vst [vmem:[#allocation2] sm:$0xff] %v4181_v0 }
  0x17   : > { %283 = vst [vmem:[#allocation2 + $0x18] sm:$0xff] %v4181_v0 }
  0x18   : > { %284 = vst [vmem:[#allocation2 + $0x8] sm:$0xff] %v4181_v0 }
  0x19 PF: > { %v2800_v1 = vld [vmem:[%s4232_s25 + $0xe0] sm:$0xf]  ;;  %v3874_v2 = vld [vmem:[%s4232_s25 + $0xec] sm:$0xf0]  ;;  %p3838_p7 = scmp.ne.s32.totalorder %s4171_s12, 1 }
  0x1a   : > { %v2928_v3 = vld [vmem:[%s4232_s25 + $0x1e0] sm:$0xf]  ;;  %v2801_v4 = vor.u32 %v3874_v2, %v2800_v1  ;;  %v3906_v5 = vld [vmem:[%s4232_s25 + $0x1ec] sm:$0xf0] }
  0x1b   : > { %v3056_v6 = vld [vmem:[%s4232_s25 + $0x2e0] sm:$0xf]  ;;  %v3938_v7 = vld [vmem:[%s4232_s25 + $0x2ec] sm:$0xf0]  ;;  %v2929_v8 = vor.u32 %v3906_v5, %v2928_v3 }
  0x1c   : > { %v3057_v9 = vor.u32 %v3938_v7, %v3056_v6  ;;  %v3184_v10 = vld [vmem:[%s4232_s25 + $0x3e0] sm:$0xf]  ;;  %v3970_v11 = vld [vmem:[%s4232_s25 + $0x3ec] sm:$0xf0]  ;;  %2054 = vmatpush.bf16.msra.mxu0 %v2801_v4 }
  0x1d   : > { %v2784_v12 = vld [vmem:[%s4232_s25 + $0xc0] sm:$0xf]  ;;  %v3185_v13 = vor.u32 %v3970_v11, %v3184_v10  ;;  %v3870_v14 = vld [vmem:[%s4232_s25 + $0xcc] sm:$0xf0]  ;;  %2067 = vmatpush.bf16.msra.mxu1 %v2929_v8 }
  0x1e   : > { %v2912_v15 = vld [vmem:[%s4232_s25 + $0x1c0] sm:$0xf]  ;;  %v3902_v16 = vld [vmem:[%s4232_s25 + $0x1cc] sm:$0xf0]  ;;  %2080 = vmatpush.bf16.msra.mxu2 %v3057_v9  ;;  %v2785_v17 = vor.u32 %v3870_v14, %v2784_v12 }
  0x1f   : > { %v2913_v18 = vor.u32 %v3902_v16, %v2912_v15  ;;  %v3040_v19 = vld [vmem:[%s4232_s25 + $0x2c0] sm:$0xf]  ;;  %v3934_v20 = vld [vmem:[%s4232_s25 + $0x2cc] sm:$0xf0]  ;;  %2093 = vmatpush.bf16.msra.mxu3 %v3185_v13 }
  0x20   : > { %v3168_v21 = vld [vmem:[%s4232_s25 + $0x3c0] sm:$0xf]  ;;  %v3041_v22 = vor.u32 %v3934_v20, %v3040_v19  ;;  %v3966_v23 = vld [vmem:[%s4232_s25 + $0x3cc] sm:$0xf0]  ;;  %2055 = vmatpush.bf16.msra.mxu0 %v2785_v17 }
  0x21   : > { %v2768_v24 = vld [vmem:[%s4232_s25 + $0xa0] sm:$0xf]  ;;  %v3866_v25 = vld [vmem:[%s4232_s25 + $0xac] sm:$0xf0]  ;;  %v3169_v26 = vor.u32 %v3966_v23, %v3168_v21  ;;  %2068 = vmatpush.bf16.msra.mxu1 %v2913_v18 }
  0x22   : > { %v2896_v27 = vld [vmem:[%s4232_s25 + $0x1a0] sm:$0xf]  ;;  %v3898_v28 = vld [vmem:[%s4232_s25 + $0x1ac] sm:$0xf0]  ;;  %v2769_v30 = vor.u32 %v3866_v25, %v2768_v24  ;;  %2081 = vmatpush.bf16.msra.mxu2 %v3041_v22 }
  0x23   : > { %v3024_v29 = vld [vmem:[%s4232_s25 + $0x2a0] sm:$0xf]  ;;  %v3930_v31 = vld [vmem:[%s4232_s25 + $0x2ac] sm:$0xf0]  ;;  %v2897_v34 = vor.u32 %v3898_v28, %v2896_v27  ;;  %2094 = vmatpush.bf16.msra.mxu3 %v3169_v26 }
  0x24   : > { %v3152_v32 = vld [vmem:[%s4232_s25 + $0x3a0] sm:$0xf]  ;;  %v3962_v33 = vld [vmem:[%s4232_s25 + $0x3ac] sm:$0xf0]  ;;  %v3025_v35 = vor.u32 %v3930_v31, %v3024_v29  ;;  %2056 = vmatpush.bf16.msra.mxu0 %v2769_v30 }
  0x25   : > { %v2752_v36 = vld [vmem:[%s4232_s25 + $0x80] sm:$0xf]  ;;  %v3862_v37 = vld [vmem:[%s4232_s25 + $0x8c] sm:$0xf0]  ;;  %v3153_v39 = vor.u32 %v3962_v33, %v3152_v32  ;;  %2069 = vmatpush.bf16.msra.mxu1 %v2897_v34 }
  0x26   : > { %v2880_v38 = vld [vmem:[%s4232_s25 + $0x180] sm:$0xf]  ;;  %v3894_v40 = vld [vmem:[%s4232_s25 + $0x18c] sm:$0xf0]  ;;  %v2753_v45 = vor.u32 %v3862_v37, %v2752_v36  ;;  %2082 = vmatpush.bf16.msra.mxu2 %v3025_v35 }
  0x27   : > { %v3008_v41 = vld [vmem:[%s4232_s25 + $0x280] sm:$0xf]  ;;  %v3926_v42 = vld [vmem:[%s4232_s25 + $0x28c] sm:$0xf0]  ;;  %v2881_v46 = vor.u32 %v3894_v40, %v2880_v38  ;;  %2095 = vmatpush.bf16.msra.mxu3 %v3153_v39 }
  0x28   : > { %v3136_v43 = vld [vmem:[%s4232_s25 + $0x380] sm:$0xf]  ;;  %v3958_v44 = vld [vmem:[%s4232_s25 + $0x38c] sm:$0xf0]  ;;  %v3009_v47 = vor.u32 %v3926_v42, %v3008_v41  ;;  %2057 = vmatpush.bf16.msra.mxu0 %v2753_v45 }
  0x29   : > { %v2736_v48 = vld [vmem:[%s4232_s25 + $0x60] sm:$0xf]  ;;  %v3858_v49 = vld [vmem:[%s4232_s25 + $0x6c] sm:$0xf0]  ;;  %v3137_v51 = vor.u32 %v3958_v44, %v3136_v43  ;;  %2070 = vmatpush.bf16.msra.mxu1 %v2881_v46 }
  0x2a   : > { %v2864_v50 = vld [vmem:[%s4232_s25 + $0x160] sm:$0xf]  ;;  %v3890_v52 = vld [vmem:[%s4232_s25 + $0x16c] sm:$0xf0]  ;;  %v2737_v57 = vor.u32 %v3858_v49, %v2736_v48  ;;  %2083 = vmatpush.bf16.msra.mxu2 %v3009_v47 }
  0x2b   : > { %v2992_v53 = vld [vmem:[%s4232_s25 + $0x260] sm:$0xf]  ;;  %v3922_v54 = vld [vmem:[%s4232_s25 + $0x26c] sm:$0xf0]  ;;  %v2865_v58 = vor.u32 %v3890_v52, %v2864_v50  ;;  %2096 = vmatpush.bf16.msra.mxu3 %v3137_v51 }
  0x2c   : > { %v3120_v55 = vld [vmem:[%s4232_s25 + $0x360] sm:$0xf]  ;;  %v3954_v56 = vld [vmem:[%s4232_s25 + $0x36c] sm:$0xf0]  ;;  %v2993_v59 = vor.u32 %v3922_v54, %v2992_v53  ;;  %2058 = vmatpush.bf16.msra.mxu0 %v2737_v57 }
  0x2d   : > { %v2720_v60 = vld [vmem:[%s4232_s25 + $0x40] sm:$0xf]  ;;  %v3854_v61 = vld [vmem:[%s4232_s25 + $0x4c] sm:$0xf0]  ;;  %v3121_v63 = vor.u32 %v3954_v56, %v3120_v55  ;;  %2071 = vmatpush.bf16.msra.mxu1 %v2865_v58 }
  0x2e   : > { %v2848_v62 = vld [vmem:[%s4232_s25 + $0x140] sm:$0xf]  ;;  %v3886_v0 = vld [vmem:[%s4232_s25 + $0x14c] sm:$0xf0]  ;;  %v2721_v5 = vor.u32 %v3854_v61, %v2720_v60  ;;  %2084 = vmatpush.bf16.msra.mxu2 %v2993_v59  ;;  %v290_v59 = vld [vmem:[%s4227_s21 + $0x8] sm:$0xff] }
  0x2f   : > { %v2976_v1 = vld [vmem:[%s4232_s25 + $0x240] sm:$0xf]  ;;  %v3918_v2 = vld [vmem:[%s4232_s25 + $0x24c] sm:$0xf0]  ;;  %v2849_v6 = vor.u32 %v3886_v0, %v2848_v62  ;;  %2097 = vmatpush.bf16.msra.mxu3 %v3121_v63  ;;  %v589_v0 = vunpack.c.l.b16 %v290_v59 }
  0x30   : > { %v3104_v3 = vld [vmem:[%s4232_s25 + $0x340] sm:$0xf]  ;;  %v3950_v4 = vld [vmem:[%s4232_s25 + $0x34c] sm:$0xf0]  ;;  %v2977_v7 = vor.u32 %v3918_v2, %v2976_v1  ;;  %2059 = vmatpush.bf16.msra.mxu0 %v2721_v5  ;;  %v590_v1 = vunpack.c.h.b16 %v290_v59 }
  0x31   : > { %v2704_v8 = vld [vmem:[%s4232_s25 + $0x20] sm:$0xf]  ;;  %v3850_v9 = vld [vmem:[%s4232_s25 + $0x2c] sm:$0xf0]  ;;  %v3105_v11 = vor.u32 %v3950_v4, %v3104_v3  ;;  %2072 = vmatpush.bf16.msra.mxu1 %v2849_v6  ;;  %v4324_v5 = vpack.c.b16 %v589_v0, %v589_v0 }
  0x32   : > { %v2832_v10 = vld [vmem:[%s4232_s25 + $0x120] sm:$0xf]  ;;  %v3882_v12 = vld [vmem:[%s4232_s25 + $0x12c] sm:$0xf0]  ;;  %v2705_v17 = vor.u32 %v3850_v9, %v2704_v8  ;;  %2085 = vmatpush.bf16.msra.mxu2 %v2977_v7  ;;  %v4327_v7 = vpack.c.b16 %v590_v1, %v590_v1 }
  0x33   : > { %v2960_v13 = vld [vmem:[%s4232_s25 + $0x220] sm:$0xf]  ;;  %v3914_v14 = vld [vmem:[%s4232_s25 + $0x22c] sm:$0xf0]  ;;  %v2833_v20 = vor.u32 %v3882_v12, %v2832_v10  ;;  %2098 = vmatpush.bf16.msra.mxu3 %v3105_v11 }
  0x34   : > { %v3088_v15 = vld [vmem:[%s4232_s25 + $0x320] sm:$0xf]  ;;  %v3946_v16 = vld [vmem:[%s4232_s25 + $0x32c] sm:$0xf0]  ;;  %v2961_v21 = vor.u32 %v3914_v14, %v2960_v13  ;;  %2060 = vmatpush.bf16.msra.mxu0 %v2705_v17 }
  0x35   : > { %v2688_v18 = vld [vmem:[%s4232_s25] sm:$0xf]  ;;  %v3846_v19 = vld [vmem:[%s4232_s25 + $0xc] sm:$0xf0]  ;;  %v3089_v25 = vor.u32 %v3946_v16, %v3088_v15  ;;  %2073 = vmatpush.bf16.msra.mxu1 %v2833_v20 }
  0x36   : > { %v2816_v22 = vld [vmem:[%s4232_s25 + $0x100] sm:$0xf]  ;;  %v3878_v23 = vld [vmem:[%s4232_s25 + $0x10c] sm:$0xf0]  ;;  %v2689_v32 = vor.u32 %v3846_v19, %v2688_v18  ;;  %2086 = vmatpush.bf16.msra.mxu2 %v2961_v21 }
  0x37   : > { %v2944_v24 = vld [vmem:[%s4232_s25 + $0x200] sm:$0xf]  ;;  %v3910_v26 = vld [vmem:[%s4232_s25 + $0x20c] sm:$0xf0]  ;;  %v2817_v36 = vor.u32 %v3878_v23, %v2816_v22  ;;  %2099 = vmatpush.bf16.msra.mxu3 %v3089_v25 }
  0x38   : > { %v3072_v27 = vld [vmem:[%s4232_s25 + $0x300] sm:$0xf]  ;;  %v3942_v28 = vld [vmem:[%s4232_s25 + $0x30c] sm:$0xf0]  ;;  %v2945_v37 = vor.u32 %v3910_v26, %v2944_v24  ;;  %2061 = vmatpush.bf16.msra.mxu0 %v2689_v32 }
  0x39   : > { %v3312_v29 = vld [vmem:[%s4232_s25 + $0x4e0] sm:$0xf]  ;;  %v4002_v30 = vld [vmem:[%s4232_s25 + $0x4ec] sm:$0xf0]  ;;  %v3073_v40 = vor.u32 %v3942_v28, %v3072_v27  ;;  %2074 = vmatpush.bf16.msra.mxu1 %v2817_v36 }
  0x3a   : > { %v3440_v31 = vld [vmem:[%s4232_s25 + $0x5e0] sm:$0xf]  ;;  %v4034_v33 = vld [vmem:[%s4232_s25 + $0x5ec] sm:$0xf0]  ;;  %v3313_v41 = vor.u32 %v4002_v30, %v3312_v29  ;;  %2087 = vmatpush.bf16.msra.mxu2 %v2945_v37 }
  0x3b   : > { %v3568_v34 = vld [vmem:[%s4232_s25 + $0x6e0] sm:$0xf]  ;;  %v4066_v35 = vld [vmem:[%s4232_s25 + $0x6ec] sm:$0xf0]  ;;  %v3441_v42 = vor.u32 %v4034_v33, %v3440_v31  ;;  %2100 = vmatpush.bf16.msra.mxu3 %v3073_v40 }
  0x3c   : > { %v3696_v38 = vld [vmem:[%s4232_s25 + $0x7e0] sm:$0xf]  ;;  %v4098_v39 = vld [vmem:[%s4232_s25 + $0x7ec] sm:$0xf0]  ;;  %v3569_v43 = vor.u32 %v4066_v35, %v3568_v34  ;;  %2106 = vmatpush.bf16.msrb.mxu0 %v3313_v41 }
  0x3d   : > { %v3296_v44 = vld [vmem:[%s4232_s25 + $0x4c0] sm:$0xf]  ;;  %v3998_v45 = vld [vmem:[%s4232_s25 + $0x4cc] sm:$0xf0]  ;;  %v3697_v47 = vor.u32 %v4098_v39, %v3696_v38  ;;  %2119 = vmatpush.bf16.msrb.mxu1 %v3441_v42  ;;  %2088 = vmatmul.bf16.vlgmr.msra.gmra.mxu2 %v4324_v5 }
  0x3e   : > { %v3424_v46 = vld [vmem:[%s4232_s25 + $0x5c0] sm:$0xf]  ;;  %v4030_v48 = vld [vmem:[%s4232_s25 + $0x5cc] sm:$0xf0]  ;;  %v3297_v53 = vor.u32 %v3998_v45, %v3296_v44  ;;  %2132 = vmatpush.bf16.msrb.mxu2 %v3569_v43  ;;  %2101 = vmatmul.bf16.vlgmr.msra.gmra.mxu3 %v4327_v7 }
  0x3f   : > { %v3552_v49 = vld [vmem:[%s4232_s25 + $0x6c0] sm:$0xf]  ;;  %v4062_v50 = vld [vmem:[%s4232_s25 + $0x6cc] sm:$0xf0]  ;;  %v3425_v55 = vor.u32 %v4030_v48, %v3424_v46  ;;  %2145 = vmatpush.bf16.msrb.mxu3 %v3697_v47 }
  0x40   : > { %v3680_v51 = vld [vmem:[%s4232_s25 + $0x7c0] sm:$0xf]  ;;  %v4094_v52 = vld [vmem:[%s4232_s25 + $0x7cc] sm:$0xf0]  ;;  %v3553_v56 = vor.u32 %v4062_v50, %v3552_v49  ;;  %2107 = vmatpush.bf16.msrb.mxu0 %v3297_v53 }
  0x41   : > { %v3280_v54 = vld [vmem:[%s4232_s25 + $0x4a0] sm:$0xf]  ;;  %v3994_v57 = vld [vmem:[%s4232_s25 + $0x4ac] sm:$0xf0]  ;;  %v3681_v60 = vor.u32 %v4094_v52, %v3680_v51  ;;  %2120 = vmatpush.bf16.msrb.mxu1 %v3425_v55 }
  0x42   : > { %v3408_v58 = vld [vmem:[%s4232_s25 + $0x5a0] sm:$0xf]  ;;  %v4026_v61 = vld [vmem:[%s4232_s25 + $0x5ac] sm:$0xf0]  ;;  %v3281_v4 = vor.u32 %v3994_v57, %v3280_v54  ;;  %2133 = vmatpush.bf16.msrb.mxu2 %v3553_v56 }
  0x43   : > { %v3536_v62 = vld [vmem:[%s4232_s25 + $0x6a0] sm:$0xf]  ;;  %v4058_v63 = vld [vmem:[%s4232_s25 + $0x6ac] sm:$0xf0]  ;;  %v3409_v8 = vor.u32 %v4026_v61, %v3408_v58  ;;  %2146 = vmatpush.bf16.msrb.mxu3 %v3681_v60 }
  0x44   : > { %v3664_v2 = vld [vmem:[%s4232_s25 + $0x7a0] sm:$0xf]  ;;  %v4090_v3 = vld [vmem:[%s4232_s25 + $0x7ac] sm:$0xf0]  ;;  %v3537_v9 = vor.u32 %v4058_v63, %v3536_v62  ;;  %2108 = vmatpush.bf16.msrb.mxu0 %v3281_v4  ;;  %v292_v4 = vld [vmem:[%s4227_s21 + $0x18] sm:$0xff] }
  0x45   : > { %v289_v6 = vld [vmem:[%s4227_s21] sm:$0xff]  ;;  %v3990_v11 = vld [vmem:[%s4232_s25 + $0x48c] sm:$0xf0]  ;;  %v3665_v15 = vor.u32 %v4090_v3, %v3664_v2  ;;  %2121 = vmatpush.bf16.msrb.mxu1 %v3409_v8 }
  0x46   : > { %v3264_v10 = vld [vmem:[%s4232_s25 + $0x480] sm:$0xf]  ;;  %v587_v13 = vunpack.c.l.b16 %v289_v6  ;;  %v588_v14 = vunpack.c.h.b16 %v289_v6  ;;  %v4022_v16 = vld [vmem:[%s4232_s25 + $0x58c] sm:$0xf0]  ;;  %2134 = vmatpush.bf16.msrb.mxu2 %v3537_v9 }
  0x47   : > { %v3392_v12 = vld [vmem:[%s4232_s25 + $0x580] sm:$0xf]  ;;  %v4054_v18 = vld [vmem:[%s4232_s25 + $0x68c] sm:$0xf0]  ;;  %v3265_v23 = vor.u32 %v3990_v11, %v3264_v10  ;;  %2147 = vmatpush.bf16.msrb.mxu3 %v3665_v15  ;;  %v2802_v15 = vld [vmem:[%s4232_s25 + $0xf0] sm:$0xf0] }
  0x48   : > { %v3520_v17 = vld [vmem:[%s4232_s25 + $0x680] sm:$0xf]  ;;  %v4086_v20 = vld [vmem:[%s4232_s25 + $0x78c] sm:$0xf0]  ;;  %v4338_v21 = vpack.c.b16 %v587_v13, %v587_v13  ;;  %v4341_v22 = vpack.c.b16 %v588_v14, %v588_v14  ;;  %v3393_v24 = vor.u32 %v4022_v16, %v3392_v12  ;;  %v3872_v13 = vld [vmem:[%s4232_s25 + $0xe4] sm:$0xf] }
  0x49   : > { %v3648_v19 = vld [vmem:[%s4232_s25 + $0x780] sm:$0xf]  ;;  %v3521_v25 = vor.u32 %v4054_v18, %v3520_v17  ;;  %v3986_v27 = vld [vmem:[%s4232_s25 + $0x46c] sm:$0xf0]  ;;  %2109 = vmatpush.bf16.msrb.mxu0 %v3265_v23  ;;  %v3904_v16 = vld [vmem:[%s4232_s25 + $0x1e4] sm:$0xf]  ;;  %v593_v18 = vunpack.c.l.b16 %v292_v4 }
  0x4a   : > { %v3248_v26 = vld [vmem:[%s4232_s25 + $0x460] sm:$0xf]  ;;  %v3649_v29 = vor.u32 %v4086_v20, %v3648_v19  ;;  %v4018_v30 = vld [vmem:[%s4232_s25 + $0x56c] sm:$0xf0]  ;;  %2062 = vmatmul.bf16.vlgmr.msra.gmra.mxu0 %v4338_v21  ;;  %2075 = vmatmul.bf16.vlgmr.msra.gmra.mxu1 %v4341_v22  ;;  %v2930_v17 = vld [vmem:[%s4232_s25 + $0x1f0] sm:$0xf0] }
  0x4b   : > { %v3376_v28 = vld [vmem:[%s4232_s25 + $0x560] sm:$0xf]  ;;  %v4050_v32 = vld [vmem:[%s4232_s25 + $0x66c] sm:$0xf0]  ;;  %v3249_v35 = vor.u32 %v3986_v27, %v3248_v26  ;;  %2122 = vmatpush.bf16.msrb.mxu1 %v3393_v24  ;;  %2135 = vmatpush.bf16.msrb.mxu2 %v3521_v25  ;;  %v3936_v23 = vld [vmem:[%s4232_s25 + $0x2e4] sm:$0xf]  ;;  %v594_v26 = vunpack.c.h.b16 %v292_v4 }
  0x4c   : > { %v3504_v31 = vld [vmem:[%s4232_s25 + $0x660] sm:$0xf]  ;;  %v4082_v34 = vld [vmem:[%s4232_s25 + $0x76c] sm:$0xf0]  ;;  %v3377_v36 = vor.u32 %v4018_v30, %v3376_v28  ;;  %2148 = vmatpush.bf16.msrb.mxu3 %v3649_v29  ;;  %v3058_v24 = vld [vmem:[%s4232_s25 + $0x2f0] sm:$0xf0]  ;;  %v2805_v30 = vor.u32 %v3872_v13, %v2802_v15 }
  0x4d   : > { %v3632_v33 = vld [vmem:[%s4232_s25 + $0x760] sm:$0xf]  ;;  %v3505_v37 = vor.u32 %v4050_v32, %v3504_v31  ;;  %v3982_v39 = vld [vmem:[%s4232_s25 + $0x44c] sm:$0xf0]  ;;  %2110 = vmatpush.bf16.msrb.mxu0 %v3249_v35  ;;  %v2933_v31 = vor.u32 %v3904_v16, %v2930_v17  ;;  %v3061_v35 = vor.u32 %v3936_v23, %v3058_v24  ;;  %v3010_v4 = vld [vmem:[%s4232_s25 + $0x290] sm:$0xf0] }
  0x4e   : > { %v3232_v38 = vld [vmem:[%s4232_s25 + $0x440] sm:$0xf]  ;;  %v3633_v41 = vor.u32 %v4082_v34, %v3632_v33  ;;  %v4014_v42 = vld [vmem:[%s4232_s25 + $0x54c] sm:$0xf0]  ;;  %v3868_v34 = vld [vmem:[%s4232_s25 + $0xc4] sm:$0xf] }
  0x4f   : > { %v3360_v40 = vld [vmem:[%s4232_s25 + $0x540] sm:$0xf]  ;;  %v4046_v44 = vld [vmem:[%s4232_s25 + $0x64c] sm:$0xf0]  ;;  %v3233_v47 = vor.u32 %v3982_v39, %v3232_v38  ;;  %2123 = vmatpush.bf16.msrb.mxu1 %v3377_v36  ;;  %2136 = vmatpush.bf16.msrb.mxu2 %v3505_v37  ;;  %v2786_v36 = vld [vmem:[%s4232_s25 + $0xd0] sm:$0xf0]  ;;  %v4393_v39 = vpack.c.b16 %v593_v18, %v593_v18 }
  0x50   : > { %v3488_v43 = vld [vmem:[%s4232_s25 + $0x640] sm:$0xf]  ;;  %v4078_v46 = vld [vmem:[%s4232_s25 + $0x74c] sm:$0xf0]  ;;  %v3361_v48 = vor.u32 %v4014_v42, %v3360_v40  ;;  %2149 = vmatpush.bf16.msrb.mxu3 %v3633_v41  ;;  %v3900_v37 = vld [vmem:[%s4232_s25 + $0x1c4] sm:$0xf] }
  0x51   : > { %v3616_v45 = vld [vmem:[%s4232_s25 + $0x740] sm:$0xf]  ;;  %v3489_v49 = vor.u32 %v4046_v44, %v3488_v43  ;;  %v3978_v51 = vld [vmem:[%s4232_s25 + $0x42c] sm:$0xf0]  ;;  %2111 = vmatpush.bf16.msrb.mxu0 %v3233_v47  ;;  %v2914_v38 = vld [vmem:[%s4232_s25 + $0x1d0] sm:$0xf0]  ;;  %v4399_v43 = vpack.c.b16 %v594_v26, %v594_v26 }
  0x52   : > { %v3216_v50 = vld [vmem:[%s4232_s25 + $0x420] sm:$0xf]  ;;  %v3617_v53 = vor.u32 %v4078_v46, %v3616_v45  ;;  %v4010_v54 = vld [vmem:[%s4232_s25 + $0x52c] sm:$0xf0]  ;;  %v3932_v40 = vld [vmem:[%s4232_s25 + $0x2c4] sm:$0xf]  ;;  %v2789_v46 = vor.u32 %v3868_v34, %v2786_v36  ;;  %v2917_v47 = vor.u32 %v3900_v37, %v2914_v38 }
  0x53   : > { %v3344_v52 = vld [vmem:[%s4232_s25 + $0x520] sm:$0xf]  ;;  %v4042_v56 = vld [vmem:[%s4232_s25 + $0x62c] sm:$0xf0]  ;;  %v3217_v60 = vor.u32 %v3978_v51, %v3216_v50  ;;  %2124 = vmatpush.bf16.msrb.mxu1 %v3361_v48  ;;  %2137 = vmatpush.bf16.msrb.mxu2 %v3489_v49  ;;  %v3042_v41 = vld [vmem:[%s4232_s25 + $0x2d0] sm:$0xf0] }
  0x54   : > { %v3472_v55 = vld [vmem:[%s4232_s25 + $0x620] sm:$0xf]  ;;  %v4074_v58 = vld [vmem:[%s4232_s25 + $0x72c] sm:$0xf0]  ;;  %v3345_v0 = vor.u32 %v4010_v54, %v3344_v52  ;;  %2150 = vmatpush.bf16.msrb.mxu3 %v3617_v53  ;;  %v3864_v50 = vld [vmem:[%s4232_s25 + $0xa4] sm:$0xf]  ;;  %v3045_v51 = vor.u32 %v3932_v40, %v3042_v41 }
  0x55   : > { %v3600_v57 = vld [vmem:[%s4232_s25 + $0x720] sm:$0xf]  ;;  %v3974_v61 = vld [vmem:[%s4232_s25 + $0x40c] sm:$0xf0]  ;;  %v3473_v1 = vor.u32 %v4042_v56, %v3472_v55  ;;  %2112 = vmatpush.bf16.msrb.mxu0 %v3217_v60  ;;  %v2770_v52 = vld [vmem:[%s4232_s25 + $0xb0] sm:$0xf0] }
  0x56   : > { %v3200_v59 = vld [vmem:[%s4232_s25 + $0x400] sm:$0xf]  ;;  %v4006_v63 = vld [vmem:[%s4232_s25 + $0x50c] sm:$0xf0]  ;;  %v3601_v6 = vor.u32 %v4074_v58, %v3600_v57  ;;  %v3896_v53 = vld [vmem:[%s4232_s25 + $0x1a4] sm:$0xf]  ;;  %v2773_v58 = vor.u32 %v3864_v50, %v2770_v52 }
  0x57   : > { %v3328_v62 = vld [vmem:[%s4232_s25 + $0x500] sm:$0xf]  ;;  %v4038_v3 = vld [vmem:[%s4232_s25 + $0x60c] sm:$0xf0]  ;;  %v3201_v14 = vor.u32 %v3974_v61, %v3200_v59  ;;  %2125 = vmatpush.bf16.msrb.mxu1 %v3345_v0  ;;  %2138 = vmatpush.bf16.msrb.mxu2 %v3473_v1  ;;  %v2898_v54 = vld [vmem:[%s4232_s25 + $0x1b0] sm:$0xf0] }
  0x58   : > { %v3456_v2 = vld [vmem:[%s4232_s25 + $0x600] sm:$0xf]  ;;  %v4070_v9 = vld [vmem:[%s4232_s25 + $0x70c] sm:$0xf0]  ;;  %v3329_v19 = vor.u32 %v4006_v63, %v3328_v62  ;;  %2151 = vmatpush.bf16.msrb.mxu3 %v3601_v6  ;;  %v3928_v55 = vld [vmem:[%s4232_s25 + $0x2a4] sm:$0xf]  ;;  %v2901_v59 = vor.u32 %v3896_v53, %v2898_v54 }
  0x59   : > { %v3584_v8 = vld [vmem:[%s4232_s25 + $0x700] sm:$0xf]  ;;  %v291_v10 = vld [vmem:[%s4227_s21 + $0x10] sm:$0xff]  ;;  %v3457_v20 = vor.u32 %v4038_v3, %v3456_v2  ;;  %2113 = vmatpush.bf16.msrb.mxu0 %v3201_v14  ;;  %v3860_v62 = vld [vmem:[%s4232_s25 + $0x84] sm:$0xf] }
  0x5a   : > { %v3824_v11 = vld [vmem:[%s4232_s25 + $0x8e0] sm:$0xf]  ;;  %v4130_v12 = vld [vmem:[%s4232_s25 + $0x8ec] sm:$0xf0]  ;;  %v591_v25 = vunpack.c.l.b16 %v291_v10  ;;  %v3585_v27 = vor.u32 %v4070_v9, %v3584_v8  ;;  %v592_v29 = vunpack.c.h.b16 %v291_v10  ;;  %v3026_v56 = vld [vmem:[%s4232_s25 + $0x2b0] sm:$0xf0] }
  0x5b   : > { %v3825_v28 = vor.u32 %v4130_v12, %v3824_v11  ;;  %v3808_v32 = vld [vmem:[%s4232_s25 + $0x8c0] sm:$0xf]  ;;  %v4126_v33 = vld [vmem:[%s4232_s25 + $0x8cc] sm:$0xf0]  ;;  %2126 = vmatpush.bf16.msrb.mxu1 %v3329_v19  ;;  %2139 = vmatpush.bf16.msrb.mxu2 %v3457_v20  ;;  %v3029_v63 = vor.u32 %v3928_v55, %v3026_v56  ;;  %v2754_v0 = vld [vmem:[%s4232_s25 + $0x90] sm:$0xf0] }
  0x5c   : > { %v4397_v42 = vpack.c.b16 %v591_v25, %v591_v25  ;;  %2152 = vmatpush.bf16.msrb.mxu3 %v3585_v27  ;;  %v3809_v44 = vor.u32 %v4126_v33, %v3808_v32  ;;  %v4401_v45 = vpack.c.b16 %v592_v29, %v592_v29  ;;  %v3792_v48 = vld [vmem:[%s4232_s25 + $0x8a0] sm:$0xf]  ;;  %v4122_v49 = vld [vmem:[%s4232_s25 + $0x8ac] sm:$0xf0]  ;;  %v3892_v1 = vld [vmem:[%s4232_s25 + $0x184] sm:$0xf]  ;;  %v2757_v8 = vor.u32 %v3860_v62, %v2754_v0 }
  0x5d   : > { %2158 = vmatpush.bf16.msra.mxu0 %v3825_v28  ;;  %v3793_v57 = vor.u32 %v4122_v49, %v3792_v48  ;;  %v3776_v60 = vld [vmem:[%s4232_s25 + $0x880] sm:$0xf]  ;;  %v4118_v61 = vld [vmem:[%s4232_s25 + $0x88c] sm:$0xf0]  ;;  %v2882_v2 = vld [vmem:[%s4232_s25 + $0x190] sm:$0xf0] }
  0x5e   : > { %2140 = vmatmul.bf16.vlgmr.msrb.gmra.mxu2 %v4393_v39  ;;  %2114 = vmatmul.bf16.vlgmr.msrb.gmra.mxu0 %v4397_v42  ;;  %v3924_v3 = vld [vmem:[%s4232_s25 + $0x284] sm:$0xf]  ;;  %v3777_v6 = vor.u32 %v4118_v61, %v3776_v60  ;;  %v2885_v9 = vor.u32 %v3892_v1, %v2882_v2  ;;  %v3760_v10 = vld [vmem:[%s4232_s25 + $0x860] sm:$0xf]  ;;  %v4114_v11 = vld [vmem:[%s4232_s25 + $0x86c] sm:$0xf0] }
  0x5f   : > { %2171 = vmatpush.bf16.msra.mxu1 %v2805_v30  ;;  %2184 = vmatpush.bf16.msra.mxu2 %v2933_v31  ;;  %v3856_v12 = vld [vmem:[%s4232_s25 + $0x64] sm:$0xf]  ;;  %v3013_v13 = vor.u32 %v3924_v3, %v3010_v4  ;;  %v2738_v14 = vld [vmem:[%s4232_s25 + $0x70] sm:$0xf0]  ;;  %v3761_v19 = vor.u32 %v4114_v11, %v3760_v10  ;;  %v3744_v24 = vld [vmem:[%s4232_s25 + $0x840] sm:$0xf] }
  0x60   : > { %2197 = vmatpush.bf16.msra.mxu3 %v3061_v35  ;;  %2127 = vmatmul.bf16.vlgmr.msrb.gmra.mxu1 %v4401_v45  ;;  %v3888_v15 = vld [vmem:[%s4232_s25 + $0x164] sm:$0xf]  ;;  %v2866_v16 = vld [vmem:[%s4232_s25 + $0x170] sm:$0xf0]  ;;  %v2741_v20 = vor.u32 %v3856_v12, %v2738_v14  ;;  %v4110_v25 = vld [vmem:[%s4232_s25 + $0x84c] sm:$0xf0] }
  0x61   : > { %2153 = vmatmul.bf16.vlgmr.msrb.gmra.mxu3 %v4399_v43  ;;  %2159 = vmatpush.bf16.msra.mxu0 %v3809_v44  ;;  %v3920_v17 = vld [vmem:[%s4232_s25 + $0x264] sm:$0xf]  ;;  %v2994_v18 = vld [vmem:[%s4232_s25 + $0x270] sm:$0xf0]  ;;  %v2869_v23 = vor.u32 %v3888_v15, %v2866_v16  ;;  %v3745_v33 = vor.u32 %v4110_v25, %v3744_v24  ;;  %v3728_v36 = vld [vmem:[%s4232_s25 + $0x820] sm:$0xf] }
  0x62   : > { %v3852_v26 = vld [vmem:[%s4232_s25 + $0x44] sm:$0xf]  ;;  %v2997_v27 = vor.u32 %v3920_v17, %v2994_v18  ;;  %v2722_v28 = vld [vmem:[%s4232_s25 + $0x50] sm:$0xf0]  ;;  %v4106_v37 = vld [vmem:[%s4232_s25 + $0x82c] sm:$0xf0] }
  0x63   : > { %2172 = vmatpush.bf16.msra.mxu1 %v2789_v46  ;;  %2185 = vmatpush.bf16.msra.mxu2 %v2917_v47  ;;  %v3884_v29 = vld [vmem:[%s4232_s25 + $0x144] sm:$0xf]  ;;  %v2850_v30 = vld [vmem:[%s4232_s25 + $0x150] sm:$0xf0]  ;;  %v2725_v34 = vor.u32 %v3852_v26, %v2722_v28  ;;  %v3729_v49 = vor.u32 %v4106_v37, %v3728_v36  ;;  %v3712_v50 = vld [vmem:[%s4232_s25 + $0x800] sm:$0xf] }
  0x64   : > { %2198 = vmatpush.bf16.msra.mxu3 %v3045_v51  ;;  %v3916_v31 = vld [vmem:[%s4232_s25 + $0x244] sm:$0xf]  ;;  %v2978_v32 = vld [vmem:[%s4232_s25 + $0x250] sm:$0xf0]  ;;  %v2853_v35 = vor.u32 %v3884_v29, %v2850_v30  ;;  %v4102_v51 = vld [vmem:[%s4232_s25 + $0x80c] sm:$0xf0] }
  0x65   : > { %2160 = vmatpush.bf16.msra.mxu0 %v3793_v57  ;;  %v3848_v38 = vld [vmem:[%s4232_s25 + $0x24] sm:$0xf]  ;;  %v2981_v40 = vor.u32 %v3916_v31, %v2978_v32  ;;  %v2706_v41 = vld [vmem:[%s4232_s25 + $0x30] sm:$0xf0]  ;;  %v293_v57 = vld [vmem:[%s4227_s21 + $0x20] sm:$0xf]  ;;  %v3713_v1 = vor.u32 %v4102_v51, %v3712_v50 }
  0x66   : > { %v3880_v44 = vld [vmem:[%s4232_s25 + $0x124] sm:$0xf]  ;;  %v2834_v46 = vld [vmem:[%s4232_s25 + $0x130] sm:$0xf0]  ;;  %v2709_v53 = vor.u32 %v3848_v38, %v2706_v41 }
  0x67   : > { %2173 = vmatpush.bf16.msra.mxu1 %v2773_v58  ;;  %2186 = vmatpush.bf16.msra.mxu2 %v2901_v59  ;;  %v3912_v47 = vld [vmem:[%s4232_s25 + $0x224] sm:$0xf]  ;;  %v2962_v48 = vld [vmem:[%s4232_s25 + $0x230] sm:$0xf0]  ;;  %v2837_v54 = vor.u32 %v3880_v44, %v2834_v46 }
  0x68   : > { %2199 = vmatpush.bf16.msra.mxu3 %v3029_v63  ;;  %v3844_v52 = vld [vmem:[%s4232_s25 + $0x4] sm:$0xf]  ;;  %v2690_v55 = vld [vmem:[%s4232_s25 + $0x10] sm:$0xf0]  ;;  %v2965_v58 = vor.u32 %v3912_v47, %v2962_v48 }
  0x69   : > { %2161 = vmatpush.bf16.msra.mxu0 %v3777_v6  ;;  %v3876_v56 = vld [vmem:[%s4232_s25 + $0x104] sm:$0xf]  ;;  %v2818_v59 = vld [vmem:[%s4232_s25 + $0x110] sm:$0xf0]  ;;  %v595_v6 = vunpack.c.l.b16 %v293_v57 }
  0x6a   : > { %v3908_v60 = vld [vmem:[%s4232_s25 + $0x204] sm:$0xf]  ;;  %v2946_v61 = vld [vmem:[%s4232_s25 + $0x210] sm:$0xf0] }
  0x6b   : > { %2174 = vmatpush.bf16.msra.mxu1 %v2757_v8  ;;  %2187 = vmatpush.bf16.msra.mxu2 %v2885_v9  ;;  %v3968_v62 = vld [vmem:[%s4232_s25 + $0x3e4] sm:$0xf]  ;;  %v3186_v63 = vld [vmem:[%s4232_s25 + $0x3f0] sm:$0xf0]  ;;  %v2693_v8 = vor.u32 %v3844_v52, %v2690_v55  ;;  %v2821_v9 = vor.u32 %v3876_v56, %v2818_v59  ;;  %v2949_v12 = vor.u32 %v3908_v60, %v2946_v61 }
  0x6c   : > { %2200 = vmatpush.bf16.msra.mxu3 %v3013_v13  ;;  %v4000_v0 = vld [vmem:[%s4232_s25 + $0x4e4] sm:$0xf]  ;;  %v3314_v2 = vld [vmem:[%s4232_s25 + $0x4f0] sm:$0xf0]  ;;  %v3189_v13 = vor.u32 %v3968_v62, %v3186_v63 }
  0x6d   : > { %2162 = vmatpush.bf16.msra.mxu0 %v3761_v19  ;;  %v4032_v3 = vld [vmem:[%s4232_s25 + $0x5e4] sm:$0xf]  ;;  %v3442_v4 = vld [vmem:[%s4232_s25 + $0x5f0] sm:$0xf0]  ;;  %v3317_v14 = vor.u32 %v4000_v0, %v3314_v2 }
  0x6e   : > { %v4064_v10 = vld [vmem:[%s4232_s25 + $0x6e4] sm:$0xf]  ;;  %v3570_v11 = vld [vmem:[%s4232_s25 + $0x6f0] sm:$0xf0]  ;;  %v3445_v15 = vor.u32 %v4032_v3, %v3442_v4 }
  0x6f   : > { %2175 = vmatpush.bf16.msra.mxu1 %v2741_v20  ;;  %2188 = vmatpush.bf16.msra.mxu2 %v2869_v23  ;;  %v3964_v16 = vld [vmem:[%s4232_s25 + $0x3c4] sm:$0xf]  ;;  %v3170_v17 = vld [vmem:[%s4232_s25 + $0x3d0] sm:$0xf0]  ;;  %v3573_v19 = vor.u32 %v4064_v10, %v3570_v11  ;;  %v4467_v20 = vpack.c.b16 %v595_v6, %v595_v6 }
  0x70   : > { %2201 = vmatpush.bf16.msra.mxu3 %v2997_v27  ;;  %v3996_v18 = vld [vmem:[%s4232_s25 + $0x4c4] sm:$0xf]  ;;  %v3298_v23 = vld [vmem:[%s4232_s25 + $0x4d0] sm:$0xf0]  ;;  %v3173_v28 = vor.u32 %v3964_v16, %v3170_v17 }
  0x71   : > { %2163 = vmatpush.bf16.msra.mxu0 %v3745_v33  ;;  %v4028_v24 = vld [vmem:[%s4232_s25 + $0x5c4] sm:$0xf]  ;;  %v3426_v25 = vld [vmem:[%s4232_s25 + $0x5d0] sm:$0xf0]  ;;  %v3301_v29 = vor.u32 %v3996_v18, %v3298_v23 }
  0x72   : > { %v4060_v26 = vld [vmem:[%s4232_s25 + $0x6c4] sm:$0xf]  ;;  %v3554_v27 = vld [vmem:[%s4232_s25 + $0x6d0] sm:$0xf0]  ;;  %v3429_v30 = vor.u32 %v4028_v24, %v3426_v25 }
  0x73   : > { %2176 = vmatpush.bf16.msra.mxu1 %v2725_v34  ;;  %2189 = vmatpush.bf16.msra.mxu2 %v2853_v35  ;;  %v3960_v31 = vld [vmem:[%s4232_s25 + $0x3a4] sm:$0xf]  ;;  %v3154_v32 = vld [vmem:[%s4232_s25 + $0x3b0] sm:$0xf0]  ;;  %v3557_v34 = vor.u32 %v4060_v26, %v3554_v27 }
  0x74   : > { %2202 = vmatpush.bf16.msra.mxu3 %v2981_v40  ;;  %v3992_v33 = vld [vmem:[%s4232_s25 + $0x4a4] sm:$0xf]  ;;  %v3282_v35 = vld [vmem:[%s4232_s25 + $0x4b0] sm:$0xf0]  ;;  %v3157_v41 = vor.u32 %v3960_v31, %v3154_v32 }
  0x75   : > { %2164 = vmatpush.bf16.msra.mxu0 %v3729_v49  ;;  %v4024_v36 = vld [vmem:[%s4232_s25 + $0x5a4] sm:$0xf]  ;;  %v3410_v37 = vld [vmem:[%s4232_s25 + $0x5b0] sm:$0xf0]  ;;  %v3285_v44 = vor.u32 %v3992_v33, %v3282_v35 }
  0x76   : > { %v4056_v38 = vld [vmem:[%s4232_s25 + $0x6a4] sm:$0xf]  ;;  %v3538_v40 = vld [vmem:[%s4232_s25 + $0x6b0] sm:$0xf0]  ;;  %v3413_v46 = vor.u32 %v4024_v36, %v3410_v37 }
  0x77   : > { %2177 = vmatpush.bf16.msra.mxu1 %v2709_v53  ;;  %2190 = vmatpush.bf16.msra.mxu2 %v2837_v54  ;;  %v3956_v47 = vld [vmem:[%s4232_s25 + $0x384] sm:$0xf]  ;;  %v3138_v48 = vld [vmem:[%s4232_s25 + $0x390] sm:$0xf0]  ;;  %v3541_v50 = vor.u32 %v4056_v38, %v3538_v40 }
  0x78   : > { %2203 = vmatpush.bf16.msra.mxu3 %v2965_v58  ;;  %v3988_v49 = vld [vmem:[%s4232_s25 + $0x484] sm:$0xf]  ;;  %v3266_v51 = vld [vmem:[%s4232_s25 + $0x490] sm:$0xf0]  ;;  %v3141_v56 = vor.u32 %v3956_v47, %v3138_v48 }
  0x79   : > { %2165 = vmatpush.bf16.msra.mxu0 %v3713_v1  ;;  %v4020_v52 = vld [vmem:[%s4232_s25 + $0x584] sm:$0xf]  ;;  %v3394_v53 = vld [vmem:[%s4232_s25 + $0x590] sm:$0xf0]  ;;  %v3269_v57 = vor.u32 %v3988_v49, %v3266_v51 }
  0x7a   : > { %v4052_v54 = vld [vmem:[%s4232_s25 + $0x684] sm:$0xf]  ;;  %v3522_v55 = vld [vmem:[%s4232_s25 + $0x690] sm:$0xf0]  ;;  %v3397_v58 = vor.u32 %v4020_v52, %v3394_v53 }
  0x7b   : > { %2178 = vmatpush.bf16.msra.mxu1 %v2693_v8  ;;  %2191 = vmatpush.bf16.msra.mxu2 %v2821_v9  ;;  %v3952_v59 = vld [vmem:[%s4232_s25 + $0x364] sm:$0xf]  ;;  %v3122_v60 = vld [vmem:[%s4232_s25 + $0x370] sm:$0xf0]  ;;  %v3525_v62 = vor.u32 %v4052_v54, %v3522_v55  ;;  %v2808_v54 = vld [vmem:[%s4232_s25 + $0xe8] sm:$0xf] }
  0x7c   : > { %2204 = vmatpush.bf16.msra.mxu3 %v2949_v12  ;;  %2166 = vmatmul.bf16.vlgmr.msra.gmra.mxu0 %v4467_v20  ;;  %v3984_v61 = vld [vmem:[%s4232_s25 + $0x464] sm:$0xf]  ;;  %v3250_v63 = vld [vmem:[%s4232_s25 + $0x470] sm:$0xf0]  ;;  %v3125_v4 = vor.u32 %v3952_v59, %v3122_v60  ;;  %v3875_v55 = vld [vmem:[%s4232_s25 + $0xf4] sm:$0xf0] }
  0x7d   : > { %2210 = vmatpush.bf16.msrb.mxu0 %v3189_v13  ;;  %v4016_v0 = vld [vmem:[%s4232_s25 + $0x564] sm:$0xf]  ;;  %v3378_v1 = vld [vmem:[%s4232_s25 + $0x570] sm:$0xf0]  ;;  %v3253_v6 = vor.u32 %v3984_v61, %v3250_v63  ;;  %v3907_v59 = vld [vmem:[%s4232_s25 + $0x1f4] sm:$0xf0]  ;;  %v2809_v63 = vor.u32 %v3875_v55, %v2808_v54 }
  0x7e   : > { %2192 = vmatmul.bf16.vlgmr.msra.gmra.mxu2 %v4341_v22  ;;  %2179 = vmatmul.bf16.vlgmr.msra.gmra.mxu1 %v4338_v21  ;;  %v4048_v2 = vld [vmem:[%s4232_s25 + $0x664] sm:$0xf]  ;;  %v3506_v3 = vld [vmem:[%s4232_s25 + $0x670] sm:$0xf0]  ;;  %v3381_v8 = vor.u32 %v4016_v0, %v3378_v1 }
  0x7f   : > { %2223 = vmatpush.bf16.msrb.mxu1 %v3317_v14  ;;  %2236 = vmatpush.bf16.msrb.mxu2 %v3445_v15  ;;  %v3948_v9 = vld [vmem:[%s4232_s25 + $0x344] sm:$0xf]  ;;  %v3106_v10 = vld [vmem:[%s4232_s25 + $0x350] sm:$0xf0]  ;;  %v3509_v12 = vor.u32 %v4048_v2, %v3506_v3 }
  0x80   : > { %2249 = vmatpush.bf16.msrb.mxu3 %v3573_v19  ;;  %v3980_v11 = vld [vmem:[%s4232_s25 + $0x444] sm:$0xf]  ;;  %v3234_v13 = vld [vmem:[%s4232_s25 + $0x450] sm:$0xf0]  ;;  %v3109_v18 = vor.u32 %v3948_v9, %v3106_v10  ;;  %v2920_v9 = vld [vmem:[%s4232_s25 + $0x1c8] sm:$0xf] }
  0x81   : > { %2205 = vmatmul.bf16.vlgmr.msra.gmra.mxu3 %v4324_v5  ;;  %2211 = vmatpush.bf16.msrb.mxu0 %v3173_v28  ;;  %v4012_v14 = vld [vmem:[%s4232_s25 + $0x544] sm:$0xf]  ;;  %v3362_v15 = vld [vmem:[%s4232_s25 + $0x550] sm:$0xf0]  ;;  %v3237_v19 = vor.u32 %v3980_v11, %v3234_v13  ;;  %v3903_v10 = vld [vmem:[%s4232_s25 + $0x1d4] sm:$0xf0] }
  0x82   : > { %v4044_v16 = vld [vmem:[%s4232_s25 + $0x644] sm:$0xf]  ;;  %v3490_v17 = vld [vmem:[%s4232_s25 + $0x650] sm:$0xf0]  ;;  %v3365_v23 = vor.u32 %v4012_v14, %v3362_v15 }
  0x83   : > { %2224 = vmatpush.bf16.msrb.mxu1 %v3301_v29  ;;  %2237 = vmatpush.bf16.msrb.mxu2 %v3429_v30  ;;  %v3944_v24 = vld [vmem:[%s4232_s25 + $0x324] sm:$0xf]  ;;  %v3090_v25 = vld [vmem:[%s4232_s25 + $0x330] sm:$0xf0]  ;;  %v3493_v27 = vor.u32 %v4044_v16, %v3490_v17  ;;  %v2921_v17 = vor.u32 %v3903_v10, %v2920_v9 }
  0x84   : > { %2250 = vmatpush.bf16.msrb.mxu3 %v3557_v34  ;;  %v3976_v26 = vld [vmem:[%s4232_s25 + $0x424] sm:$0xf]  ;;  %v3218_v28 = vld [vmem:[%s4232_s25 + $0x430] sm:$0xf0]  ;;  %v3093_v33 = vor.u32 %v3944_v24, %v3090_v25  ;;  %v2904_v24 = vld [vmem:[%s4232_s25 + $0x1a8] sm:$0xf] }
  0x85   : > { %2212 = vmatpush.bf16.msrb.mxu0 %v3157_v41  ;;  %v4008_v29 = vld [vmem:[%s4232_s25 + $0x524] sm:$0xf]  ;;  %v3346_v30 = vld [vmem:[%s4232_s25 + $0x530] sm:$0xf0]  ;;  %v3221_v36 = vor.u32 %v3976_v26, %v3218_v28  ;;  %v3899_v25 = vld [vmem:[%s4232_s25 + $0x1b4] sm:$0xf0] }
  0x86   : > { %v4040_v31 = vld [vmem:[%s4232_s25 + $0x624] sm:$0xf]  ;;  %v3474_v32 = vld [vmem:[%s4232_s25 + $0x630] sm:$0xf0]  ;;  %v3349_v37 = vor.u32 %v4008_v29, %v3346_v30 }
  0x87   : > { %2225 = vmatpush.bf16.msrb.mxu1 %v3285_v44  ;;  %2238 = vmatpush.bf16.msrb.mxu2 %v3413_v46  ;;  %v3940_v34 = vld [vmem:[%s4232_s25 + $0x304] sm:$0xf]  ;;  %v3074_v35 = vld [vmem:[%s4232_s25 + $0x310] sm:$0xf0]  ;;  %v3477_v44 = vor.u32 %v4040_v31, %v3474_v32  ;;  %v2905_v32 = vor.u32 %v3899_v25, %v2904_v24 }
  0x88   : > { %2251 = vmatpush.bf16.msrb.mxu3 %v3541_v50  ;;  %v3972_v38 = vld [vmem:[%s4232_s25 + $0x404] sm:$0xf]  ;;  %v3202_v40 = vld [vmem:[%s4232_s25 + $0x410] sm:$0xf0]  ;;  %v3077_v52 = vor.u32 %v3940_v34, %v3074_v35  ;;  %v2760_v34 = vld [vmem:[%s4232_s25 + $0x88] sm:$0xf] }
  0x89   : > { %2213 = vmatpush.bf16.msrb.mxu0 %v3141_v56  ;;  %v4004_v41 = vld [vmem:[%s4232_s25 + $0x504] sm:$0xf]  ;;  %v3330_v46 = vld [vmem:[%s4232_s25 + $0x510] sm:$0xf0]  ;;  %v3205_v56 = vor.u32 %v3972_v38, %v3202_v40  ;;  %v3863_v35 = vld [vmem:[%s4232_s25 + $0x94] sm:$0xf0] }
  0x8a   : > { %v4036_v47 = vld [vmem:[%s4232_s25 + $0x604] sm:$0xf]  ;;  %v3458_v48 = vld [vmem:[%s4232_s25 + $0x610] sm:$0xf0] }
  0x8b   : > { %2226 = vmatpush.bf16.msrb.mxu1 %v3269_v57  ;;  %2239 = vmatpush.bf16.msrb.mxu2 %v3397_v58  ;;  %v4096_v49 = vld [vmem:[%s4232_s25 + $0x7e4] sm:$0xf]  ;;  %v3698_v50 = vld [vmem:[%s4232_s25 + $0x7f0] sm:$0xf0]  ;;  %v3333_v57 = vor.u32 %v4004_v41, %v3330_v46  ;;  %v2936_v58 = vld [vmem:[%s4232_s25 + $0x1e8] sm:$0xf]  ;;  %v3461_v60 = vor.u32 %v4036_v47, %v3458_v48  ;;  %v2761_v41 = vor.u32 %v3863_v35, %v2760_v34 }
  0x8c   : > { %2252 = vmatpush.bf16.msrb.mxu3 %v3525_v62  ;;  %v4128_v51 = vld [vmem:[%s4232_s25 + $0x8e4] sm:$0xf]  ;;  %v3826_v53 = vld [vmem:[%s4232_s25 + $0x8f0] sm:$0xf0]  ;;  %v3701_v61 = vor.u32 %v4096_v49, %v3698_v50  ;;  %v2937_v3 = vor.u32 %v3907_v59, %v2936_v58  ;;  %v2744_v50 = vld [vmem:[%s4232_s25 + $0x68] sm:$0xf] }
  0x8d   : > { %2214 = vmatpush.bf16.msrb.mxu0 %v3125_v4  ;;  %v3829_v62 = vor.u32 %v4128_v51, %v3826_v53  ;;  %v4092_v0 = vld [vmem:[%s4232_s25 + $0x7c4] sm:$0xf]  ;;  %v3682_v1 = vld [vmem:[%s4232_s25 + $0x7d0] sm:$0xf0]  ;;  %v3859_v51 = vld [vmem:[%s4232_s25 + $0x74] sm:$0xf0] }
  0x8e   : > { %v4124_v2 = vld [vmem:[%s4232_s25 + $0x8c4] sm:$0xf]  ;;  %v3810_v4 = vld [vmem:[%s4232_s25 + $0x8d0] sm:$0xf0]  ;;  %v3685_v11 = vor.u32 %v4092_v0, %v3682_v1  ;;  %v3891_v53 = vld [vmem:[%s4232_s25 + $0x174] sm:$0xf0] }
  0x8f   : > { %2227 = vmatpush.bf16.msrb.mxu1 %v3253_v6  ;;  %2240 = vmatpush.bf16.msrb.mxu2 %v3381_v8  ;;  %v2792_v6 = vld [vmem:[%s4232_s25 + $0xc8] sm:$0xf]  ;;  %v3871_v8 = vld [vmem:[%s4232_s25 + $0xd4] sm:$0xf0]  ;;  %v4088_v14 = vld [vmem:[%s4232_s25 + $0x7a4] sm:$0xf] }
  0x90   : > { %2253 = vmatpush.bf16.msrb.mxu3 %v3509_v12  ;;  %v3813_v12 = vor.u32 %v4124_v2, %v3810_v4  ;;  %v2793_v13 = vor.u32 %v3871_v8, %v2792_v6  ;;  %v3666_v15 = vld [vmem:[%s4232_s25 + $0x7b0] sm:$0xf0]  ;;  %v4120_v16 = vld [vmem:[%s4232_s25 + $0x8a4] sm:$0xf]  ;;  %v2856_v0 = vld [vmem:[%s4232_s25 + $0x148] sm:$0xf] }
  0x91   : > { %2215 = vmatpush.bf16.msrb.mxu0 %v3109_v18  ;;  %v3794_v18 = vld [vmem:[%s4232_s25 + $0x8b0] sm:$0xf0]  ;;  %v3669_v26 = vor.u32 %v4088_v14, %v3666_v15  ;;  %v4084_v29 = vld [vmem:[%s4232_s25 + $0x784] sm:$0xf]  ;;  %v3887_v1 = vld [vmem:[%s4232_s25 + $0x154] sm:$0xf0] }
  0x92   : > { %v3650_v30 = vld [vmem:[%s4232_s25 + $0x790] sm:$0xf0]  ;;  %v4116_v31 = vld [vmem:[%s4232_s25 + $0x884] sm:$0xf]  ;;  %v2857_v10 = vor.u32 %v3887_v1, %v2856_v0  ;;  %v2840_v14 = vld [vmem:[%s4232_s25 + $0x128] sm:$0xf] }
  0x93   : > { %2228 = vmatpush.bf16.msrb.mxu1 %v3237_v19  ;;  %2241 = vmatpush.bf16.msrb.mxu2 %v3365_v23  ;;  %v2776_v19 = vld [vmem:[%s4232_s25 + $0xa8] sm:$0xf]  ;;  %v3867_v23 = vld [vmem:[%s4232_s25 + $0xb4] sm:$0xf0]  ;;  %v3653_v38 = vor.u32 %v4084_v29, %v3650_v30  ;;  %v3634_v46 = vld [vmem:[%s4232_s25 + $0x770] sm:$0xf0] }
  0x94   : > { %2254 = vmatpush.bf16.msrb.mxu3 %v3493_v27  ;;  %v3797_v27 = vor.u32 %v4120_v16, %v3794_v18  ;;  %v2777_v28 = vor.u32 %v3867_v23, %v2776_v19  ;;  %v4112_v47 = vld [vmem:[%s4232_s25 + $0x864] sm:$0xf]  ;;  %v3762_v49 = vld [vmem:[%s4232_s25 + $0x870] sm:$0xf0]  ;;  %v3883_v15 = vld [vmem:[%s4232_s25 + $0x134] sm:$0xf0] }
  0x95   : > { %2216 = vmatpush.bf16.msrb.mxu0 %v3093_v33  ;;  %v3778_v33 = vld [vmem:[%s4232_s25 + $0x890] sm:$0xf0]  ;;  %v3765_v55 = vor.u32 %v4112_v47, %v3762_v49  ;;  %v4108_v59 = vld [vmem:[%s4232_s25 + $0x844] sm:$0xf]  ;;  %v2824_v29 = vld [vmem:[%s4232_s25 + $0x108] sm:$0xf] }
  0x96   : > { %v3781_v40 = vor.u32 %v4116_v31, %v3778_v33  ;;  %v3618_v58 = vld [vmem:[%s4232_s25 + $0x750] sm:$0xf0]  ;;  %v4072_v6 = vld [vmem:[%s4232_s25 + $0x724] sm:$0xf]  ;;  %v3879_v30 = vld [vmem:[%s4232_s25 + $0x114] sm:$0xf0] }
  0x97   : > { %2229 = vmatpush.bf16.msrb.mxu1 %v3221_v36  ;;  %2242 = vmatpush.bf16.msrb.mxu2 %v3349_v37  ;;  %v2888_v36 = vld [vmem:[%s4232_s25 + $0x188] sm:$0xf]  ;;  %v3895_v37 = vld [vmem:[%s4232_s25 + $0x194] sm:$0xf0]  ;;  %v3602_v8 = vld [vmem:[%s4232_s25 + $0x730] sm:$0xf0] }
  0x98   : > { %2255 = vmatpush.bf16.msrb.mxu3 %v3477_v44  ;;  %v4080_v44 = vld [vmem:[%s4232_s25 + $0x764] sm:$0xf]  ;;  %v2889_v48 = vor.u32 %v3895_v37, %v2888_v36  ;;  %v3605_v16 = vor.u32 %v4072_v6, %v3602_v8  ;;  %v3586_v18 = vld [vmem:[%s4232_s25 + $0x710] sm:$0xf0]  ;;  %v3064_v31 = vld [vmem:[%s4232_s25 + $0x2e8] sm:$0xf] }
  0x99   : > { %2217 = vmatpush.bf16.msrb.mxu0 %v3077_v52  ;;  %v2872_v52 = vld [vmem:[%s4232_s25 + $0x168] sm:$0xf]  ;;  %v3637_v54 = vor.u32 %v4080_v44, %v3634_v46  ;;  %v4104_v9 = vld [vmem:[%s4232_s25 + $0x824] sm:$0xf]  ;;  %v3714_v25 = vld [vmem:[%s4232_s25 + $0x810] sm:$0xf0]  ;;  %v2825_v46 = vor.u32 %v3879_v30, %v2824_v29 }
  0x9a   : > { %v4100_v24 = vld [vmem:[%s4232_s25 + $0x804] sm:$0xf]  ;;  %v3192_v33 = vld [vmem:[%s4232_s25 + $0x3e8] sm:$0xf]  ;;  %v3971_v35 = vld [vmem:[%s4232_s25 + $0x3f4] sm:$0xf0] }
  0x9b   : > { %2230 = vmatpush.bf16.msrb.mxu1 %v3205_v56  ;;  %2243 = vmatpush.bf16.msrb.mxu2 %v3333_v57  ;;  %v2745_v56 = vor.u32 %v3859_v51, %v2744_v50  ;;  %v4076_v57 = vld [vmem:[%s4232_s25 + $0x744] sm:$0xf]  ;;  %v3320_v36 = vld [vmem:[%s4232_s25 + $0x4e8] sm:$0xf]  ;;  %v4003_v37 = vld [vmem:[%s4232_s25 + $0x4f4] sm:$0xf0] }
  0x9c   : > { %2256 = vmatpush.bf16.msrb.mxu3 %v3461_v60  ;;  %2218 = vmatmul.bf16.vlgmr.msrb.gmra.mxu0 %v4327_v7  ;;  %v2873_v60 = vor.u32 %v3891_v53, %v2872_v52  ;;  %v3621_v2 = vor.u32 %v4076_v57, %v3618_v58  ;;  %v4035_v44 = vld [vmem:[%s4232_s25 + $0x5f4] sm:$0xf0]  ;;  %v3321_v49 = vor.u32 %v4003_v37, %v3320_v36  ;;  %v3048_v50 = vld [vmem:[%s4232_s25 + $0x2c8] sm:$0xf] }
  0x9d   : > { %2262 = vmatpush.bf16.msra.mxu0 %v3701_v61  ;;  %v3746_v61 = vld [vmem:[%s4232_s25 + $0x850] sm:$0xf0]  ;;  %v3935_v51 = vld [vmem:[%s4232_s25 + $0x2d4] sm:$0xf0]  ;;  %v3176_v52 = vld [vmem:[%s4232_s25 + $0x3c8] sm:$0xf] }
  0x9e   : > { %2244 = vmatmul.bf16.vlgmr.msrb.gmra.mxu2 %v4401_v45  ;;  %2231 = vmatmul.bf16.vlgmr.msrb.gmra.mxu1 %v4397_v42  ;;  %v3432_v57 = vld [vmem:[%s4232_s25 + $0x5c8] sm:$0xf]  ;;  %v4031_v58 = vld [vmem:[%s4232_s25 + $0x5d4] sm:$0xf0] }
  0x9f   : > { %2275 = vmatpush.bf16.msra.mxu1 %v3829_v62  ;;  %2288 = vmatpush.bf16.msra.mxu2 %v2809_v63  ;;  %v2728_v62 = vld [vmem:[%s4232_s25 + $0x48] sm:$0xf]  ;;  %v3855_v63 = vld [vmem:[%s4232_s25 + $0x54] sm:$0xf0]  ;;  %v3433_v1 = vor.u32 %v4031_v58, %v3432_v57 }
  0xa0   : > { %2301 = vmatpush.bf16.msra.mxu3 %v2937_v3  ;;  %v3749_v3 = vor.u32 %v4108_v59, %v3746_v61  ;;  %v2729_v4 = vor.u32 %v3855_v63, %v2728_v62  ;;  %v3049_v59 = vor.u32 %v3935_v51, %v3048_v50  ;;  %v3032_v62 = vld [vmem:[%s4232_s25 + $0x2a8] sm:$0xf]  ;;  %v3931_v63 = vld [vmem:[%s4232_s25 + $0x2b4] sm:$0xf0] }
  0xa1   : > { %2257 = vmatmul.bf16.vlgmr.msrb.gmra.mxu3 %v4393_v39  ;;  %2263 = vmatpush.bf16.msra.mxu0 %v3685_v11  ;;  %v3730_v11 = vld [vmem:[%s4232_s25 + $0x830] sm:$0xf0]  ;;  %v3160_v0 = vld [vmem:[%s4232_s25 + $0x3a8] sm:$0xf]  ;;  %v4027_v8 = vld [vmem:[%s4232_s25 + $0x5b4] sm:$0xf0] }
  0xa2   : > { %v3733_v19 = vor.u32 %v4104_v9, %v3730_v11  ;;  %v3416_v6 = vld [vmem:[%s4232_s25 + $0x5a8] sm:$0xf]  ;;  %v3033_v9 = vor.u32 %v3931_v63, %v3032_v62  ;;  %v4015_v51 = vld [vmem:[%s4232_s25 + $0x554] sm:$0xf0] }
  0xa3   : > { %2276 = vmatpush.bf16.msra.mxu1 %v3813_v12  ;;  %2289 = vmatpush.bf16.msra.mxu2 %v2793_v13  ;;  %v2712_v12 = vld [vmem:[%s4232_s25 + $0x28] sm:$0xf]  ;;  %v3851_v13 = vld [vmem:[%s4232_s25 + $0x34] sm:$0xf0] }
  0xa4   : > { %2302 = vmatpush.bf16.msra.mxu3 %v2921_v17  ;;  %v4068_v17 = vld [vmem:[%s4232_s25 + $0x704] sm:$0xf]  ;;  %v2713_v23 = vor.u32 %v3851_v13, %v2712_v12  ;;  %v3016_v12 = vld [vmem:[%s4232_s25 + $0x288] sm:$0xf]  ;;  %v3927_v13 = vld [vmem:[%s4232_s25 + $0x294] sm:$0xf0] }
  0xa5   : > { %2264 = vmatpush.bf16.msra.mxu0 %v3669_v26  ;;  %v2696_v26 = vld [vmem:[%s4232_s25 + $0x8] sm:$0xf]  ;;  %v3589_v34 = vor.u32 %v4068_v17, %v3586_v18  ;;  %v3991_v18 = vld [vmem:[%s4232_s25 + $0x494] sm:$0xf0] }
  0xa6   : > { %v3272_v17 = vld [vmem:[%s4232_s25 + $0x488] sm:$0xf]  ;;  %v3915_v58 = vld [vmem:[%s4232_s25 + $0x234] sm:$0xf0] }
  0xa7   : > { %2277 = vmatpush.bf16.msra.mxu1 %v3797_v27  ;;  %2290 = vmatpush.bf16.msra.mxu2 %v2777_v28  ;;  %v2841_v27 = vor.u32 %v3883_v15, %v2840_v14  ;;  %v3847_v28 = vld [vmem:[%s4232_s25 + $0x14] sm:$0xf0]  ;;  %v3144_v14 = vld [vmem:[%s4232_s25 + $0x388] sm:$0xf]  ;;  %v3417_v15 = vor.u32 %v4027_v8, %v3416_v6 }
  0xa8   : > { %2303 = vmatpush.bf16.msra.mxu3 %v2905_v32  ;;  %v3939_v32 = vld [vmem:[%s4232_s25 + $0x2f4] sm:$0xf0]  ;;  %v3128_v29 = vld [vmem:[%s4232_s25 + $0x368] sm:$0xf] }
  0xa9   : > { %2265 = vmatpush.bf16.msra.mxu0 %v3653_v38  ;;  %v3717_v38 = vor.u32 %v4100_v24, %v3714_v25  ;;  %v3065_v47 = vor.u32 %v3939_v32, %v3064_v31  ;;  %v3017_v24 = vor.u32 %v3927_v13, %v3016_v12  ;;  %v3955_v31 = vld [vmem:[%s4232_s25 + $0x374] sm:$0xf0]  ;;  %v3256_v32 = vld [vmem:[%s4232_s25 + $0x468] sm:$0xf] }
  0xaa   : > { %v3129_v37 = vor.u32 %v3955_v31, %v3128_v29  ;;  %v3368_v50 = vld [vmem:[%s4232_s25 + $0x548] sm:$0xf]  ;;  %v3947_v62 = vld [vmem:[%s4232_s25 + $0x334] sm:$0xf0] }
  0xab   : > { %2278 = vmatpush.bf16.msra.mxu1 %v3781_v40  ;;  %2291 = vmatpush.bf16.msra.mxu2 %v2761_v41  ;;  %v2697_v40 = vor.u32 %v3847_v28, %v2696_v26  ;;  %v3448_v41 = vld [vmem:[%s4232_s25 + $0x5e8] sm:$0xf]  ;;  %v3273_v26 = vor.u32 %v3991_v18, %v3272_v17  ;;  %v3923_v28 = vld [vmem:[%s4232_s25 + $0x274] sm:$0xf0] }
  0xac   : > { %2304 = vmatpush.bf16.msra.mxu3 %v2889_v48  ;;  %v3193_v48 = vor.u32 %v3971_v35, %v3192_v33  ;;  %v3449_v53 = vor.u32 %v4035_v44, %v3448_v41  ;;  %v3987_v33 = vld [vmem:[%s4232_s25 + $0x474] sm:$0xf0]  ;;  %v3112_v44 = vld [vmem:[%s4232_s25 + $0x348] sm:$0xf] }
  0xad   : > { %2266 = vmatpush.bf16.msra.mxu0 %v3637_v54  ;;  %v3967_v54 = vld [vmem:[%s4232_s25 + $0x3d4] sm:$0xf0]  ;;  %v2968_v57 = vld [vmem:[%s4232_s25 + $0x228] sm:$0xf] }
  0xae   : > { %v4019_v35 = vld [vmem:[%s4232_s25 + $0x574] sm:$0xf0]  ;;  %v3224_v63 = vld [vmem:[%s4232_s25 + $0x428] sm:$0xf] }
  0xaf   : > { %2279 = vmatpush.bf16.msra.mxu1 %v3765_v55  ;;  %2292 = vmatpush.bf16.msra.mxu2 %v2745_v56  ;;  %v3304_v55 = vld [vmem:[%s4232_s25 + $0x4c8] sm:$0xf]  ;;  %v3999_v56 = vld [vmem:[%s4232_s25 + $0x4d4] sm:$0xf0] }
  0xb0   : > { %2305 = vmatpush.bf16.msra.mxu3 %v2873_v60  ;;  %v3177_v60 = vor.u32 %v3967_v54, %v3176_v52  ;;  %v3305_v61 = vor.u32 %v3999_v56, %v3304_v55  ;;  %v3919_v41 = vld [vmem:[%s4232_s25 + $0x254] sm:$0xf0]  ;;  %v2952_v6 = vld [vmem:[%s4232_s25 + $0x208] sm:$0xf] }
  0xb1   : > { %2267 = vmatpush.bf16.msra.mxu0 %v3621_v2  ;;  %v3963_v2 = vld [vmem:[%s4232_s25 + $0x3b4] sm:$0xf0]  ;;  %v3208_v13 = vld [vmem:[%s4232_s25 + $0x408] sm:$0xf] }
  0xb2   : > { %v3911_v8 = vld [vmem:[%s4232_s25 + $0x214] sm:$0xf0]  ;;  %v3576_v18 = vld [vmem:[%s4232_s25 + $0x6e8] sm:$0xf] }
  0xb3   : > { %2280 = vmatpush.bf16.msra.mxu1 %v3749_v3  ;;  %2293 = vmatpush.bf16.msra.mxu2 %v2729_v4  ;;  %v3288_v3 = vld [vmem:[%s4232_s25 + $0x4a8] sm:$0xf]  ;;  %v3995_v4 = vld [vmem:[%s4232_s25 + $0x4b4] sm:$0xf0] }
  0xb4   : > { %2306 = vmatpush.bf16.msra.mxu3 %v2857_v10  ;;  %v3161_v10 = vor.u32 %v3963_v2, %v3160_v0  ;;  %v3289_v11 = vor.u32 %v3995_v4, %v3288_v3  ;;  %v3979_v0 = vld [vmem:[%s4232_s25 + $0x434] sm:$0xf0]  ;;  %v3352_v2 = vld [vmem:[%s4232_s25 + $0x528] sm:$0xf]  ;;  %v2969_v4 = vor.u32 %v3915_v58, %v2968_v57 }
  0xb5   : > { %2268 = vmatpush.bf16.msra.mxu0 %v3605_v16  ;;  %v3959_v16 = vld [vmem:[%s4232_s25 + $0x394] sm:$0xf0]  ;;  %v3544_v58 = vld [vmem:[%s4232_s25 + $0x6a8] sm:$0xf] }
  0xb6   : > { %v3145_v25 = vor.u32 %v3959_v16, %v3144_v14  ;;  %v4011_v3 = vld [vmem:[%s4232_s25 + $0x534] sm:$0xf0]  ;;  %v3336_v16 = vld [vmem:[%s4232_s25 + $0x508] sm:$0xf] }
  0xb7   : > { %2281 = vmatpush.bf16.msra.mxu1 %v3733_v19  ;;  %2294 = vmatpush.bf16.msra.mxu2 %v2713_v23  ;;  %v3400_v19 = vld [vmem:[%s4232_s25 + $0x588] sm:$0xf]  ;;  %v4023_v23 = vld [vmem:[%s4232_s25 + $0x594] sm:$0xf0]  ;;  %v3353_v14 = vor.u32 %v4011_v3, %v3352_v2  ;;  %v3865_v3 = vld [vmem:[%s4232_s25 + $0xac] sm:$0xf] }
  0xb8   : > { %2307 = vmatpush.bf16.msra.mxu3 %v2841_v27  ;;  %v3000_v27 = vld [vmem:[%s4232_s25 + $0x268] sm:$0xf]  ;;  %v3401_v30 = vor.u32 %v4023_v23, %v3400_v19  ;;  %v3943_v12 = vld [vmem:[%s4232_s25 + $0x314] sm:$0xf0] }
  0xb9   : > { %2269 = vmatpush.bf16.msra.mxu0 %v3589_v34  ;;  %v3384_v34 = vld [vmem:[%s4232_s25 + $0x568] sm:$0xf]  ;;  %v3001_v36 = vor.u32 %v3923_v28, %v3000_v27  ;;  %v4007_v17 = vld [vmem:[%s4232_s25 + $0x514] sm:$0xf0] }
  0xba   : > { %v4067_v19 = vld [vmem:[%s4232_s25 + $0x6f4] sm:$0xf0]  ;;  %v3704_v23 = vld [vmem:[%s4232_s25 + $0x7e8] sm:$0xf] }
  0xbb   : > { %2282 = vmatpush.bf16.msra.mxu1 %v3717_v38  ;;  %2295 = vmatpush.bf16.msra.mxu2 %v2697_v40  ;;  %v3257_v38 = vor.u32 %v3987_v33, %v3256_v32  ;;  %v2984_v40 = vld [vmem:[%s4232_s25 + $0x248] sm:$0xf]  ;;  %v4131_v28 = vld [vmem:[%s4232_s25 + $0x8f4] sm:$0xf0]  ;;  %v3873_v32 = vld [vmem:[%s4232_s25 + $0xec] sm:$0xf] }
  0xbc   : > { %2308 = vmatpush.bf16.msra.mxu3 %v2825_v46  ;;  %2270 = vmatmul.bf16.vlgmr.msra.gmra.mxu0 %v4399_v43  ;;  %v3385_v46 = vor.u32 %v4019_v35, %v3384_v34  ;;  %v3832_v27 = vld [vmem:[%s4232_s25 + $0x8e8] sm:$0xf]  ;;  %v2810_v33 = vld [vmem:[%s4232_s25 + $0xf8] sm:$0xf0]  ;;  %v3337_v35 = vor.u32 %v4007_v17, %v3336_v16  ;;  %v4123_v2 = vld [vmem:[%s4232_s25 + $0x8b4] sm:$0xf0] }
  0xbd   : > { %2314 = vmatpush.bf16.msrb.mxu0 %v3065_v47  ;;  %v3951_v47 = vld [vmem:[%s4232_s25 + $0x354] sm:$0xf0]  ;;  %v3861_v17 = vld [vmem:[%s4232_s25 + $0x8c] sm:$0xf] }
  0xbe   : > { %2283 = vmatmul.bf16.vlgmr.msra.gmra.mxu1 %v4467_v20  ;;  %2296 = vmatmul.bf16.vlgmr.msra.gmra.mxu2 %v4338_v21  ;;  %v3113_v55 = vor.u32 %v3951_v47, %v3112_v44  ;;  %v4063_v44 = vld [vmem:[%s4232_s25 + $0x6d4] sm:$0xf0]  ;;  %v2813_v47 = vor.u32 %v3873_v32, %v2810_v33  ;;  %v3768_v32 = vld [vmem:[%s4232_s25 + $0x868] sm:$0xf] }
  0xbf   : > { %2327 = vmatpush.bf16.msrb.mxu1 %v3193_v48  ;;  %2340 = vmatpush.bf16.msrb.mxu2 %v3321_v49  ;;  %v3240_v48 = vld [vmem:[%s4232_s25 + $0x448] sm:$0xf]  ;;  %v3983_v49 = vld [vmem:[%s4232_s25 + $0x454] sm:$0xf0] }
  0xc0   : > { %2353 = vmatpush.bf16.msrb.mxu3 %v3449_v53  ;;  %v2985_v53 = vor.u32 %v3919_v41, %v2984_v40  ;;  %v3241_v56 = vor.u32 %v3983_v49, %v3240_v48  ;;  %v3833_v40 = vor.u32 %v4131_v28, %v3832_v27  ;;  %v3560_v41 = vld [vmem:[%s4232_s25 + $0x6c8] sm:$0xf]  ;;  %v4095_v48 = vld [vmem:[%s4232_s25 + $0x7d4] sm:$0xf0] }
  0xc1   : > { %2315 = vmatpush.bf16.msrb.mxu0 %v3049_v59  ;;  %2309 = vmatmul.bf16.vlgmr.msra.gmra.mxu3 %v4341_v22  ;;  %v3096_v59 = vld [vmem:[%s4232_s25 + $0x328] sm:$0xf]  ;;  %v4119_v16 = vld [vmem:[%s4232_s25 + $0x894] sm:$0xf0] }
  0xc2   : > { %v3816_v49 = vld [vmem:[%s4232_s25 + $0x8c8] sm:$0xf]  ;;  %v4051_v27 = vld [vmem:[%s4232_s25 + $0x674] sm:$0xf0] }
  0xc3   : > { %2328 = vmatpush.bf16.msrb.mxu1 %v3177_v60  ;;  %2341 = vmatpush.bf16.msrb.mxu2 %v3305_v61  ;;  %v4653_v60 = vpop.f32.mrf.mxu2  ;;  %v3369_v61 = vor.u32 %v4015_v51, %v3368_v50  ;;  %v4127_v50 = vld [vmem:[%s4232_s25 + $0x8d4] sm:$0xf0]  ;;  %v3869_v51 = vld [vmem:[%s4232_s25 + $0xcc] sm:$0xf]  ;;  %v3640_v28 = vld [vmem:[%s4232_s25 + $0x768] sm:$0xf] }
  0xc4   : > { %2354 = vmatpush.bf16.msrb.mxu3 %v3433_v1  ;;  %v4658_v1 = vpop.f32.mrf.mxu3  ;;  %v3817_v57 = vor.u32 %v4127_v50, %v3816_v49  ;;  %v4115_v33 = vld [vmem:[%s4232_s25 + $0x874] sm:$0xf0] }
  0xc5   : > { %2316 = vmatpush.bf16.msrb.mxu0 %v3033_v9  ;;  %v3097_v9 = vor.u32 %v3947_v62, %v3096_v59  ;;  %v4059_v59 = vld [vmem:[%s4232_s25 + $0x6b4] sm:$0xf0] }
  0xc6   : > { %v4079_v49 = vld [vmem:[%s4232_s25 + $0x754] sm:$0xf0] }
  0xc7   : > { %2329 = vmatpush.bf16.msrb.mxu1 %v3161_v10  ;;  %2342 = vmatpush.bf16.msrb.mxu2 %v3289_v11  ;;  %v4646_v52 = vpop.f32.mrf.mxu0  ;;  %v4648_v54 = vpop.f32.mrf.mxu1  ;;  %v3225_v10 = vor.u32 %v3979_v0, %v3224_v63  ;;  %v3080_v11 = vld [vmem:[%s4232_s25 + $0x308] sm:$0xf]  ;;  %v4091_v63 = vld [vmem:[%s4232_s25 + $0x7b4] sm:$0xf0] }
  0xc8   : > { %2355 = vmatpush.bf16.msrb.mxu3 %v3417_v15  ;;  %v3975_v15 = vld [vmem:[%s4232_s25 + $0x414] sm:$0xf0]  ;;  %v3800_v0 = vld [vmem:[%s4232_s25 + $0x8a8] sm:$0xf] }
  0xc9   : > { %2317 = vmatpush.bf16.msrb.mxu0 %v3017_v24  ;;  %v3209_v31 = vor.u32 %v3975_v15, %v3208_v13  ;;  %v3784_v15 = vld [vmem:[%s4232_s25 + $0x888] sm:$0xf] }
  0xcb   : > { %2330 = vmatpush.bf16.msrb.mxu1 %v3145_v25  ;;  %2343 = vmatpush.bf16.msrb.mxu2 %v3273_v26  ;;  %v2953_v25 = vor.u32 %v3911_v8, %v2952_v6  ;;  %v4099_v26 = vld [vmem:[%s4232_s25 + $0x7f4] sm:$0xf0]  ;;  %v2091_v34 = vpop.f32.mrf.mxu2  ;;  %v3545_v6 = vor.u32 %v4059_v59, %v3544_v58 }
  0xcc   : > { %2356 = vmatpush.bf16.msrb.mxu3 %v3401_v30  ;;  %v3081_v30 = vor.u32 %v3943_v12, %v3080_v11  ;;  %v4055_v11 = vld [vmem:[%s4232_s25 + $0x694] sm:$0xf0]  ;;  %v3656_v12 = vld [vmem:[%s4232_s25 + $0x788] sm:$0xf]  ;;  %v3857_v34 = vld [vmem:[%s4232_s25 + $0x6c] sm:$0xf] }
  0xcd   : > { %2318 = vmatpush.bf16.msrb.mxu0 %v3001_v36  ;;  %v3577_v36 = vor.u32 %v4067_v19, %v3576_v18  ;;  %v2762_v18 = vld [vmem:[%s4232_s25 + $0x98] sm:$0xf0] }
  0xcf   : > { %2331 = vmatpush.bf16.msrb.mxu1 %v3129_v37  ;;  %2344 = vmatpush.bf16.msrb.mxu2 %v3257_v38  ;;  %v2065_v24 = vpop.f32.mrf.mxu0  ;;  %v2078_v29 = vpop.f32.mrf.mxu1  ;;  %v3705_v38 = vor.u32 %v4099_v26, %v3704_v23  ;;  %v3512_v26 = vld [vmem:[%s4232_s25 + $0x668] sm:$0xf] }
  0xd0   : > { %2357 = vmatpush.bf16.msrb.mxu3 %v3385_v46  ;;  %v2104_v37 = vpop.f32.mrf.mxu3  ;;  %v3688_v46 = vld [vmem:[%s4232_s25 + $0x7c8] sm:$0xf] }
  0xd1   : > { %2319 = vmatpush.bf16.msrb.mxu0 %v2985_v53  ;;  %v2794_v53 = vld [vmem:[%s4232_s25 + $0xd8] sm:$0xf0]  ;;  %v3513_v37 = vor.u32 %v4051_v27, %v3512_v26  ;;  %v3905_v27 = vld [vmem:[%s4232_s25 + $0x1ec] sm:$0xf] }
  0xd2   : > { %v2797_v62 = vor.u32 %v3869_v51, %v2794_v53  ;;  %v3853_v51 = vld [vmem:[%s4232_s25 + $0x4c] sm:$0xf]  ;;  %v2730_v53 = vld [vmem:[%s4232_s25 + $0x58] sm:$0xf0] }
  0xd3   : > { %2332 = vmatpush.bf16.msrb.mxu1 %v3113_v55  ;;  %2345 = vmatpush.bf16.msrb.mxu2 %v3241_v56  ;;  %v3561_v55 = vor.u32 %v4063_v44, %v3560_v41  ;;  %v3689_v56 = vor.u32 %v4095_v48, %v3688_v46  ;;  %v3496_v41 = vld [vmem:[%s4232_s25 + $0x648] sm:$0xf]  ;;  %v4047_v44 = vld [vmem:[%s4232_s25 + $0x654] sm:$0xf0] }
  0xd4   : > { %2358 = vmatpush.bf16.msrb.mxu3 %v3369_v61  ;;  %v3672_v61 = vld [vmem:[%s4232_s25 + $0x7a8] sm:$0xf] }
  0xd5   : > { %2320 = vmatpush.bf16.msrb.mxu0 %v2969_v4  ;;  %v2778_v4 = vld [vmem:[%s4232_s25 + $0xb8] sm:$0xf0]  ;;  %v3673_v8 = vor.u32 %v4091_v63, %v3672_v61  ;;  %v3624_v46 = vld [vmem:[%s4232_s25 + $0x748] sm:$0xf] }
  0xd6   : > { %v2781_v13 = vor.u32 %v3865_v3, %v2778_v4  ;;  %v3625_v58 = vor.u32 %v4079_v49, %v3624_v46  ;;  %v3480_v61 = vld [vmem:[%s4232_s25 + $0x628] sm:$0xf]  ;;  %v4107_v4 = vld [vmem:[%s4232_s25 + $0x834] sm:$0xf0]  ;;  %v2922_v49 = vld [vmem:[%s4232_s25 + $0x1d8] sm:$0xf0] }
  0xd7   : > { %2333 = vmatpush.bf16.msrb.mxu1 %v3097_v9  ;;  %2346 = vmatpush.bf16.msrb.mxu2 %v3225_v10  ;;  %v3801_v9 = vor.u32 %v4123_v2, %v3800_v0  ;;  %v3528_v10 = vld [vmem:[%s4232_s25 + $0x688] sm:$0xf]  ;;  %v2733_v2 = vor.u32 %v3853_v51, %v2730_v53  ;;  %v3050_v53 = vld [vmem:[%s4232_s25 + $0x2d8] sm:$0xf0] }
  0xd8   : > { %2359 = vmatpush.bf16.msrb.mxu3 %v3353_v14  ;;  %v4087_v14 = vld [vmem:[%s4232_s25 + $0x794] sm:$0xf0]  ;;  %v3529_v19 = vor.u32 %v4055_v11, %v3528_v10  ;;  %v3608_v63 = vld [vmem:[%s4232_s25 + $0x728] sm:$0xf] }
  0xd9   : > { %2321 = vmatpush.bf16.msrb.mxu0 %v2953_v25  ;;  %v3657_v24 = vor.u32 %v4087_v14, %v3656_v12  ;;  %v3785_v25 = vor.u32 %v4119_v16, %v3784_v15  ;;  %v3736_v3 = vld [vmem:[%s4232_s25 + $0x828] sm:$0xf]  ;;  %v4039_v12 = vld [vmem:[%s4232_s25 + $0x614] sm:$0xf0] }
  0xda   : > { %v3464_v11 = vld [vmem:[%s4232_s25 + $0x608] sm:$0xf]  ;;  %v3737_v14 = vor.u32 %v4107_v4, %v3736_v3  ;;  %v4071_v16 = vld [vmem:[%s4232_s25 + $0x714] sm:$0xf0]  ;;  %v3034_v3 = vld [vmem:[%s4232_s25 + $0x2b8] sm:$0xf0] }
  0xdb   : > { %2334 = vmatpush.bf16.msrb.mxu1 %v3081_v30  ;;  %2347 = vmatpush.bf16.msrb.mxu2 %v3209_v31  ;;  %v4706_v23 = vpop.f32.mrf.mxu0  ;;  %v2765_v30 = vor.u32 %v3861_v17, %v2762_v18  ;;  %v4083_v31 = vld [vmem:[%s4232_s25 + $0x774] sm:$0xf0]  ;;  %v3592_v15 = vld [vmem:[%s4232_s25 + $0x708] sm:$0xf]  ;;  %v3961_v4 = vld [vmem:[%s4232_s25 + $0x3ac] sm:$0xf] }
  0xdc   : > { %2360 = vmatpush.bf16.msrb.mxu3 %v3337_v35  ;;  %2322 = vmatmul.bf16.vlgmr.msrb.gmra.mxu0 %v4324_v5  ;;  %v2746_v35 = vld [vmem:[%s4232_s25 + $0x78] sm:$0xf0]  ;;  %v3720_v17 = vld [vmem:[%s4232_s25 + $0x808] sm:$0xf] }
  0xdd   : > { %2366 = vmatpush.bf16.msra.mxu0 %v3577_v36  ;;  %v4711_v29 = vpop.f32.mrf.mxu1  ;;  %v2077_v36 = vadd.f32 %v4648_v54, %v4646_v52  ;;  %v2749_v48 = vor.u32 %v3857_v34, %v2746_v35  ;;  %v3752_v52 = vld [vmem:[%s4232_s25 + $0x848] sm:$0xf]  ;;  %v4111_v54 = vld [vmem:[%s4232_s25 + $0x854] sm:$0xf0]  ;;  %v3969_v34 = vld [vmem:[%s4232_s25 + $0x3ec] sm:$0xf] }
  0xde   : > { %2348 = vmatmul.bf16.vlgmr.msrb.gmra.mxu2 %v4397_v42  ;;  %2335 = vmatmul.bf16.vlgmr.msrb.gmra.mxu1 %v4327_v7  ;;  %v3753_v59 = vor.u32 %v4111_v54, %v3752_v52  ;;  %v3194_v35 = vld [vmem:[%s4232_s25 + $0x3f8] sm:$0xf0]  ;;  %v3933_v52 = vld [vmem:[%s4232_s25 + $0x2cc] sm:$0xf] }
  0xdf   : > { %2379 = vmatpush.bf16.msra.mxu1 %v3705_v38  ;;  %2392 = vmatpush.bf16.msra.mxu2 %v3833_v40  ;;  %v3641_v38 = vor.u32 %v4083_v31, %v3640_v28  ;;  %v3769_v40 = vor.u32 %v4115_v33, %v3768_v32  ;;  %v2938_v28 = vld [vmem:[%s4232_s25 + $0x1f8] sm:$0xf0]  ;;  %v3465_v32 = vor.u32 %v4039_v12, %v3464_v11  ;;  %v3893_v12 = vld [vmem:[%s4232_s25 + $0x18c] sm:$0xf] }
  0xe0   : > { %2405 = vmatpush.bf16.msra.mxu3 %v2813_v47  ;;  %v3066_v33 = vld [vmem:[%s4232_s25 + $0x2f8] sm:$0xf0]  ;;  %v3197_v46 = vor.u32 %v3969_v34, %v3194_v35 }
  0xe1   : > { %2361 = vmatmul.bf16.vlgmr.msrb.gmra.mxu3 %v4401_v45  ;;  %2367 = vmatpush.bf16.msra.mxu0 %v3561_v55  ;;  %v4723_v47 = vpop.f32.mrf.mxu2  ;;  %v2090_v55 = vadd.f32 %v4653_v60, %v2077_v36  ;;  %v4075_v60 = vld [vmem:[%s4232_s25 + $0x734] sm:$0xf0]  ;;  %v3593_v36 = vor.u32 %v4071_v16, %v3592_v15 }
  0xe3   : > { %2380 = vmatpush.bf16.msra.mxu1 %v3689_v56  ;;  %2393 = vmatpush.bf16.msra.mxu2 %v3817_v57  ;;  %v3497_v56 = vor.u32 %v4047_v44, %v3496_v41  ;;  %v2117_v57 = vpop.f32.mrf.mxu0  ;;  %v2941_v41 = vor.u32 %v3905_v27, %v2938_v28 }
  0xe4   : > { %2406 = vmatpush.bf16.msra.mxu3 %v2797_v62  ;;  %v4728_v50 = vpop.f32.mrf.mxu3  ;;  %v4043_v62 = vld [vmem:[%s4232_s25 + $0x634] sm:$0xf0]  ;;  %v3997_v57 = vld [vmem:[%s4232_s25 + $0x4cc] sm:$0xf] }
  0xe5   : > { %2368 = vmatpush.bf16.msra.mxu0 %v3545_v6  ;;  %v2130_v0 = vpop.f32.mrf.mxu1  ;;  %v3849_v6 = vld [vmem:[%s4232_s25 + $0x2c] sm:$0xf]  ;;  %v3481_v10 = vor.u32 %v4043_v62, %v3480_v61 }
  0xe6   : > { %v3897_v62 = vld [vmem:[%s4232_s25 + $0x1ac] sm:$0xf] }
  0xe7   : > { %2381 = vmatpush.bf16.msra.mxu1 %v3673_v8  ;;  %2394 = vmatpush.bf16.msra.mxu2 %v3801_v9  ;;  %v2714_v8 = vld [vmem:[%s4232_s25 + $0x38] sm:$0xf0]  ;;  %v2103_v9 = vadd.f32 %v4658_v1, %v2090_v55  ;;  %v3965_v55 = vld [vmem:[%s4232_s25 + $0x3cc] sm:$0xf] }
  0xe8   : > { %2407 = vmatpush.bf16.msra.mxu3 %v2781_v13  ;;  %v3609_v13 = vor.u32 %v4075_v60, %v3608_v63  ;;  %v2717_v18 = vor.u32 %v3849_v6, %v2714_v8  ;;  %v2906_v63 = vld [vmem:[%s4232_s25 + $0x1b8] sm:$0xf0]  ;;  %v3929_v0 = vld [vmem:[%s4232_s25 + $0x2ac] sm:$0xf] }
  0xe9   : > { %2369 = vmatpush.bf16.msra.mxu0 %v3529_v19  ;;  %v2143_v1 = vpop.f32.mrf.mxu2  ;;  %v4103_v19 = vld [vmem:[%s4232_s25 + $0x814] sm:$0xf0]  ;;  %v2116_v31 = vadd.f32 %v4706_v23, %v2103_v9  ;;  %v3162_v6 = vld [vmem:[%s4232_s25 + $0x3b8] sm:$0xf0]  ;;  %v3993_v8 = vld [vmem:[%s4232_s25 + $0x4ac] sm:$0xf] }
  0xea   : > { %v3290_v9 = vld [vmem:[%s4232_s25 + $0x4b8] sm:$0xf0]  ;;  %v3165_v11 = vor.u32 %v3961_v4, %v3162_v6  ;;  %v3957_v1 = vld [vmem:[%s4232_s25 + $0x38c] sm:$0xf] }
  0xeb   : > { %2382 = vmatpush.bf16.msra.mxu1 %v3657_v24  ;;  %2395 = vmatpush.bf16.msra.mxu2 %v3785_v25  ;;  %v3845_v24 = vld [vmem:[%s4232_s25 + $0xc] sm:$0xf]  ;;  %v2698_v25 = vld [vmem:[%s4232_s25 + $0x18] sm:$0xf0]  ;;  %v2129_v54 = vadd.f32 %v4711_v29, %v2116_v31  ;;  %v3053_v29 = vor.u32 %v3933_v52, %v3050_v53  ;;  %v3293_v16 = vor.u32 %v3993_v8, %v3290_v9 }
  0xec   : > { %2408 = vmatpush.bf16.msra.mxu3 %v2765_v30  ;;  %v2156_v26 = vpop.f32.mrf.mxu3  ;;  %v3937_v30 = vld [vmem:[%s4232_s25 + $0x2ec] sm:$0xf]  ;;  %v2701_v23 = vor.u32 %v3845_v24, %v2698_v25  ;;  %v3274_v25 = vld [vmem:[%s4232_s25 + $0x498] sm:$0xf0] }
  0xed   : > { %2370 = vmatpush.bf16.msra.mxu0 %v3513_v37  ;;  %v3721_v37 = vor.u32 %v4103_v19, %v3720_v17  ;;  %v3069_v44 = vor.u32 %v3937_v30, %v3066_v33  ;;  %v3018_v17 = vld [vmem:[%s4232_s25 + $0x298] sm:$0xf0]  ;;  %v3989_v24 = vld [vmem:[%s4232_s25 + $0x48c] sm:$0xf] }
  0xee   : > { %v3889_v30 = vld [vmem:[%s4232_s25 + $0x16c] sm:$0xf]  ;;  %v2874_v31 = vld [vmem:[%s4232_s25 + $0x178] sm:$0xf0]  ;;  %v3277_v35 = vor.u32 %v3989_v24, %v3274_v25 }
  0xef   : > { %2383 = vmatpush.bf16.msra.mxu1 %v3641_v38  ;;  %2396 = vmatpush.bf16.msra.mxu2 %v3769_v40  ;;  %v4001_v38 = vld [vmem:[%s4232_s25 + $0x4ec] sm:$0xf]  ;;  %v3322_v40 = vld [vmem:[%s4232_s25 + $0x4f8] sm:$0xf0] }
  0xf0   : > { %2409 = vmatpush.bf16.msra.mxu3 %v2749_v48  ;;  %v3901_v48 = vld [vmem:[%s4232_s25 + $0x1cc] sm:$0xf]  ;;  %v3325_v51 = vor.u32 %v4001_v38, %v3322_v40  ;;  %v3130_v38 = vld [vmem:[%s4232_s25 + $0x378] sm:$0xf0] }
  0xf1   : > { %2371 = vmatpush.bf16.msra.mxu0 %v3497_v56  ;;  %v3178_v56 = vld [vmem:[%s4232_s25 + $0x3d8] sm:$0xf0]  ;;  %v3985_v40 = vld [vmem:[%s4232_s25 + $0x46c] sm:$0xf] }
  0xf2   : > { %v3181_v61 = vor.u32 %v3965_v55, %v3178_v56  ;;  %v3917_v52 = vld [vmem:[%s4232_s25 + $0x24c] sm:$0xf]  ;;  %v3114_v55 = vld [vmem:[%s4232_s25 + $0x358] sm:$0xf0] }
  0xf3   : > { %2384 = vmatpush.bf16.msra.mxu1 %v3625_v58  ;;  %2397 = vmatpush.bf16.msra.mxu2 %v3753_v59  ;;  %v3306_v58 = vld [vmem:[%s4232_s25 + $0x4d8] sm:$0xf0]  ;;  %v2925_v59 = vor.u32 %v3901_v48, %v2922_v49  ;;  %v3885_v48 = vld [vmem:[%s4232_s25 + $0x14c] sm:$0xf] }
  0xf4   : > { %2410 = vmatpush.bf16.msra.mxu3 %v2733_v2  ;;  %v2142_v2 = vadd.f32 %v4723_v47, %v2129_v54  ;;  %v3309_v60 = vor.u32 %v3997_v57, %v3306_v58  ;;  %v2909_v47 = vor.u32 %v3897_v62, %v2906_v63  ;;  %v2858_v49 = vld [vmem:[%s4232_s25 + $0x158] sm:$0xf0]  ;;  %v3949_v53 = vld [vmem:[%s4232_s25 + $0x34c] sm:$0xf] }
  0xf5   : > { %2372 = vmatpush.bf16.msra.mxu0 %v3481_v10  ;;  %v3037_v10 = vor.u32 %v3929_v0, %v3034_v3  ;;  %v3981_v58 = vld [vmem:[%s4232_s25 + $0x44c] sm:$0xf]  ;;  %v3117_v63 = vor.u32 %v3949_v53, %v3114_v55  ;;  %v2970_v6 = vld [vmem:[%s4232_s25 + $0x238] sm:$0xf0] }
  0xf6   : > { %v2155_v15 = vadd.f32 %v4728_v50, %v2142_v2  ;;  %v3881_v0 = vld [vmem:[%s4232_s25 + $0x12c] sm:$0xf]  ;;  %v2842_v2 = vld [vmem:[%s4232_s25 + $0x138] sm:$0xf0] }
  0xf7   : > { %2385 = vmatpush.bf16.msra.mxu1 %v3609_v13  ;;  %2398 = vmatpush.bf16.msra.mxu2 %v3737_v14  ;;  %v2890_v13 = vld [vmem:[%s4232_s25 + $0x198] sm:$0xf0]  ;;  %v3925_v14 = vld [vmem:[%s4232_s25 + $0x28c] sm:$0xf] }
  0xf8   : > { %2411 = vmatpush.bf16.msra.mxu3 %v2717_v18  ;;  %v3146_v18 = vld [vmem:[%s4232_s25 + $0x398] sm:$0xf0]  ;;  %v2893_v27 = vor.u32 %v3893_v12, %v2890_v13  ;;  %v3021_v50 = vor.u32 %v3925_v14, %v3018_v17  ;;  %v3945_v8 = vld [vmem:[%s4232_s25 + $0x32c] sm:$0xf] }
  0xf9   : > { %2373 = vmatpush.bf16.msra.mxu0 %v3465_v32  ;;  %v2167_v19 = vpop.f32.mrf.mxu0  ;;  %v3149_v28 = vor.u32 %v3957_v1, %v3146_v18  ;;  %v3921_v32 = vld [vmem:[%s4232_s25 + $0x26c] sm:$0xf]  ;;  %v3098_v9 = vld [vmem:[%s4232_s25 + $0x338] sm:$0xf0] }
  0xfa   : > { %v2168_v26 = vadd.f32 %v2167_v19, %v2155_v15  ;;  %v3877_v12 = vld [vmem:[%s4232_s25 + $0x10c] sm:$0xf]  ;;  %v2826_v13 = vld [vmem:[%s4232_s25 + $0x118] sm:$0xf0]  ;;  %v3101_v15 = vor.u32 %v3945_v8, %v3098_v9 }
  0xfb   : > { %2386 = vmatpush.bf16.msra.mxu1 %v3593_v36  ;;  %2399 = vmatpush.bf16.msra.mxu2 %v3721_v37  ;;  %v4793_v33 = vpop.f32.mrf.mxu1  ;;  %v3002_v36 = vld [vmem:[%s4232_s25 + $0x278] sm:$0xf0]  ;;  %v3953_v37 = vld [vmem:[%s4232_s25 + $0x36c] sm:$0xf] }
  0xfc   : > { %2412 = vmatpush.bf16.msra.mxu3 %v2701_v23  ;;  %2374 = vmatmul.bf16.vlgmr.msra.gmra.mxu0 %v4393_v39  ;;  %v3258_v23 = vld [vmem:[%s4232_s25 + $0x478] sm:$0xf0]  ;;  %v3941_v1 = vld [vmem:[%s4232_s25 + $0x30c] sm:$0xf] }
  0xfd   : > { %2418 = vmatpush.bf16.msrb.mxu0 %v2941_v41  ;;  %v2877_v41 = vor.u32 %v3889_v30, %v2874_v31  ;;  %v3261_v54 = vor.u32 %v3985_v40, %v3258_v23  ;;  %v2954_v17 = vld [vmem:[%s4232_s25 + $0x218] sm:$0xf0]  ;;  %v3973_v19 = vld [vmem:[%s4232_s25 + $0x40c] sm:$0xf]  ;;  %v2829_v30 = vor.u32 %v3877_v12, %v2826_v13 }
  0xfe   : > { %2400 = vmatmul.bf16.vlgmr.msra.gmra.mxu2 %v4467_v20  ;;  %2387 = vmatmul.bf16.vlgmr.msra.gmra.mxu1 %v4399_v43  ;;  %v3210_v24 = vld [vmem:[%s4232_s25 + $0x418] sm:$0xf0]  ;;  %v4125_v55 = vld [vmem:[%s4232_s25 + $0x8cc] sm:$0xf] }
  0xff   : > { %2431 = vmatpush.bf16.msrb.mxu1 %v3069_v44  ;;  %2444 = vmatpush.bf16.msrb.mxu2 %v3197_v46  ;;  %v3005_v44 = vor.u32 %v3921_v32, %v3002_v36  ;;  %v3133_v46 = vor.u32 %v3953_v37, %v3130_v38  ;;  %v3578_v31 = vld [vmem:[%s4232_s25 + $0x6f8] sm:$0xf0]  ;;  %v4097_v32 = vld [vmem:[%s4232_s25 + $0x7ec] sm:$0xf]  ;;  %v3213_v40 = vor.u32 %v3973_v19, %v3210_v24 }
 0x100   : > { %2457 = vmatpush.bf16.msrb.mxu3 %v3325_v51  ;;  %v2986_v51 = vld [vmem:[%s4232_s25 + $0x258] sm:$0xf0]  ;;  %v4129_v37 = vld [vmem:[%s4232_s25 + $0x8ec] sm:$0xf] }
 0x101   : > { %2419 = vmatpush.bf16.msrb.mxu0 %v2925_v59  ;;  %2413 = vmatmul.bf16.vlgmr.msra.gmra.mxu3 %v4338_v21  ;;  %v285_v21 = vld [vmem:[#allocation2 + $0x10] sm:$0xff]  ;;  %v4806_v56 = vpop.f32.mrf.mxu2  ;;  %v3242_v59 = vld [vmem:[%s4232_s25 + $0x458] sm:$0xf0]  ;;  %v2989_v62 = vor.u32 %v3917_v52, %v2986_v51  ;;  %v4093_v51 = vld [vmem:[%s4232_s25 + $0x7cc] sm:$0xf] }
 0x102   : > { %v2522_v34 = vadd.f32 %v2168_v26, %v285_v21  ;;  %v3245_v4 = vor.u32 %v3981_v58, %v3242_v59  ;;  %v3082_v21 = vld [vmem:[%s4232_s25 + $0x318] sm:$0xf0]  ;;  %v4085_v13 = vld [vmem:[%s4232_s25 + $0x78c] sm:$0xf] }
 0x103   : > { %2432 = vmatpush.bf16.msrb.mxu1 %v3053_v29  ;;  %2445 = vmatpush.bf16.msrb.mxu2 %v3181_v61  ;;  %v2169_v29 = vpop.f32.mrf.mxu0  ;;  %v2861_v61 = vor.u32 %v3885_v48, %v2858_v49  ;;  %v2182_v3 = vpop.f32.mrf.mxu1  ;;  %v3085_v36 = vor.u32 %v3941_v1, %v3082_v21  ;;  %v3834_v38 = vld [vmem:[%s4232_s25 + $0x8f8] sm:$0xf0]  ;;  %v4061_v49 = vld [vmem:[%s4232_s25 + $0x6cc] sm:$0xf] }
 0x104   : > { %2458 = vmatpush.bf16.msrb.mxu3 %v3309_v60  ;;  %2526 = vst [vmem:[#allocation2 + $0x10] sm:$0xff] %v2522_v34  ;;  %v4808_v57 = vpop.f32.mrf.mxu3  ;;  %v3913_v60 = vld [vmem:[%s4232_s25 + $0x22c] sm:$0xf]  ;;  %v3706_v34 = vld [vmem:[%s4232_s25 + $0x7f8] sm:$0xf0]  ;;  %v3837_v52 = vor.u32 %v4129_v37, %v3834_v38 }
 0x105   : > { %2420 = vmatpush.bf16.msrb.mxu0 %v2909_v47  ;;  %v3977_v47 = vld [vmem:[%s4232_s25 + $0x42c] sm:$0xf]  ;;  %v2973_v14 = vor.u32 %v3913_v60, %v2970_v6  ;;  %v3434_v48 = vld [vmem:[%s4232_s25 + $0x5d8] sm:$0xf0] }
 0x106   : > { %v3690_v53 = vld [vmem:[%s4232_s25 + $0x7d8] sm:$0xf0]  ;;  %v4089_v3 = vld [vmem:[%s4232_s25 + $0x7ac] sm:$0xf] }
 0x107   : > { %2433 = vmatpush.bf16.msrb.mxu1 %v3037_v10  ;;  %2446 = vmatpush.bf16.msrb.mxu2 %v3165_v11  ;;  %v3226_v10 = vld [vmem:[%s4232_s25 + $0x438] sm:$0xf0]  ;;  %v2845_v11 = vor.u32 %v3881_v0, %v2842_v2  ;;  %v4057_v0 = vld [vmem:[%s4232_s25 + $0x6ac] sm:$0xf] }
 0x108   : > { %2459 = vmatpush.bf16.msrb.mxu3 %v3293_v16  ;;  %v3909_v16 = vld [vmem:[%s4232_s25 + $0x20c] sm:$0xf]  ;;  %v3229_v18 = vor.u32 %v3977_v47, %v3226_v10  ;;  %v3818_v58 = vld [vmem:[%s4232_s25 + $0x8d8] sm:$0xf0] }
 0x109   : > { %2421 = vmatpush.bf16.msrb.mxu0 %v2893_v27  ;;  %v2195_v25 = vpop.f32.mrf.mxu2  ;;  %v4033_v27 = vld [vmem:[%s4232_s25 + $0x5ec] sm:$0xf]  ;;  %v3821_v2 = vor.u32 %v4125_v55, %v3818_v58  ;;  %v3546_v60 = vld [vmem:[%s4232_s25 + $0x6b8] sm:$0xf0] }
 0x10a   : > { %v4121_v6 = vld [vmem:[%s4232_s25 + $0x8ac] sm:$0xf]  ;;  %v3802_v8 = vld [vmem:[%s4232_s25 + $0x8b8] sm:$0xf0]  ;;  %v3549_v9 = vor.u32 %v4057_v0, %v3546_v60 }
 0x10b   : > { %2434 = vmatpush.bf16.msrb.mxu1 %v3021_v50  ;;  %2447 = vmatpush.bf16.msrb.mxu2 %v3149_v28  ;;  %v3450_v50 = vld [vmem:[%s4232_s25 + $0x5f8] sm:$0xf0]  ;;  %v4065_v28 = vld [vmem:[%s4232_s25 + $0x6ec] sm:$0xf] }
 0x10c   : > { %2460 = vmatpush.bf16.msrb.mxu3 %v3277_v35  ;;  %v2208_v26 = vpop.f32.mrf.mxu3  ;;  %v2957_v35 = vor.u32 %v3909_v16, %v2954_v17  ;;  %v3453_v23 = vor.u32 %v4033_v27, %v3450_v50  ;;  %v4021_v10 = vld [vmem:[%s4232_s25 + $0x58c] sm:$0xf]  ;;  %v3530_v12 = vld [vmem:[%s4232_s25 + $0x698] sm:$0xf0] }
 0x10d   : > { %2422 = vmatpush.bf16.msrb.mxu0 %v2877_v41  ;;  %v3581_v41 = vor.u32 %v4065_v28, %v3578_v31  ;;  %v4017_v21 = vld [vmem:[%s4232_s25 + $0x56c] sm:$0xf]  ;;  %v3386_v19 = vld [vmem:[%s4232_s25 + $0x578] sm:$0xf0] }
 0x10e   : > { %v4049_v24 = vld [vmem:[%s4232_s25 + $0x66c] sm:$0xf]  ;;  %v3514_v27 = vld [vmem:[%s4232_s25 + $0x678] sm:$0xf0] }
 0x10f   : > { %2435 = vmatpush.bf16.msrb.mxu1 %v3005_v44  ;;  %2448 = vmatpush.bf16.msrb.mxu2 %v3133_v46  ;;  %v3709_v44 = vor.u32 %v4097_v32, %v3706_v34  ;;  %v4029_v46 = vld [vmem:[%s4232_s25 + $0x5cc] sm:$0xf]  ;;  %v3642_v28 = vld [vmem:[%s4232_s25 + $0x778] sm:$0xf0]  ;;  %v3389_v32 = vor.u32 %v4017_v21, %v3386_v19  ;;  %v3517_v34 = vor.u32 %v4049_v24, %v3514_v27 }
 0x110   : > { %2461 = vmatpush.bf16.msrb.mxu3 %v3261_v54  ;;  %v3562_v54 = vld [vmem:[%s4232_s25 + $0x6d8] sm:$0xf0]  ;;  %v3437_v59 = vor.u32 %v4029_v46, %v3434_v48  ;;  %v4081_v50 = vld [vmem:[%s4232_s25 + $0x76c] sm:$0xf] }
 0x111   : > { %2423 = vmatpush.bf16.msrb.mxu0 %v2861_v61  ;;  %v3565_v29 = vor.u32 %v4061_v49, %v3562_v54  ;;  %v3693_v61 = vor.u32 %v4093_v51, %v3690_v53  ;;  %v3770_v31 = vld [vmem:[%s4232_s25 + $0x878] sm:$0xf0]  ;;  %v4045_v38 = vld [vmem:[%s4232_s25 + $0x64c] sm:$0xf]  ;;  %v2194_v54 = vadd.f32 %v4806_v56, %v4793_v33 }
 0x112   : > { %v3370_v37 = vld [vmem:[%s4232_s25 + $0x558] sm:$0xf0]  ;;  %v4109_v49 = vld [vmem:[%s4232_s25 + $0x84c] sm:$0xf] }
 0x113   : > { %2436 = vmatpush.bf16.msrb.mxu1 %v2989_v62  ;;  %2449 = vmatpush.bf16.msrb.mxu2 %v3117_v63  ;;  %v4025_v62 = vld [vmem:[%s4232_s25 + $0x5ac] sm:$0xf]  ;;  %v3418_v63 = vld [vmem:[%s4232_s25 + $0x5b8] sm:$0xf0] }
 0x114   : > { %2462 = vmatpush.bf16.msrb.mxu3 %v3245_v4  ;;  %v3674_v4 = vld [vmem:[%s4232_s25 + $0x7b8] sm:$0xf0]  ;;  %v4073_v56 = vld [vmem:[%s4232_s25 + $0x72c] sm:$0xf] }
 0x115   : > { %2424 = vmatpush.bf16.msrb.mxu0 %v2845_v11  ;;  %v3677_v47 = vor.u32 %v4089_v3, %v3674_v4  ;;  %v3402_v11 = vld [vmem:[%s4232_s25 + $0x598] sm:$0xf0]  ;;  %v2207_v3 = vadd.f32 %v4808_v57, %v2194_v54 }
 0x116   : > { %v3405_v16 = vor.u32 %v4021_v10, %v3402_v11  ;;  %v3626_v46 = vld [vmem:[%s4232_s25 + $0x758] sm:$0xf0] }
 0x117   : > { %2437 = vmatpush.bf16.msrb.mxu1 %v2973_v14  ;;  %2450 = vmatpush.bf16.msrb.mxu2 %v3101_v15  ;;  %v3658_v14 = vld [vmem:[%s4232_s25 + $0x798] sm:$0xf0]  ;;  %v4117_v15 = vld [vmem:[%s4232_s25 + $0x88c] sm:$0xf] }
 0x118   : > { %2463 = vmatpush.bf16.msrb.mxu3 %v3229_v18  ;;  %v3661_v18 = vor.u32 %v4085_v13, %v3658_v14  ;;  %v3482_v33 = vld [vmem:[%s4232_s25 + $0x638] sm:$0xf0]  ;;  %v4101_v14 = vld [vmem:[%s4232_s25 + $0x80c] sm:$0xf] }
 0x119   : > { %2425 = vmatpush.bf16.msrb.mxu0 %v2829_v30  ;;  %v4864_v17 = vpop.f32.mrf.mxu0  ;;  %v4113_v30 = vld [vmem:[%s4232_s25 + $0x86c] sm:$0xf]  ;;  %v3610_v0 = vld [vmem:[%s4232_s25 + $0x738] sm:$0xf0] }
 0x11a   : > { %v3738_v60 = vld [vmem:[%s4232_s25 + $0x838] sm:$0xf0] }
 0x11b   : > { %2438 = vmatpush.bf16.msrb.mxu1 %v2957_v35  ;;  %2451 = vmatpush.bf16.msrb.mxu2 %v3085_v36  ;;  %v4869_v25 = vpop.f32.mrf.mxu1  ;;  %v3645_v35 = vor.u32 %v4081_v50, %v3642_v28  ;;  %v4013_v36 = vld [vmem:[%s4232_s25 + $0x54c] sm:$0xf]  ;;  %v3722_v57 = vld [vmem:[%s4232_s25 + $0x818] sm:$0xf0]  ;;  %v286_v50 = vld [vmem:[#allocation2] sm:$0xff] }
 0x11c   : > { %2464 = vmatpush.bf16.msrb.mxu3 %v3213_v40  ;;  %2426 = vmatmul.bf16.vlgmr.msrb.gmra.mxu0 %v4341_v22  ;;  %v4053_v22 = vld [vmem:[%s4232_s25 + $0x68c] sm:$0xf]  ;;  %v3373_v51 = vor.u32 %v4013_v36, %v3370_v37 }
 0x11d   : > { %2470 = vmatpush.bf16.msra.mxu0 %v3453_v23  ;;  %v3533_v1 = vor.u32 %v4053_v22, %v3530_v12  ;;  %v3773_v23 = vor.u32 %v4113_v30, %v3770_v31  ;;  %v3466_v22 = vld [vmem:[%s4232_s25 + $0x618] sm:$0xf0] }
 0x11e   : > { %2452 = vmatmul.bf16.vlgmr.msrb.gmra.mxu2 %v4327_v7  ;;  %2439 = vmatmul.bf16.vlgmr.msrb.gmra.mxu1 %v4324_v5  ;;  %v3421_v7 = vor.u32 %v4025_v62, %v3418_v63  ;;  %v3786_v5 = vld [vmem:[%s4232_s25 + $0x898] sm:$0xf0] }
 0x11f   : > { %2483 = vmatpush.bf16.msra.mxu1 %v3581_v41  ;;  %2496 = vmatpush.bf16.msra.mxu2 %v3709_v44  ;;  %v3789_v26 = vor.u32 %v4117_v15, %v3786_v5  ;;  %v3498_v41 = vld [vmem:[%s4232_s25 + $0x658] sm:$0xf0]  ;;  %v4077_v44 = vld [vmem:[%s4232_s25 + $0x74c] sm:$0xf]  ;;  %v2220_v15 = vadd.f32 %v4864_v17, %v2207_v3 }
 0x120   : > { %2509 = vmatpush.bf16.msra.mxu3 %v3837_v52  ;;  %v3754_v52 = vld [vmem:[%s4232_s25 + $0x858] sm:$0xf0]  ;;  %v3501_v55 = vor.u32 %v4045_v38, %v3498_v41  ;;  %v3629_v58 = vor.u32 %v4077_v44, %v3626_v46 }
 0x121   : > { %2465 = vmatmul.bf16.vlgmr.msrb.gmra.mxu3 %v4397_v42  ;;  %2471 = vmatpush.bf16.msra.mxu0 %v3437_v59  ;;  %v3805_v42 = vor.u32 %v4121_v6, %v3802_v8  ;;  %v2245_v40 = vpop.f32.mrf.mxu2  ;;  %v2221_v53 = vpop.f32.mrf.mxu0  ;;  %v4009_v59 = vld [vmem:[%s4232_s25 + $0x52c] sm:$0xf]  ;;  %v3757_v63 = vor.u32 %v4109_v49, %v3754_v52  ;;  %v3613_v8 = vor.u32 %v4073_v56, %v3610_v0  ;;  %v3594_v12 = vld [vmem:[%s4232_s25 + $0x718] sm:$0xf0] }
 0x122   : > { %v2233_v21 = vadd.f32 %v4869_v25, %v2220_v15 }
 0x123   : > { %2484 = vmatpush.bf16.msra.mxu1 %v3565_v29  ;;  %2497 = vmatpush.bf16.msra.mxu2 %v3693_v61  ;;  %v3354_v29 = vld [vmem:[%s4232_s25 + $0x538] sm:$0xf0]  ;;  %v4041_v61 = vld [vmem:[%s4232_s25 + $0x62c] sm:$0xf]  ;;  %v2234_v62 = vpop.f32.mrf.mxu1 }
 0x124   : > { %2510 = vmatpush.bf16.msra.mxu3 %v3821_v2  ;;  %v2258_v48 = vpop.f32.mrf.mxu3  ;;  %v4105_v2 = vld [vmem:[%s4232_s25 + $0x82c] sm:$0xf]  ;;  %v3357_v4 = vor.u32 %v4009_v59, %v3354_v29  ;;  %v3485_v6 = vor.u32 %v4041_v61, %v3482_v33  ;;  %v2246_v19 = vadd.f32 %v2245_v40, %v2233_v21 }
 0x125   : > { %2472 = vmatpush.bf16.msra.mxu0 %v3421_v7  ;;  %v4005_v7 = vld [vmem:[%s4232_s25 + $0x50c] sm:$0xf]  ;;  %v3741_v11 = vor.u32 %v4105_v2, %v3738_v60 }
 0x126   : > { %v2259_v17 = vadd.f32 %v2258_v48, %v2246_v19 }
 0x127   : > { %2485 = vmatpush.bf16.msra.mxu1 %v3549_v9  ;;  %2498 = vmatpush.bf16.msra.mxu2 %v3677_v47  ;;  %v3338_v9 = vld [vmem:[%s4232_s25 + $0x518] sm:$0xf0]  ;;  %v4037_v47 = vld [vmem:[%s4232_s25 + $0x60c] sm:$0xf] }
 0x128   : > { %2511 = vmatpush.bf16.msra.mxu3 %v3805_v42  ;;  %v4069_v42 = vld [vmem:[%s4232_s25 + $0x70c] sm:$0xf]  ;;  %v3341_v5 = vor.u32 %v4005_v7, %v3338_v9 }
 0x129   : > { %2473 = vmatpush.bf16.msra.mxu0 %v3405_v16  ;;  %v2247_v10 = vpop.f32.mrf.mxu2  ;;  %v3469_v16 = vor.u32 %v4037_v47, %v3466_v22 }
 0x12b   : > { %2486 = vmatpush.bf16.msra.mxu1 %v3533_v1  ;;  %2499 = vmatpush.bf16.msra.mxu2 %v3661_v18  ;;  %v3597_v1 = vor.u32 %v4069_v42, %v3594_v12  ;;  %v3725_v18 = vor.u32 %v4101_v14, %v3722_v57 }
 0x12c   : > { %2512 = vmatpush.bf16.msra.mxu3 %v3789_v26  ;;  %v2260_v13 = vpop.f32.mrf.mxu3 }
 0x12d   : > { %2474 = vmatpush.bf16.msra.mxu0 %v3389_v32 }
 0x12f   : > { %2487 = vmatpush.bf16.msra.mxu1 %v3517_v34  ;;  %2500 = vmatpush.bf16.msra.mxu2 %v3645_v35 }
 0x130   : > { %2513 = vmatpush.bf16.msra.mxu3 %v3773_v23 }
 0x131   : > { %2475 = vmatpush.bf16.msra.mxu0 %v3373_v51 }
 0x133   : > { %2488 = vmatpush.bf16.msra.mxu1 %v3501_v55  ;;  %2501 = vmatpush.bf16.msra.mxu2 %v3629_v58  ;;  %v287_v55 = vld [vmem:[#allocation2 + $0x18] sm:$0xff] }
 0x134   : > { %2514 = vmatpush.bf16.msra.mxu3 %v3757_v63 }
 0x135   : > { %2476 = vmatpush.bf16.msra.mxu0 %v3357_v4 }
 0x137   : > { %2489 = vmatpush.bf16.msra.mxu1 %v3485_v6  ;;  %2502 = vmatpush.bf16.msra.mxu2 %v3613_v8 }
 0x138   : > { %2515 = vmatpush.bf16.msra.mxu3 %v3741_v11 }
 0x139   : > { %2477 = vmatpush.bf16.msra.mxu0 %v3341_v5  ;;  %v2271_v24 = vpop.f32.mrf.mxu0 }
 0x13a   : > { %v2272_v26 = vadd.f32 %v2271_v24, %v2259_v17 }
 0x13b   : > { %2490 = vmatpush.bf16.msra.mxu1 %v3469_v16  ;;  %2503 = vmatpush.bf16.msra.mxu2 %v3597_v1  ;;  %v2284_v27 = vpop.f32.mrf.mxu1  ;;  %v288_v16 = vld [vmem:[#allocation2 + $0x8] sm:$0xff] }
 0x13c   : > { %2516 = vmatpush.bf16.msra.mxu3 %v3725_v18  ;;  %2478 = vmatmul.bf16.vlgmr.msra.gmra.mxu0 %v4401_v45  ;;  %v2285_v28 = vadd.f32 %v2284_v27, %v2272_v26 }
 0x13e   : > { %2491 = vmatmul.bf16.vlgmr.msra.gmra.mxu1 %v4393_v39  ;;  %2504 = vmatmul.bf16.vlgmr.msra.gmra.mxu2 %v4399_v43  ;;  %v2523_v25 = vadd.f32 %v2285_v28, %v286_v50 }
 0x13f   : > { %2517 = vmatmul.bf16.vlgmr.msra.gmra.mxu3 %v4467_v20 }
 0x140   : > { %2527 = vst [vmem:[#allocation2] sm:$0xff] %v2523_v25 }
 0x141   : > { %v2297_v30 = vpop.f32.mrf.mxu2  ;;  %v2273_v32 = vpop.f32.mrf.mxu0 }
 0x143   : > { %v2286_v34 = vpop.f32.mrf.mxu1 }
 0x144   : > { %v2310_v31 = vpop.f32.mrf.mxu3 }
 0x145   : > { %v2311_v40 = vadd.f32 %v2310_v31, %v2297_v30 }
 0x149   : > { %v2299_v45 = vpop.f32.mrf.mxu2 }
 0x14c   : > { %v2312_v35 = vpop.f32.mrf.mxu3 }
 0x159   : > { %v2323_v36 = vpop.f32.mrf.mxu0 }
 0x15a   : > { %v2324_v44 = vadd.f32 %v2323_v36, %v2311_v40 }
 0x15b   : > { %v2336_v39 = vpop.f32.mrf.mxu1 }
 0x15c   : > { %v2337_v46 = vadd.f32 %v2336_v39, %v2324_v44 }
 0x161   : > { %v2349_v37 = vpop.f32.mrf.mxu2  ;;  %v2325_v38 = vpop.f32.mrf.mxu0 }
 0x162   : > { %v2350_v48 = vadd.f32 %v2349_v37, %v2337_v46 }
 0x163   : > { %v2338_v20 = vpop.f32.mrf.mxu1 }
 0x164   : > { %v2362_v43 = vpop.f32.mrf.mxu3 }
 0x165   : > { %v2363_v49 = vadd.f32 %v2362_v43, %v2350_v48 }
 0x169   : > { %v2351_v23 = vpop.f32.mrf.mxu2 }
 0x16c   : > { %v2364_v41 = vpop.f32.mrf.mxu3 }
 0x179   : > { %v2375_v52 = vpop.f32.mrf.mxu0 }
 0x17a   : > { %v2376_v51 = vadd.f32 %v2375_v52, %v2363_v49 }
 0x17b   : > { %v2388_v54 = vpop.f32.mrf.mxu1 }
 0x17c   : > { %v2389_v53 = vadd.f32 %v2388_v54, %v2376_v51 }
 0x181   : > { %v2401_v58 = vpop.f32.mrf.mxu2  ;;  %v2377_v61 = vpop.f32.mrf.mxu0 }
 0x182   : > { %v2402_v59 = vadd.f32 %v2401_v58, %v2389_v53 }
 0x183   : > { %v2390_v62 = vpop.f32.mrf.mxu1 }
 0x184   : > { %v2414_v29 = vpop.f32.mrf.mxu3  ;;  %v2524_v63 = vadd.f32 %v2402_v59, %v287_v55 }
 0x186   : > { %2528 = vst [vmem:[#allocation2 + $0x18] sm:$0xff] %v2524_v63 }
 0x189   : > { %v2403_v33 = vpop.f32.mrf.mxu2 }
 0x18c   : > { %v2416_v56 = vpop.f32.mrf.mxu3 }
 0x199   : > { %v2427_v0 = vpop.f32.mrf.mxu0 }
 0x19a   : > { %v2428_v9 = vadd.f32 %v2427_v0, %v2414_v29 }
 0x19b   : > { %v2440_v2 = vpop.f32.mrf.mxu1 }
 0x19c   : > { %v2441_v47 = vadd.f32 %v2440_v2, %v2428_v9 }
 0x1a1   : > { %v2453_v60 = vpop.f32.mrf.mxu2  ;;  %v2429_v4 = vpop.f32.mrf.mxu0 }
 0x1a2   : > { %v2454_v10 = vadd.f32 %v2453_v60, %v2441_v47 }
 0x1a3   : > { %v2442_v6 = vpop.f32.mrf.mxu1 }
 0x1a4   : > { %v2466_v3 = vpop.f32.mrf.mxu3 }
 0x1a5   : > { %v2467_v11 = vadd.f32 %v2466_v3, %v2454_v10 }
 0x1a9   : > { %v2455_v8 = vpop.f32.mrf.mxu2 }
 0x1ac   : > { %v2468_v7 = vpop.f32.mrf.mxu3 }
 0x1b9   : > { %v2479_v22 = vpop.f32.mrf.mxu0 }
 0x1ba   : > { %v2480_v12 = vadd.f32 %v2479_v22, %v2467_v11 }
 0x1bb   : > { %v2492_v42 = vpop.f32.mrf.mxu1 }
 0x1bc   : > { %v2493_v13 = vadd.f32 %v2492_v42, %v2480_v12 }
 0x1c1   : > { %v2505_v14 = vpop.f32.mrf.mxu2  ;;  %v2481_v5 = vpop.f32.mrf.mxu0 }
 0x1c2   : > { %v2506_v57 = vadd.f32 %v2505_v14, %v2493_v13  ;;  %v2518_v15 = vpop.f32.mrf.mxu3 }
 0x1c3   : > { %v2494_v1 = vpop.f32.mrf.mxu1 }
 0x1c4   : > { %v2519_v18 = vadd.f32 %v2518_v15, %v2506_v57 }
 0x1c6   : > { %v2525_v21 = vadd.f32 %v2519_v18, %v288_v16  ;;  %2533 = sbr.rel (%p3838_p7) target bundleno = 471 (0x1d7), region = 40 }
 0x1c8   : > { %2529 = vst [vmem:[#allocation2 + $0x8] sm:$0xff] %v2525_v21 }
 0x1c9   : > { %v2507_v19 = vpop.f32.mrf.mxu2 }
 0x1ca   : > { %v2520_v17 = vpop.f32.mrf.mxu3 }
 0x1cb   : > { %v2534_v24 = vld [vmem:[#allocation2 + $0x10] sm:$0xff]  ;;  %v2535_v26 = vld [vmem:[#allocation2] sm:$0xff]  ;;  %v2536_v25 = vld [vmem:[#allocation2 + $0x18] sm:$0xff] }
 0x1cc   : > { %v2538_v27 = vld [vmem:[%s4930_s2] sm:$0xf] }
 0x1cd   : > { %v2540_v50 = vperm.slane %v2538_v27, 0  ;;  %v2541_v28 = vperm.slane %v2538_v27, 1  ;;  %v2542_v31 = vperm.slane %v2538_v27, 2  ;;  %v2543_v32 = vperm.slane %v2538_v27, 3 }
 0x1cf   : > { %v2537_v30 = vld [vmem:[#allocation2 + $0x8] sm:$0xff]  ;;  %v2548_v34 = vadd.f32 %v2540_v50, %v2534_v24  ;;  %v2549_v45 = vadd.f32 %v2541_v28, %v2535_v26  ;;  %v2550_v35 = vadd.f32 %v2542_v31, %v2536_v25 }
 0x1d0   : > { %v2551_v36 = vadd.f32 %v2543_v32, %v2537_v30 }
 0x1d1   : > { %v2552_v39 = vmax.f32 %v2548_v34, 0.0  ;;  %v2553_v37 = vmax.f32 %v2549_v45, 0.0  ;;  %v2554_v43 = vmax.f32 %v2550_v35, 0.0 }
 0x1d2   : > { %v2555_v38 = vmax.f32 %v2551_v36, 0.0 }
 0x1d3   : > { %v2556_v20 = vpack.c.bf16 %v2553_v37, %v2552_v39 }
 0x1d4   : > { %v2557_v40 = vpack.c.bf16 %v2555_v38, %v2554_v43 }
 0x1d5   : > { %2558 = vst [vmem:[%s4931_s3] sm:$0xff] %v2556_v20 }
 0x1d6   : > { %2559 = vst [vmem:[%s4931_s3 + $0x8] sm:$0xff] %v2557_v40 }
 0x1d7 PF: > { %s13_s14 = sadd.s32 1, %s4179_s14   ;;  %s4932_s12 = smov %s4175_s13 }
 0x1d8   : > { %p10_p8 = scmp.ge.s32.totalorder %s13_s14, 4   ;;  %s4933_s13 = smov %s4935_s15 }
 0x1da   :  { %12 = sbr.rel (!%p10_p8) target bundleno = 2 (0x2), region = 76 }

</bundles_post_ra>
